<compile_context>
chip_gen: v7x
topology: tpu7x:2x2x1
jax: 0.10.0
libtpu: 0.0.40
codegen_flags: <defaults>
</compile_context>

<pallas_src>
import numpy as np
import jax
import jax.numpy as jnp
from jax import lax
from jax.experimental import pallas as pl
from jax.experimental.pallas import tpu as pltpu

_EINSHAPE = getattr(pltpu, "einshape", None)


# ------------------------------------------------------------------------------------
# Low-pass filter design (host-side numpy re-implementation of scipy.signal.firwin
# with the `width` argument, i.e. a Kaiser-windowed sinc).  Init-time glue.
# ------------------------------------------------------------------------------------
def _kaiser_atten(numtaps, width):
    return 2.285 * (numtaps - 1) * np.pi * width + 7.95


def _kaiser_beta(a):
    if a > 50:
        return 0.1102 * (a - 8.7)
    if a > 21:
        return 0.5842 * (a - 21.0) ** 0.4 + 0.07886 * (a - 21.0)
    return 0.0


def design_lowpass_filter(numtaps, cutoff, width, fs):
    assert numtaps >= 1
    if numtaps == 1:
        return None
    nyq = fs / 2.0
    beta = _kaiser_beta(_kaiser_atten(numtaps, width / nyq))
    right = cutoff / nyq
    m = np.arange(numtaps) - (numtaps - 1) / 2.0
    h = right * np.sinc(right * m)
    h = h * np.kaiser(numtaps, beta)
    h = h / np.sum(h)  # unity DC gain (firwin scale=True, pass_zero)
    return h.astype(np.float32)


def _round_up(v, m):
    return ((v + m - 1) // m) * m


# ------------------------------------------------------------------------------------
# upfirdn (per spatial axis) as dense transform matrices (host-side, init-time).
#   A [Lu, L]  : zero-insert upsample(up) -> pad(p0,p1) -> 'valid' FIR with flip(fu)*up
#   B [Lout,Lu]: 'valid' FIR with flip(fd) -> keep every `down`-th sample
# ------------------------------------------------------------------------------------
def _upfirdn_matrices(L, up, down, p0, p1, up_filter, down_filter):
    fu = np.asarray(up_filter, np.float64)[::-1] * up
    fd = np.asarray(down_filter, np.float64)[::-1]
    Tu, Td = len(fu), len(fd)
    Lp = L * up + p0 + p1
    Lu = Lp - Tu + 1
    Ld = Lu - Td + 1
    Lout = (Ld + down - 1) // down
    A = np.zeros((Lu, L), np.float64)
    for j in range(Lu):
        for k in range(L):
            t = p0 + k * up - j
            if 0 <= t < Tu:
                A[j, k] = fu[t]
    B = np.zeros((Lout, Lu), np.float64)
    for m_ in range(Lout):
        for i in range(Lu):
            t = i - m_ * down
            if 0 <= t < Td:
                B[m_, i] = fd[t]
    return A.astype(np.float32), B.astype(np.float32), int(Lu), int(Lout)


def _vmem_limit_bytes():
    # Re-derive the VMEM budget from the actual part (v5e/v6e: 128 MiB, v7x: 64 MiB / TC).
    try:
        cap = pltpu.get_tpu_info().vmem_capacity_bytes
        return int(min(0.7 * cap, 64 * 1024 * 1024))
    except Exception:
        return 32 * 1024 * 1024


# ------------------------------------------------------------------------------------
# Fused Pallas kernel: conv (tap-packed) + filtered_lrelu (channel-batched FIR matmuls).
# Per grid block (n, channel-block).
# ------------------------------------------------------------------------------------
def _make_fused_kernel(K, Cin, cblk, Ho_p, Wo_p, Wu_p, Hu_p, Hout, Wout, gain, slope):
    gain = float(gain)
    slope = float(slope)
    KKCin1 = K * K * Cin + 1

    def kernel(x_ref, w_ref, awt_ref, aht_ref, bwt_ref, bht_ref, o_ref):
        # x_ref : [1, Ho_p+K-1, Wo_p+K-1, Cin] bf16  padded image (reused across channel blocks)
        # w_ref : [cblk, K*K*Cin+1]            bf16  conv taps + folded (conv+layer) bias column
        # a/b*  : bf16 per-axis FIR transform matrices (zero rows/cols mask alignment padding)
        # o_ref : [1, cblk, Hout, Wout]        f32
        x = x_ref[0]

        # --- conv: tap-packed "im2col" built from static VMEM slices + one MXU matmul ----------
        taps = []
        for kh in range(K):            # static K*K tap loop, all in VMEM
            for kw in range(K):
                # TODO(synk): at production Cin, replace the kw-unaligned sublane slices with
                # pltpu.roll along W + aligned slices (XLU slot) to avoid shifted full-slab copies.
                taps.append(x[kh:kh + Ho_p, kw:kw + Wo_p, :])
        taps.append(jnp.ones((Ho_p, Wo_p, 1), jnp.bfloat16))       # ones column -> folded bias
        slab = jnp.concatenate(taps, axis=-1).reshape(Ho_p * Wo_p, KKCin1)
        # y[(h,w), c].  NOTE: the alignment-padding rows/cols (h >= Ho, w >= Wo) contain
        # bias-only garbage; they are masked by the ZERO columns of A_h / A_w below.
        y = lax.dot_general(slab, w_ref[...], (((1,), (1,)), ((), ())),
                            preferred_element_type=jnp.float32)     # [Ho_p*Wo_p, cblk] f32

        # --- single in-kernel relayout to channel-major [cblk, Ho_p, Wo_p] ----------------------
        y = y.reshape(Ho_p, Wo_p, cblk)
        y = jnp.swapaxes(y, 1, 2)                                   # [Ho_p, cblk, Wo_p]
        if _EINSHAPE is not None:
            y = _EINSHAPE("hcw->chw", y)                            # [cblk, Ho_p, Wo_p]
        else:
            y = jnp.transpose(y, (1, 0, 2))

        # --- filtered_lrelu: 4 channel-batched bf16 MXU matmuls (f32 accumulation) --------------
        #   z = B_h @ lrelu(A_h @ y @ A_w^T) @ B_w^T, with all cblk channels stacked on rows.
        t = jnp.dot(y.reshape(cblk * Ho_p, Wo_p).astype(jnp.bfloat16), awt_ref[...],
                    preferred_element_type=jnp.float32)             # [(c,h), Wu_p]   W up-FIR
        t = jnp.swapaxes(t.reshape(cblk, Ho_p, Wu_p), 1, 2)         # [cblk, Wu_p, Ho_p]
        t = jnp.dot(t.reshape(cblk * Wu_p, Ho_p).astype(jnp.bfloat16), aht_ref[...],
                    preferred_element_type=jnp.float32)             # [(c,wu), Hu_p]  H up-FIR
        t = jnp.where(t >= 0.0, t, slope * t) * gain                # leaky ReLU * gain (f32)
        t = jnp.dot(t.astype(jnp.bfloat16), bht_ref[...],
                    preferred_element_type=jnp.float32)             # [(c,wu), Hout]  H down+dec
        t = jnp.swapaxes(t.reshape(cblk, Wu_p, Hout), 1, 2)         # [cblk, Hout, Wu_p]
        z = jnp.dot(t.reshape(cblk * Hout, Wu_p).astype(jnp.bfloat16), bwt_ref[...],
                    preferred_element_type=jnp.float32)             # [(c,ho), Wout]  W down+dec
        # TODO(synk): lane-dense output packing (flatten Hout*Wout onto lanes or channels-last)
        # for production shapes; Wout-wide stores are negligible at these sizes.
        o_ref[0] = z.reshape(cblk, Hout, Wout)

    return kernel


# ------------------------------------------------------------------------------------
# SynthesisLayer in JAX/Pallas
# ------------------------------------------------------------------------------------
class SynthesisLayerPallas:
    def __init__(self, is_critically_sampled, in_channels, out_channels,
                 in_size, out_size, in_sampling_rate, out_sampling_rate,
                 in_cutoff, out_cutoff, in_half_width, out_half_width,
                 conv_kernel=3, filter_size=6, lrelu_upsampling=2,
                 use_radial_filters=False, key=None):
        # TODO(synk): RadialConv2d (use_radial_filters=True) rot90 weight symmetrization not implemented.
        assert not use_radial_filters
        self.is_critically_sampled = is_critically_sampled
        self.in_channels = in_channels
        self.out_channels = out_channels
        self.in_size = np.broadcast_to(np.asarray(in_size), [2])
        self.out_size = np.broadcast_to(np.asarray(out_size), [2])
        self.conv_kernel = conv_kernel

        tmp = max(in_sampling_rate, out_sampling_rate) * lrelu_upsampling
        self.up_factor = int(np.rint(tmp / in_sampling_rate))
        self.up_taps = filter_size * self.up_factor if self.up_factor > 1 else 1
        self.up_filter = design_lowpass_filter(self.up_taps, in_cutoff, in_half_width * 2, tmp)
        self.down_factor = int(np.rint(tmp / out_sampling_rate))
        self.down_taps = filter_size * self.down_factor if self.down_factor > 1 else 1
        self.down_filter = design_lowpass_filter(self.down_taps, out_cutoff, out_half_width * 2, tmp)
        # TODO(synk): identity-filter path (up/down factor == 1, filter is None) not implemented.
        assert self.up_filter is not None and self.down_filter is not None

        pad_total = (self.out_size - 1) * self.down_factor + 1
        pad_total = pad_total - (self.in_size + conv_kernel - 1) * self.up_factor
        pad_total = pad_total + self.up_taps + self.down_taps - 2
        pad_lo = (pad_total + self.up_factor) // 2
        pad_hi = pad_total - pad_lo
        self.padding = [int(pad_lo[0]), int(pad_hi[0]), int(pad_lo[1]), int(pad_hi[1])]
        # TODO(synk): negative padding (strongly down-sampling layers) not implemented.
        assert min(self.padding) >= 0

        # deterministic parameter init (synthetic; shapes as in the PyTorch module)
        if key is None:
            key = jax.random.PRNGKey(0)
        k1, k2, k3 = jax.random.split(key, 3)
        fan_in = in_channels * conv_kernel * conv_kernel
        self.conv_weight = (jax.random.normal(
            k1, (out_channels, in_channels, conv_kernel, conv_kernel), jnp.float32)
            / np.sqrt(fan_in))
        self.conv_bias = jax.random.normal(k2, (out_channels,), jnp.float32) * 0.1
        self.bias = jax.random.normal(k3, (out_channels,), jnp.float32) * 0.1  # SynthesisLayer.bias
        self.gain = float(np.sqrt(2.0))
        self.slope = 0.2
        # (The magnitude_ema buffer of the PyTorch module is not used in this forward pass.)

        # ---- static geometry; spatial dims rounded up to sublane multiples ---------------------
        K = conv_kernel
        self.Ho = int(self.in_size[1]) + K - 1
        self.Wo = int(self.in_size[0]) + K - 1
        self.Ho_p = _round_up(self.Ho, 8)
        self.Wo_p = _round_up(self.Wo, 8)
        self.Hp0 = self.Ho_p + K - 1          # padded input height fed to the kernel
        self.Wp0 = self.Wo_p + K - 1
        px0, px1, py0, py1 = self.padding

        A_w, B_w, Wu, self.Wout = _upfirdn_matrices(
            self.Wo, self.up_factor, self.down_factor, px0, px1, self.up_filter, self.down_filter)
        A_h, B_h, Hu, self.Hout = _upfirdn_matrices(
            self.Ho, self.up_factor, self.down_factor, py0, py1, self.up_filter, self.down_filter)
        assert self.Wout == int(self.out_size[0]) and self.Hout == int(self.out_size[1])
        self.Wu_p = _round_up(Wu, 8)
        self.Hu_p = _round_up(Hu, 8)
        # Zero COLUMNS of A_* mask the conv's alignment-padding rows/cols (which hold bias-only
        # garbage); zero ROWS of A_* and zero COLUMNS of B_* are inert alignment padding.
        A_w = np.pad(A_w, ((0, self.Wu_p - Wu), (0, self.Wo_p - self.Wo)))
        A_h = np.pad(A_h, ((0, self.Hu_p - Hu), (0, self.Ho_p - self.Ho)))
        B_w = np.pad(B_w, ((0, 0), (0, self.Wu_p - Wu)))
        B_h = np.pad(B_h, ((0, 0), (0, self.Hu_p - Hu)))
        self.A_wT = jnp.asarray(A_w.T, jnp.bfloat16)     # [Wo_p, Wu_p]
        self.A_hT = jnp.asarray(A_h.T, jnp.bfloat16)     # [Ho_p, Hu_p]
        self.B_wT = jnp.asarray(B_w.T, jnp.bfloat16)     # [Wu_p, Wout]
        self.B_hT = jnp.asarray(B_h.T, jnp.bfloat16)     # [Hu_p, Hout]

        # Conv taps packed into the contraction; (conv bias + layer bias) folded in as a trailing
        # column matched by the ones-column appended to the in-kernel slab.
        w_flat = jnp.transpose(self.conv_weight, (0, 2, 3, 1)).reshape(
            out_channels, K * K * in_channels)
        b_col = (self.conv_bias + self.bias).reshape(out_channels, 1)
        self.w_aug = jnp.concatenate([w_flat, b_col], axis=1).astype(jnp.bfloat16)  # [Cout, KK*Cin+1]

        # Output-channel block: prefer a multiple of 8 (<= 32); otherwise take all channels.
        cblk = out_channels
        for d in range(8, min(32, out_channels) + 1, 8):
            if out_channels % d == 0:
                cblk = d
        self.cblk = cblk
        # TODO(synk): production StyleGAN3 shapes additionally need Cin as an "arbitrary"
        # reduction grid axis and H tiling with a (K-1) halo; whole-image blocks suffice here.

    def __call__(self, x):
        x = x.astype(jnp.float32)
        N, C, H, W = x.shape
        K = self.conv_kernel
        Cout = self.out_channels
        assert C == self.in_channels
        assert H == int(self.in_size[1]) and W == int(self.in_size[0])
        Ho_p, Wo_p, Hp0, Wp0 = self.Ho_p, self.Wo_p, self.Hp0, self.Wp0
        Hu_p, Wu_p, Hout, Wout = self.Hu_p, self.Wu_p, self.Hout, self.Wout
        cblk = self.cblk
        KK1 = K * K * C + 1

        # Input prep: pad to full-conv + alignment size, NCHW->NHWC, bf16.  One small XLA pass
        # over the (smallest) tensor; all large intermediates now live inside the fused kernel.
        # TODO(synk): fold this pad/relayout into the kernel as well for very large inputs.
        xp = jnp.pad(x, ((0, 0), (0, 0), (K - 1, Ho_p - H), (K - 1, Wo_p - W)))
        x_nhwc = jnp.transpose(xp, (0, 2, 3, 1)).astype(jnp.bfloat16)   # [N, Hp0, Wp0, Cin]

        kernel = _make_fused_kernel(K, C, cblk, Ho_p, Wo_p, Wu_p, Hu_p, Hout, Wout,
                                    self.gain, self.slope)
        z = pl.pallas_call(
            kernel,
            out_shape=jax.ShapeDtypeStruct((N, Cout, Hout, Wout), jnp.float32),
            grid=(N, Cout // cblk),
            in_specs=[
                pl.BlockSpec((1, Hp0, Wp0, C), lambda n, g: (n, 0, 0, 0)),   # image (reused over g)
                pl.BlockSpec((cblk, KK1), lambda n, g: (g, 0)),              # packed weights+bias
                pl.BlockSpec((Wo_p, Wu_p), lambda n, g: (0, 0)),             # A_w^T
                pl.BlockSpec((Ho_p, Hu_p), lambda n, g: (0, 0)),             # A_h^T
                pl.BlockSpec((Wu_p, Wout), lambda n, g: (0, 0)),             # B_w^T
                pl.BlockSpec((Hu_p, Hout), lambda n, g: (0, 0)),             # B_h^T
            ],
            out_specs=pl.BlockSpec((1, cblk, Hout, Wout), lambda n, g: (n, g, 0, 0)),
            compiler_params=pltpu.CompilerParams(
                dimension_semantics=("parallel", "parallel"),
                vmem_limit_bytes=_vmem_limit_bytes()),
        )(x_nhwc, self.w_aug, self.A_wT, self.A_hT, self.B_wT, self.B_hT)

        assert z.shape == (N, Cout, Hout, Wout)
        return z


# ------------------------------------------------------------------------------------
# Pure-JAX reference (upfirdn2d-style shift-and-add).  Mirrors the bf16 rounding points of the
# Pallas path (conv operands, conv output, FIR taps, inter-stage intermediates) so the comparison
# isolates structural errors from expected bf16-MXU rounding.
# ------------------------------------------------------------------------------------
def reference_forward(layer, x):
    K = layer.conv_kernel
    bf = lambda a: a.astype(jnp.bfloat16).astype(jnp.float32)
    y = lax.conv_general_dilated(
        bf(x), bf(layer.conv_weight), (1, 1),
        [(K - 1, K - 1), (K - 1, K - 1)],
        dimension_numbers=('NCHW', 'OIHW', 'NCHW'))
    y = y + bf(layer.conv_bias + layer.bias)[None, :, None, None]
    y = bf(y)
    up, down = layer.up_factor, layer.down_factor
    N, C, H, W = y.shape
    yz = jnp.zeros((N, C, H, up, W, up), jnp.float32).at[:, :, :, 0, :, 0].set(y)
    yz = yz.reshape(N, C, H * up, W * up)
    px0, px1, py0, py1 = layer.padding
    yz = jnp.pad(yz, ((0, 0), (0, 0), (py0, py1), (px0, px1)))
    fu = bf(jnp.asarray(np.asarray(layer.up_filter[::-1]) * up, jnp.float32))
    fd = bf(jnp.asarray(np.asarray(layer.down_filter[::-1]), jnp.float32))
    Tu, Td = layer.up_taps, layer.down_taps
    Hp, Wp = yz.shape[2], yz.shape[3]
    Wu, Hu = Wp - Tu + 1, Hp - Tu + 1
    a = sum(fu[t] * yz[:, :, :, t:t + Wu] for t in range(Tu))   # up-FIR along W
    a = bf(a)
    a = sum(fu[t] * a[:, :, t:t + Hu, :] for t in range(Tu))    # up-FIR along H
    a = jnp.where(a >= 0, a, layer.slope * a) * layer.gain
    a = bf(a)
    Hd, Wd = Hu - Td + 1, Wu - Td + 1
    c = sum(fd[t] * a[:, :, t:t + Hd, :] for t in range(Td))    # down-FIR along H
    c = bf(c)
    c = sum(fd[t] * c[:, :, :, t:t + Wd] for t in range(Td))    # down-FIR along W
    return c[:, :, ::down, ::down]


if __name__ == "__main__":
    key = jax.random.PRNGKey(0)
    kx, kp = jax.random.split(key)

    N, Cin, Cout, S = 2, 4, 4, 16
    sr = float(S)  # in/out sampling rate
    layer = SynthesisLayerPallas(
        is_critically_sampled=False,
        in_channels=Cin, out_channels=Cout,
        in_size=S, out_size=S,
        in_sampling_rate=sr, out_sampling_rate=sr,
        in_cutoff=sr / 2 - 2.0, out_cutoff=sr / 2 - 2.0,
        in_half_width=2.0, out_half_width=2.0,
        conv_kernel=3, filter_size=6, lrelu_upsampling=2,
        use_radial_filters=False, key=kp)

    x = jax.random.normal(kx, (N, Cin, S, S), jnp.float32)

    out = jax.block_until_ready(layer(x))
    ref = jax.block_until_ready(reference_forward(layer, x))

    assert out.shape == (N, Cout, S, S)
    assert out.dtype == jnp.float32
    # Reference mirrors the bf16 rounding points, so the residual is just MXU accumulation order;
    # structural errors (wrong taps / offsets / masking) would show up as O(1) diffs.
    np.testing.assert_allclose(np.asarray(out), np.asarray(ref), rtol=2e-2, atol=1e-2)

    print("KERNEL_OK")
</pallas_src>

<mosaic_0001>
module attributes {stable_mosaic.version = 11 : i64} {
  func.func @kernel(%arg0: i32, %arg1: i32, %arg2: memref<1x26x26x4xbf16, #tpu.memory_space<vmem>>, %arg3: memref<4x37xbf16, #tpu.memory_space<vmem>>, %arg4: memref<24x48xbf16, #tpu.memory_space<vmem>>, %arg5: memref<24x48xbf16, #tpu.memory_space<vmem>>, %arg6: memref<48x16xbf16, #tpu.memory_space<vmem>>, %arg7: memref<48x16xbf16, #tpu.memory_space<vmem>>, %arg8: memref<1x4x16x16xf32, #tpu.memory_space<vmem>>) attributes {dimension_semantics = [#tpu.dimension_semantics<parallel>, #tpu.dimension_semantics<parallel>], iteration_bounds = array<i64: 2, 1>, scalar_prefetch = 0 : i64, scratch_operands = 0 : i64, tpu.core_type = #tpu.core_type<tc>, window_params = [{transform_indices = @transform_0, window_bounds = array<i64: 1, 26, 26, 4>}, {transform_indices = @transform_1, window_bounds = array<i64: 4, 37>}, {pipeline_mode = #tpu.pipeline_mode<synchronous>, transform_indices = @transform_2, window_bounds = array<i64: 24, 48>}, {pipeline_mode = #tpu.pipeline_mode<synchronous>, transform_indices = @transform_3, window_bounds = array<i64: 24, 48>}, {pipeline_mode = #tpu.pipeline_mode<synchronous>, transform_indices = @transform_4, window_bounds = array<i64: 48, 16>}, {pipeline_mode = #tpu.pipeline_mode<synchronous>, transform_indices = @transform_5, window_bounds = array<i64: 48, 16>}, {transform_indices = @transform_6, window_bounds = array<i64: 1, 4, 16, 16>}]} {
    %c0 = arith.constant 0 : index
    %c0_0 = arith.constant 0 : index
    %c0_1 = arith.constant 0 : index
    %c0_2 = arith.constant 0 : index
    %0 = vector.load %arg2[%c0, %c0_0, %c0_1, %c0_2] : memref<1x26x26x4xbf16, #tpu.memory_space<vmem>>, vector<1x26x26x4xbf16>
    %1 = vector.shape_cast %0 : vector<1x26x26x4xbf16> to vector<26x26x4xbf16>
    %2 = vector.extract_strided_slice %1 {offsets = [0, 0, 0], sizes = [24, 24, 4], strides = [1, 1, 1]} : vector<26x26x4xbf16> to vector<24x24x4xbf16>
    %3 = vector.extract_strided_slice %1 {offsets = [0, 1, 0], sizes = [24, 24, 4], strides = [1, 1, 1]} : vector<26x26x4xbf16> to vector<24x24x4xbf16>
    %4 = vector.extract_strided_slice %1 {offsets = [0, 2, 0], sizes = [24, 24, 4], strides = [1, 1, 1]} : vector<26x26x4xbf16> to vector<24x24x4xbf16>
    %5 = vector.extract_strided_slice %1 {offsets = [1, 0, 0], sizes = [24, 24, 4], strides = [1, 1, 1]} : vector<26x26x4xbf16> to vector<24x24x4xbf16>
    %6 = vector.extract_strided_slice %1 {offsets = [1, 1, 0], sizes = [24, 24, 4], strides = [1, 1, 1]} : vector<26x26x4xbf16> to vector<24x24x4xbf16>
    %7 = vector.extract_strided_slice %1 {offsets = [1, 2, 0], sizes = [24, 24, 4], strides = [1, 1, 1]} : vector<26x26x4xbf16> to vector<24x24x4xbf16>
    %8 = vector.extract_strided_slice %1 {offsets = [2, 0, 0], sizes = [24, 24, 4], strides = [1, 1, 1]} : vector<26x26x4xbf16> to vector<24x24x4xbf16>
    %9 = vector.extract_strided_slice %1 {offsets = [2, 1, 0], sizes = [24, 24, 4], strides = [1, 1, 1]} : vector<26x26x4xbf16> to vector<24x24x4xbf16>
    %10 = vector.extract_strided_slice %1 {offsets = [2, 2, 0], sizes = [24, 24, 4], strides = [1, 1, 1]} : vector<26x26x4xbf16> to vector<24x24x4xbf16>
    %cst = arith.constant 1.000000e+00 : bf16
    %11 = vector.broadcast %cst : bf16 to vector<24x24x1xbf16>
    %12 = tpu.concatenate %2, %3, %4, %5, %6, %7, %8, %9, %10, %11 in 2 : vector<24x24x4xbf16>, vector<24x24x4xbf16>, vector<24x24x4xbf16>, vector<24x24x4xbf16>, vector<24x24x4xbf16>, vector<24x24x4xbf16>, vector<24x24x4xbf16>, vector<24x24x4xbf16>, vector<24x24x4xbf16>, vector<24x24x1xbf16> -> vector<24x24x37xbf16>
    %13 = vector.shape_cast %12 : vector<24x24x37xbf16> to vector<576x37xbf16>
    %c0_3 = arith.constant 0 : index
    %c0_4 = arith.constant 0 : index
    %14 = vector.load %arg3[%c0_3, %c0_4] : memref<4x37xbf16, #tpu.memory_space<vmem>>, vector<4x37xbf16>
    %cst_5 = arith.constant dense<0.000000e+00> : vector<576x4xf32>
    %15 = tpu.matmul %13, %14, %cst_5 {dimension_numbers = #tpu.dot_dimension_numbers<[1], [1], [0], [0], [0, 0, 1, 0], [], []>} : vector<576x37xbf16>, vector<4x37xbf16>, vector<576x4xf32> -> vector<576x4xf32>
    %16 = vector.shape_cast %15 : vector<576x4xf32> to vector<24x24x4xf32>
    %17 = tpu.transpose %16, [0, 2, 1] : vector<24x24x4xf32> -> vector<24x4x24xf32>
    %18 = tpu.transpose %17, [1, 0, 2] : vector<24x4x24xf32> -> vector<4x24x24xf32>
    %19 = vector.shape_cast %18 : vector<4x24x24xf32> to vector<96x24xf32>
    %20 = arith.truncf %19 : vector<96x24xf32> to vector<96x24xbf16>
    %c0_6 = arith.constant 0 : index
    %c0_7 = arith.constant 0 : index
    %21 = vector.load %arg4[%c0_6, %c0_7] : memref<24x48xbf16, #tpu.memory_space<vmem>>, vector<24x48xbf16>
    %cst_8 = arith.constant dense<0.000000e+00> : vector<96x48xf32>
    %22 = tpu.matmul %20, %21, %cst_8 {dimension_numbers = #tpu.dot_dimension_numbers<[1], [0], [0], [1], [0, 0, 1, 1], [], []>} : vector<96x24xbf16>, vector<24x48xbf16>, vector<96x48xf32> -> vector<96x48xf32>
    %23 = vector.shape_cast %22 : vector<96x48xf32> to vector<4x24x48xf32>
    %24 = tpu.transpose %23, [0, 2, 1] : vector<4x24x48xf32> -> vector<4x48x24xf32>
    %25 = vector.shape_cast %24 : vector<4x48x24xf32> to vector<192x24xf32>
    %26 = arith.truncf %25 : vector<192x24xf32> to vector<192x24xbf16>
    %c0_9 = arith.constant 0 : index
    %c0_10 = arith.constant 0 : index
    %27 = vector.load %arg5[%c0_9, %c0_10] : memref<24x48xbf16, #tpu.memory_space<vmem>>, vector<24x48xbf16>
    %cst_11 = arith.constant dense<0.000000e+00> : vector<192x48xf32>
    %28 = tpu.matmul %26, %27, %cst_11 {dimension_numbers = #tpu.dot_dimension_numbers<[1], [0], [0], [1], [0, 0, 1, 1], [], []>} : vector<192x24xbf16>, vector<24x48xbf16>, vector<192x48xf32> -> vector<192x48xf32>
    %cst_12 = arith.constant 0.000000e+00 : f32
    %29 = vector.broadcast %cst_12 : f32 to vector<192x48xf32>
    %30 = arith.cmpf oge, %28, %29 : vector<192x48xf32>
    %cst_13 = arith.constant 2.000000e-01 : f32
    %31 = vector.broadcast %cst_13 : f32 to vector<192x48xf32>
    %32 = arith.mulf %31, %28 : vector<192x48xf32>
    %33 = arith.select %30, %28, %32 : vector<192x48xi1>, vector<192x48xf32>
    %cst_14 = arith.constant 1.41421354 : f32
    %34 = vector.broadcast %cst_14 : f32 to vector<192x48xf32>
    %35 = arith.mulf %33, %34 : vector<192x48xf32>
    %36 = arith.truncf %35 : vector<192x48xf32> to vector<192x48xbf16>
    %c0_15 = arith.constant 0 : index
    %c0_16 = arith.constant 0 : index
    %37 = vector.load %arg7[%c0_15, %c0_16] : memref<48x16xbf16, #tpu.memory_space<vmem>>, vector<48x16xbf16>
    %cst_17 = arith.constant dense<0.000000e+00> : vector<192x16xf32>
    %38 = tpu.matmul %36, %37, %cst_17 {dimension_numbers = #tpu.dot_dimension_numbers<[1], [0], [0], [1], [0, 0, 1, 1], [], []>} : vector<192x48xbf16>, vector<48x16xbf16>, vector<192x16xf32> -> vector<192x16xf32>
    %39 = vector.shape_cast %38 : vector<192x16xf32> to vector<4x48x16xf32>
    %40 = tpu.transpose %39, [0, 2, 1] : vector<4x48x16xf32> -> vector<4x16x48xf32>
    %41 = vector.shape_cast %40 : vector<4x16x48xf32> to vector<64x48xf32>
    %42 = arith.truncf %41 : vector<64x48xf32> to vector<64x48xbf16>
    %c0_18 = arith.constant 0 : index
    %c0_19 = arith.constant 0 : index
    %43 = vector.load %arg6[%c0_18, %c0_19] : memref<48x16xbf16, #tpu.memory_space<vmem>>, vector<48x16xbf16>
    %cst_20 = arith.constant dense<0.000000e+00> : vector<64x16xf32>
    %44 = tpu.matmul %42, %43, %cst_20 {dimension_numbers = #tpu.dot_dimension_numbers<[1], [0], [0], [1], [0, 0, 1, 1], [], []>} : vector<64x48xbf16>, vector<48x16xbf16>, vector<64x16xf32> -> vector<64x16xf32>
    %45 = vector.shape_cast %44 : vector<64x16xf32> to vector<4x16x16xf32>
    %c0_21 = arith.constant 0 : index
    %c0_22 = arith.constant 0 : index
    %c0_23 = arith.constant 0 : index
    %c0_24 = arith.constant 0 : index
    %46 = vector.load %arg8[%c0_21, %c0_22, %c0_23, %c0_24] : memref<1x4x16x16xf32, #tpu.memory_space<vmem>>, vector<1x4x16x16xf32>
    %47 = vector.shape_cast %46 : vector<1x4x16x16xf32> to vector<4x16x16xf32>
    %48 = vector.shape_cast %45 : vector<4x16x16xf32> to vector<1x4x16x16xf32>
    tpu.vector_store %arg8[%c0_21, %c0_22, %c0_23, %c0_24], %48 {strides = array<i32>} : memref<1x4x16x16xf32, #tpu.memory_space<vmem>>, vector<1x4x16x16xf32>,
    return
  }
  func.func @transform_0(%arg0: i32, %arg1: i32) -> (i32, i32, i32, i32) {
    %c0_i32 = arith.constant 0 : i32
    %c0_i32_0 = arith.constant 0 : i32
    %c0_i32_1 = arith.constant 0 : i32
    %c0_i32_2 = arith.constant 0 : i32
    return %arg0, %c0_i32, %c0_i32_0, %c0_i32_1 : i32, i32, i32, i32
  }
  func.func @transform_1(%arg0: i32, %arg1: i32) -> (i32, i32) {
    %c0_i32 = arith.constant 0 : i32
    %c0_i32_0 = arith.constant 0 : i32
    return %arg1, %c0_i32 : i32, i32
  }
  func.func @transform_2(%arg0: i32, %arg1: i32) -> (i32, i32) {
    %c0_i32 = arith.constant 0 : i32
    %c0_i32_0 = arith.constant 0 : i32
    %c0_i32_1 = arith.constant 0 : i32
    return %c0_i32, %c0_i32_0 : i32, i32
  }
  func.func @transform_3(%arg0: i32, %arg1: i32) -> (i32, i32) {
    %c0_i32 = arith.constant 0 : i32
    %c0_i32_0 = arith.constant 0 : i32
    %c0_i32_1 = arith.constant 0 : i32
    return %c0_i32, %c0_i32_0 : i32, i32
  }
  func.func @transform_4(%arg0: i32, %arg1: i32) -> (i32, i32) {
    %c0_i32 = arith.constant 0 : i32
    %c0_i32_0 = arith.constant 0 : i32
    %c0_i32_1 = arith.constant 0 : i32
    return %c0_i32, %c0_i32_0 : i32, i32
  }
  func.func @transform_5(%arg0: i32, %arg1: i32) -> (i32, i32) {
    %c0_i32 = arith.constant 0 : i32
    %c0_i32_0 = arith.constant 0 : i32
    %c0_i32_1 = arith.constant 0 : i32
    return %c0_i32, %c0_i32_0 : i32, i32
  }
  func.func @transform_6(%arg0: i32, %arg1: i32) -> (i32, i32, i32, i32) {
    %c0_i32 = arith.constant 0 : i32
    %c0_i32_0 = arith.constant 0 : i32
    %c0_i32_1 = arith.constant 0 : i32
    return %arg0, %arg1, %c0_i32, %c0_i32_0 : i32, i32, i32, i32
  }
}

</mosaic_0001>

<bundles_post_ra>
// kernel: tpu_custom_call.1
= control target key start
LH: loop header
LB: loop body
LE: loop exit
PB: predicated region body
PF: predicated region fallthrough
CT: control target
= control target key end

     0   :  { %11 = vsyncpa [#allocation3], 0  ;;  %s8633_s0 = inlined_call_operand.vmem [shape: bf16[2,26,26,4], index: 0, kind: input, shape index: {}]   ;;  %s8634_s1 = inlined_call_operand.vmem [shape: bf16[4,37], index: 1, kind: input, shape index: {}]   ;;  %s8635_s2 = inlined_call_operand.vmem [shape: bf16[24,48], index: 2, kind: input, shape index: {}]   ;;  %s8636_s3 = inlined_call_operand.vmem [shape: bf16[24,48], index: 3, kind: input, shape index: {}]   ;;  %s8637_s4 = inlined_call_operand.vmem [shape: bf16[48,16], index: 4, kind: input, shape index: {}]   ;;  %s8638_s5 = inlined_call_operand.vmem [shape: bf16[48,16], index: 5, kind: input, shape index: {}]   ;;  %s8639_s6 = inlined_call_operand.hbm [shape: f32[2,4,16,16], index: 6, kind: output, shape index: {}]  }
   0x1   :  { %13 = vsyncpa [#allocation3 + $0x1], 0  ;;  %s6166_s21 = smov 0   ;;  %s6168_s22 = smov 0  }
   0x2   :  { %s6170_s23 = smov 0   ;;  %s6172_s24 = smov 0  }
   0x3   :  { %s6174_s25 = smov 0   ;;  %s6176_s26 = smov 0  }
   0x4 LB: > { %s5409_s27 = sadd.s32 4294967295, %s6117_s26   ;;  %s5410_s28 = sadd.s32 4294967294, %s6117_s26   ;;  %s6117_s26 = sphi %s6176_s26, %s19_s26   ;;  %s6113_s25 = sphi %s6174_s25, %s8682_s25   ;;  %s6109_s24 = sphi %s6172_s24, %s8681_s24   ;;  %s6105_s23 = sphi %s6170_s23, %s8680_s23   ;;  %s6101_s22 = sphi %s6168_s22, %s8679_s22   ;;  %s6097_s21 = sphi %s6166_s21, %s8678_s21  }
   0x5   : > { %s31_s29 = sadd.s32 1, %s6113_s25  ;;  %s176_s30 = sadd.s32 1, %s6105_s23 }
   0x6   : > { %p33_p0 = scmp.ge.s32.totalorder %s31_s29, 2  ;;  %p186_p1 = scmp.ne.s32.totalorder %s6105_s23, %s6101_s22 }
   0x7   : > { %p187_p2 = scmp.eq.s32.totalorder %s5409_s27, 1  ;;  %p192_p3 = scmp.ne.s32.totalorder %s6101_s22, %s6097_s21 }
   0x8   : > { %s8684_s29 = smov (%p33_p0, %s31_s29), 0  ;;  %p193_p5 = scmp.eq.s32.totalorder %s5410_s28, 1 }
   0x9   : > { %p6206_p4 = por %p187_p2, %p186_p1  ;;  %s171_s8 = ssub.s32 %s6113_s25, %s8684_s29 }
   0xa   : > { %p5414_p6 = scmp.ge.s32.totalorder %s6117_s26, 1  ;;  %p174_p7 = scmp.eq.s32.totalorder %s171_s8, 0 }
   0xb   : > { %p6213_p8 = por %p193_p5, %p192_p3  ;;  %p238_p9 = scmp.lt.s32.totalorder %s6117_s26, 3 }
   0xc   : > { %s6219_s10 = scalar_select %p174_p7, %s6105_s23, %s176_s30  }
   0xd   : > { %p239_p10 = pnand %p5414_p6, %p238_p9 }
   0xf   : > { %242 = sbr.rel (%p239_p10) target bundleno = 2468 (0x9a4), region = 44 }
  0x16   : > { %p272_p11 = scmp.lt.s32.totalorder %s6109_s24, 1  ;;  %s6119_s16 = smov 12   ;;  %vm1109_vm0 = vcmask 1046528   ;;  %vm652_vm1 = vsmask.f32 7424  ;;  %vm2919_vm2 = vcmask 302080  }
  0x17   : > { %s6120_s17 = smov 8   ;;  %s6121_s18 = smov 4   ;;  %v2882_v57 = vld [vmem:[%s8634_s1] sm:$0x3]  ;;  %vm1912_vm3 = vcmask 31744   ;;  %vm2033_vm4 = vcmask 64512  }
  0x18   : > { %s273_s11 = scalar_select %p272_p11, %s6109_s24, 1  ;;  %5836 = vmatprep.subr.msk.bf16.mxu0 %vm2919_vm2, %v2882_v57  ;;  %v3029_v60 = vsel %vm2919_vm2, %v2882_v57, 0  ;;  %vm2130_vm5 = vcmask 97280   ;;  %vm2227_vm6 = vcmask 130048   ;;  %vm2324_vm7 = vcmask 162816  }
  0x19   : > { %s6122_s19 = smov 16   ;;  %s6123_s20 = smov 20   ;;  %5675 = vmatpush3.bf16.xpose.msra.mxu0 %v3029_v60  ;;  %vm2421_vm8 = vcmask 195584   ;;  %vm2518_vm9 = vcmask 228352   ;;  %vm2615_vm10 = vcmask 261120   ;;  %vm2712_vm11 = vcmask 293888  }
  0x1a   : > { %s5839_s12 = smul.u32 416, %s273_s11  ;;  %s6124_s27 = smov 24   ;;  %vm4360_vm12 = vcmask 1043456  }
  0x1b   : > { %s6125_s8 = smov 28   ;;  %s6126_s11 = smov 32  }
  0x1c   : > { %s6226_s15 = scalar_lea.vmem %s8633_s0, %s5839_s12  ;;  %s5592_s30 = sshll.u32 %s6109_s24, 10 }
  0x1d   : > { %v6229_v0 = vld [vmem:[%s6226_s15 + $0x20] sm:$0xff]   ;;  %v290_v1 = vld [vmem:[%s6226_s15 + $0x18] sm:$0xf]  ;;  %v291_v2 = vld [vmem:[%s6226_s15 + $0x1c] sm:$0x1]  ;;  %s8579_s13 = scalar_lea.hbm %s8639_s6, %s5592_s30 }
  0x1e   : > { %1290 = vrot.lane.b32.xlu1 %v6229_v0, %s6119_s16  ;;  %v6235_v3 = vcombine.low %v290_v1, %v290_v1  ;;  %v5466_v4 = vcombine.low %v290_v1, %v291_v2  ;;  %v6238_v5 = vld [vmem:[%s6226_s15 + $0x10] sm:$0xff]   ;;  %v6241_v6 = vld [vmem:[%s6226_s15 + $0x8] sm:$0xf]  ;;  %v287_v7 = vld [vmem:[%s6226_s15 + $0xc] sm:$0x1]  ;;  %v686_v22 = vshll.u32 %v6229_v0, 16 }
  0x1f   : > { %v5465_v8 = vcombine.low %v6241_v6, %v287_v7  ;;  %v1113_v9 = vrot.slane %v6238_v5, 1  ;;  %v6251_v11 = vld [vmem:[%s6226_s15] sm:$0xff]   ;;  %v671_v13 = vshll.u32 %v6238_v5, 16  ;;  %v294_v14 = vld [vmem:[%s6226_s15 + $0x28] sm:$0xf]  ;;  %v669_v21 = vshrl.u32 %v6238_v5, 16 }
  0x20   : > { %1288 = vrot.lane.b32.xlu0 %v6235_v3, %s6119_s16  ;;  %v6248_v10 = vrot.slane %v5466_v4, 1  ;;  %v676_v12 = vshll.u32 %v5466_v4, 16  ;;  %v295_v15 = vld [vmem:[%s6226_s15 + $0x2c] sm:$0x1]  ;;  %v1110_v17 = vrot.slane %v6251_v11, 1  ;;  %v680_v20 = vshrl.u32 %v5466_v4, 16 }
  0x21   : > { %v1111_v16 = vrot.slane %v5465_v8, 1  ;;  %v661_v18 = vshll.u32 %v5465_v8, 16  ;;  %v665_v24 = vshrl.u32 %v5465_v8, 16  ;;  %v656_v26 = vshll.u32 %v6251_v11, 16  ;;  %v6281_v46 = vld [vmem:[%s6226_s15 + $0x30] sm:$0xff]  }
  0x22   : > { %v1115_v19 = vsel %vm1109_vm0, %v1113_v9, %v6248_v10  ;;  %v678_v25 = vrot.slane %v676_v12, 1  ;;  %v673_v28 = vrot.slane %v671_v13, 1  ;;  %v654_v29 = vshrl.u32 %v6251_v11, 16  ;;  %v298_v48 = vld [vmem:[%s6226_s15 + $0x38] sm:$0xf]  ;;  %v6340_v9 = vld [vmem:[%s6226_s15 + $0x40] sm:$0xff]  }
  0x23   : > { %1184 = vrot.lane.b32.xlu1 %v1111_v16, %s6120_s17  ;;  %v663_v23 = vrot.slane %v661_v18, 1  ;;  %v1112_v27 = vsel %vm1109_vm0, %v1110_v17, %v1111_v16  ;;  %v5467_v30 = vcombine.low %v294_v14, %v295_v15  ;;  %v658_v31 = vrot.slane %v656_v26, 1  ;;  %v299_v49 = vld [vmem:[%s6226_s15 + $0x3c] sm:$0x1]  ;;  %v303_v12 = vld [vmem:[%s6226_s15 + $0x4c] sm:$0x1] }
  0x24   : > { %1286 = vrot.lane.b32.xlu0 %v6238_v5, %s6119_s16  ;;  %v682_v33 = vor.u32 %v680_v20, %v678_v25  ;;  %v684_v34 = vshrl.u32 %v6229_v0, 16  ;;  %v674_v35 = vor.u32 %v673_v28, %v669_v21  ;;  %v688_v37 = vrot.slane %v686_v22, 1  ;;  %v307_v28 = vld [vmem:[%s6226_s15 + $0x5c] sm:$0x1]  ;;  %v311_v57 = vld [vmem:[%s6226_s15 + $0x6c] sm:$0x1] }
  0x25   : > { %v667_v32 = vor.u32 %v665_v24, %v663_v23  ;;  %v659_v36 = vor.u32 %v658_v31, %v654_v29  ;;  %v691_v38 = vshll.u32 %v5467_v30, 16  ;;  %v1116_v44 = vrot.slane %v6229_v0, 1  ;;  %v6371_v29 = vld [vmem:[%s6226_s15 + $0x50] sm:$0xff]  }
  0x26   : > { %v679_v39 = vsel %vm652_vm1, %v674_v35, %v678_v25  ;;  %v689_v41 = vor.u32 %v688_v37, %v684_v34  ;;  %v6278_v45 = vrot.slane %v5467_v30, 1  ;;  %v5468_v50 = vcombine.low %v298_v48, %v299_v49 }
  0x27   : > { %1182 = vrot.lane.b32.xlu1 %v1112_v27, %s6120_s17  ;;  %v664_v40 = vsel %vm652_vm1, %v659_v36, %v663_v23  ;;  %v693_v42 = vrot.slane %v691_v38, 1  ;;  %v699_v51 = vshrl.u32 %v6281_v46, 16  ;;  %v701_v52 = vshll.u32 %v6281_v46, 16  ;;  %v306_v27 = vld [vmem:[%s6226_s15 + $0x58] sm:$0xf] }
  0x28   : > { %1186 = vrot.lane.b32.xlu0 %v1115_v19, %s6120_s17  ;;  %v1118_v47 = vsel %vm1109_vm0, %v1116_v44, %v6278_v45  ;;  %v6296_v53 = vcombine.low %v294_v14, %v294_v14  ;;  %v706_v55 = vshll.u32 %v5468_v50, 16  ;;  %v695_v56 = vshrl.u32 %v5467_v30, 16 }
  0x29   : > { %v694_v43 = vsel %vm652_vm1, %v689_v41, %v693_v42  ;;  %v703_v54 = vrot.slane %v701_v52, 1  ;;  %v1119_v63 = vrot.slane %v6281_v46, 1  ;;  %v1120_v1 = vrot.slane %v5468_v50, 1 }
  0x2a   : > { %v708_v59 = vrot.slane %v706_v55, 1  ;;  %v697_v61 = vor.u32 %v695_v56, %v693_v42  ;;  %v6327_v4 = vcombine.low %v298_v48, %v298_v48  ;;  %v710_v7 = vshrl.u32 %v5468_v50, 16  ;;  %v310_v56 = vld [vmem:[%s6226_s15 + $0x68] sm:$0xf] }
  0x2b   : > { %1402 = vrot.lane.b32.xlu1 %v682_v33, %s6122_s19  ;;  %v704_v58 = vor.u32 %v703_v54, %v699_v51  ;;  %v1121_v2 = vsel %vm1109_vm0, %v1119_v63, %v1120_v1  ;;  %v716_v14 = vshll.u32 %v6340_v9, 16  ;;  %v714_v15 = vshrl.u32 %v6340_v9, 16 }
  0x2c   : > { %1015 = vrot.lane.b32.xlu0 %v667_v32, %s6121_s18  ;;  %v712_v8 = vor.u32 %v710_v7, %v708_v59  ;;  %v1122_v24 = vrot.slane %v6340_v9, 1  ;;  %v5470_v30 = vcombine.low %v306_v27, %v307_v28  ;;  %v731_v31 = vshll.u32 %v6371_v29, 16  ;;  %v315_v28 = vld [vmem:[%s6226_s15 + $0x7c] sm:$0x1] }
  0x2d   : > { %v709_v62 = vsel %vm652_vm1, %v704_v58, %v708_v59  ;;  %v718_v16 = vrot.slane %v716_v14, 1  ;;  %v6382_v35 = vcombine.low %v306_v27, %v306_v27  ;;  %v1125_v42 = vrot.slane %v6371_v29, 1  ;;  %v6422_v58 = vld [vmem:[%s6226_s15 + $0x60] sm:$0xff]   ;;  %v6476_v27 = vld [vmem:[%s6226_s15 + $0x78] sm:$0xf] }
  0x2e   : > { %v736_v32 = vshll.u32 %v5470_v30, 16  ;;  %v733_v34 = vrot.slane %v731_v31, 1  ;;  %v740_v37 = vshrl.u32 %v5470_v30, 16  ;;  %v6426_v59 = vcombine.low %v310_v56, %v311_v57 }
  0x2f   : > { %1013 = vrot.lane.b32.xlu1 %v664_v40, %s6121_s18  ;;  %v746_v60 = vshll.u32 %v6422_v58, 16  ;;  %v744_v63 = vshrl.u32 %v6422_v58, 16 }
  0x30   : > { %1017 = vrot.lane.b32.xlu0 %v679_v39, %s6121_s18  ;;  %v738_v36 = vrot.slane %v736_v32, 1  ;;  %v6486_v32 = vcombine.low %v6476_v27, %v315_v28 }
  0x32   : > { %v6390_v40 = vor.u32 %v740_v37, %v738_v36  ;;  %v6550_v28 = vrot.slane %v6486_v32, 1 }
  0x33   : > { %1400 = vrot.lane.b32.xlu1 %v679_v39, %s6122_s19 }
  0x34   : > { %1404 = vrot.lane.b32.xlu0 %v694_v43, %s6122_s19 }
  0x37   : > { %1503 = vrot.lane.b32.xlu1 %v1118_v47, %s6123_s20 }
  0x38   : > { %1501 = vrot.lane.b32.xlu0 %v6248_v10, %s6123_s20 }
  0x3b   : > { %1499 = vrot.lane.b32.xlu1 %v1115_v19, %s6123_s20  ;;  %v719_v19 = vor.u32 %v718_v16, %v714_v15  ;;  %v1128_v16 = vrot.slane %v6422_v58, 1 }
  0x3c   : > { %1019 = vrot.lane.b32.xlu0 %v682_v33, %s6121_s18  ;;  %v729_v33 = vshrl.u32 %v6371_v29, 16 }
  0x3e   : > { %v734_v38 = vor.u32 %v733_v34, %v729_v33 }
  0x3f   : > { %1607 = vrot.lane.b32.xlu1 %v6281_v46, %s6124_s27 }
  0x40   : > { %1605 = vrot.lane.b32.xlu0 %v6296_v53, %s6124_s27  ;;  %v739_v41 = vsel %vm652_vm1, %v734_v38, %v738_v36 }
  0x43   : > { %1603 = vrot.lane.b32.xlu1 %v6229_v0, %s6124_s27 }
  0x44   : > { %1188 = vrot.lane.b32.xlu0 %v6248_v10, %s6120_s17  ;;  %v302_v10 = vld [vmem:[%s6226_s15 + $0x48] sm:$0xf] }
  0x45   : > { %v5469_v13 = vcombine.low %v302_v10, %v303_v12  ;;  %v6354_v18 = vcombine.low %v302_v10, %v302_v10 }
  0x47   : > { %1721 = vrot.lane.b32.xlu1 %v709_v62, %s6125_s8  ;;  %v721_v17 = vshll.u32 %v5469_v13, 16  ;;  %v725_v21 = vshrl.u32 %v5469_v13, 16  ;;  %v1123_v25 = vrot.slane %v5469_v13, 1 }
  0x48   : > { %1719 = vrot.lane.b32.xlu0 %v697_v61, %s6125_s8 }
  0x49   : > { %v723_v20 = vrot.slane %v721_v17, 1  ;;  %v1124_v26 = vsel %vm1109_vm0, %v1122_v24, %v1123_v25  ;;  %v6456_v17 = vrot.slane %v6426_v59, 1 }
  0x4b   : > { %1717 = vrot.lane.b32.xlu1 %v694_v43, %s6125_s8  ;;  %v724_v22 = vsel %vm652_vm1, %v719_v19, %v723_v20  ;;  %v727_v23 = vor.u32 %v725_v21, %v723_v20  ;;  %v5418_v19 = vcombine.low %v6241_v6, %v6241_v6 }
  0x4c   : > { %1292 = vrot.lane.b32.xlu0 %v6296_v53, %s6119_s16 }
  0x4f   : > { %1820 = vrot.lane.b32.xlu1 %v1121_v2, %s6126_s11 }
  0x50   : > { %1818 = vrot.lane.b32.xlu0 %v6278_v45, %s6126_s11 }
  0x53   : > { %1816 = vrot.lane.b32.xlu1 %v1118_v47, %s6126_s11 }
  0x54   : > { %1406 = vrot.lane.b32.xlu0 %v697_v61, %s6122_s19 }
  0x57   : > { %1021 = vrot.lane.b32.xlu1 %v694_v43, %s6121_s18  ;;  %v6394_v43 = vrot.slane %v5470_v30, 1 }
  0x58   : > { %1505 = vrot.lane.b32.xlu0 %v6278_v45, %s6123_s20 }
  0x5b   : > { %1190 = vrot.lane.b32.xlu1 %v1118_v47, %s6120_s17 }
  0x5c   : > { %1609 = vrot.lane.b32.xlu0 %v6327_v4, %s6124_s27 }
  0x5f   : > { %1294 = vrot.lane.b32.xlu1 %v6281_v46, %s6119_s16 }
  0x60   : > { %1723 = vrot.lane.b32.xlu0 %v712_v8, %s6125_s8 }
  0x63   : > { %1408 = vrot.lane.b32.xlu1 %v709_v62, %s6122_s19 }
  0x64   : > { %1822 = vrot.lane.b32.xlu0 %v1120_v1, %s6126_s11 }
  0x67   : > { %1027 = vrot.lane.b32.xlu1 %v712_v8, %s6121_s18 }
  0x68   : > { %1025 = vrot.lane.b32.xlu0 %v709_v62, %s6121_s18 }
  0x6b   : > { %1023 = vrot.lane.b32.xlu1 %v697_v61, %s6121_s18 }
  0x6c   : > { %1507 = vrot.lane.b32.xlu0 %v1121_v2, %s6123_s20 }
  0x6f   : > { %1196 = vrot.lane.b32.xlu1 %v1120_v1, %s6120_s17 }
  0x70   : > { %1194 = vrot.lane.b32.xlu0 %v1121_v2, %s6120_s17  ;;  %v751_v2 = vshll.u32 %v6426_v59, 16 }
  0x72   : > { %v6440_v12 = vrot.slane %v751_v2, 1 }
  0x73   : > { %1192 = vrot.lane.b32.xlu1 %v6278_v45, %s6120_s17  ;;  %v6403_v45 = vsel %vm1109_vm0, %v1125_v42, %v6394_v43 }
  0x74   : > { %1611 = vrot.lane.b32.xlu0 %v6340_v9, %s6124_s27 }
  0x77   : > { %1300 = vrot.lane.b32.xlu1 %v6354_v18, %s6119_s16 }
  0x78   : > { %1298 = vrot.lane.b32.xlu0 %v6340_v9, %s6119_s16 }
  0x7b   : > { %1296 = vrot.lane.b32.xlu1 %v6327_v4, %s6119_s16 }
  0x7c   : > { %1725 = vrot.lane.b32.xlu0 %v724_v22, %s6125_s8 }
  0x7f   : > { %1414 = vrot.lane.b32.xlu1 %v727_v23, %s6122_s19 }
  0x80   : > { %1412 = vrot.lane.b32.xlu0 %v724_v22, %s6122_s19 }
  0x83   : > { %1410 = vrot.lane.b32.xlu1 %v712_v8, %s6122_s19 }
  0x84   : > { %1824 = vrot.lane.b32.xlu0 %v1124_v26, %s6126_s11 }
  0x87   : > { %1513 = vrot.lane.b32.xlu1 %v1123_v25, %s6123_s20 }
  0x88   : > { %1511 = vrot.lane.b32.xlu0 %v1124_v26, %s6123_s20 }
  0x8b   : > { %1615 = vrot.lane.b32.xlu1 %v6371_v29, %s6124_s27 }
  0x8c   : > { %1509 = vrot.lane.b32.xlu0 %v1120_v1, %s6123_s20  ;;  %v748_v1 = vrot.slane %v746_v60, 1 }
  0x8e   : > { %v749_v10 = vor.u32 %v748_v1, %v744_v63 }
  0x8f   : > { %1613 = vrot.lane.b32.xlu1 %v6354_v18, %s6124_s27 }
  0x90   : > { %1617 = vrot.lane.b32.xlu0 %v6382_v35, %s6124_s27  ;;  %v6388_v39 = vpop.permute.xlu1 %1290  ;;  %v6452_v15 = vsel %vm652_vm1, %v749_v10, %v6440_v12 }
  0x92   : > { %v6396_v44 = vpop.permute.xlu0 %1288 }
  0x93   : > { %1731 = vrot.lane.b32.xlu1 %v6390_v40, %s6125_s8 }
  0x94   : > { %1729 = vrot.lane.b32.xlu0 %v739_v41, %s6125_s8 }
  0x95   : > { %v1185_v48 = vpop.permute.xlu1 %1184 }
  0x96   : > { %v6405_v47 = vpop.permute.xlu0 %1286 }
  0x97   : > { %1828 = vrot.lane.b32.xlu1 %v6403_v45, %s6126_s11 }
  0x98   : > { %1727 = vrot.lane.b32.xlu0 %v727_v23, %s6125_s8 }
  0x99   : > { %v6410_v50 = vpop.permute.xlu1 %1182 }
  0x9a   : > { %v1187_v49 = vpop.permute.xlu0 %1186 }
  0x9b   : > { %1826 = vrot.lane.b32.xlu1 %v1123_v25, %s6126_s11 }
  0x9c   : > { %1830 = vrot.lane.b32.xlu0 %v6394_v43, %s6126_s11 }
  0x9d   : > { %v6415_v52 = vpop.permute.xlu1 %1402 }
  0x9e   : > { %v1016_v51 = vpop.permute.xlu0 %1015 }
  0x9f   : > { %1033 = vrot.lane.b32.xlu1 %v739_v41, %s6121_s18  ;;  %v1917_v24 = vsel %vm1912_vm3, %v5418_v19, %v1016_v51 }
  0xa0   : > { %1031 = vrot.lane.b32.xlu0 %v727_v23, %s6121_s18  ;;  %v6468_v23 = vld [vmem:[%s6226_s15 + $0x70] sm:$0xff]   ;;  %v2037_v30 = vsel %vm2033_vm4, %v1917_v24, %v1185_v48 }
  0xa1   : > { %v1014_v55 = vpop.permute.xlu1 %1013  ;;  %v2134_v37 = vsel %vm2130_vm5, %v2037_v30, %v6396_v44  ;;  %v759_v42 = vshrl.u32 %v6468_v23, 16  ;;  %v766_v44 = vshll.u32 %v6486_v32, 16 }
  0xa2   : > { %v1018_v54 = vpop.permute.xlu0 %1017  ;;  %v1914_v33 = vsel %vm1912_vm3, %v6251_v11, %v1014_v55  ;;  %v2231_v51 = vsel %vm2227_vm6, %v2134_v37, %v6415_v52  ;;  %v755_v55 = vshrl.u32 %v6426_v59, 16 }
  0xa3   : > { %1200 = vrot.lane.b32.xlu1 %v1123_v25, %s6120_s17  ;;  %v1919_v6 = vsel %vm1912_vm3, %v6238_v5, %v1018_v54  ;;  %v761_v5 = vshll.u32 %v6468_v23, 16  ;;  %v2035_v11 = vsel %vm2033_vm4, %v1914_v33, %v6410_v50  ;;  %v6519_v60 = vrot.slane %v766_v44, 1 }
  0xa4   : > { %1029 = vrot.lane.b32.xlu0 %v724_v22, %s6121_s18  ;;  %v6465_v22 = vsel %vm1109_vm0, %v1128_v16, %v6456_v17  ;;  %v2039_v31 = vsel %vm2033_vm4, %v1919_v6, %v1187_v49  ;;  %v6534_v10 = vor.u32 %v755_v55, %v6440_v12 }
  0xa5   : > { %v6429_v62 = vpop.permute.xlu1 %1400  ;;  %v2136_v38 = vsel %vm2130_vm5, %v2039_v31, %v6388_v39  ;;  %v763_v48 = vrot.slane %v761_v5, 1 }
  0xa6   : > { %v1405_v61 = vpop.permute.xlu0 %1404 }
  0xa7   : > { %1198 = vrot.lane.b32.xlu1 %v1124_v26, %s6120_s17  ;;  %v764_v57 = vor.u32 %v763_v48, %v759_v42 }
  0xa8   : > { %1202 = vrot.lane.b32.xlu0 %v6403_v45, %s6120_s17 }
  0xa9   : > { %v1504_v8 = vpop.permute.xlu1 %1503 }
  0xaa   : > { %v1502_v7 = vpop.permute.xlu0 %1501 }
  0xab   : > { %1306 = vrot.lane.b32.xlu1 %v6422_v58, %s6119_s16  ;;  %v2328_v50 = vsel %vm2324_vm7, %v2231_v51, %v1502_v7 }
  0xac   : > { %1304 = vrot.lane.b32.xlu0 %v6382_v35, %s6119_s16 }
  0xad   : > { %v6444_v14 = vpop.permute.xlu1 %1499 }
  0xae   : > { %v6442_v13 = vpop.permute.xlu0 %1019 }
  0xaf   : > { %1418 = vrot.lane.b32.xlu1 %v6390_v40, %s6122_s19 }
  0xb0   : > { %1302 = vrot.lane.b32.xlu0 %v6371_v29, %s6119_s16 }
  0xb1   : > { %v1608_v21 = vpop.permute.xlu1 %1607 }
  0xb2   : > { %v1606_v20 = vpop.permute.xlu0 %1605 }
  0xb3   : > { %1416 = vrot.lane.b32.xlu1 %v739_v41, %s6122_s19  ;;  %v6499_v41 = vcombine.low %v310_v56, %v310_v56  ;;  %v2425_v52 = vsel %vm2421_vm8, %v2328_v50, %v1606_v20  ;;  %v769_v20 = vsel %vm652_vm1, %v764_v57, %v6519_v60 }
  0xb4   : > { %1420 = vrot.lane.b32.xlu0 %v6452_v15, %s6122_s19 }
  0xb5   : > { %v1604_v26 = vpop.permute.xlu1 %1603 }
  0xb6   : > { %v6473_v25 = vpop.permute.xlu0 %1188 }
  0xb7   : > { %1519 = vrot.lane.b32.xlu1 %v6465_v22, %s6123_s20 }
  0xb8   : > { %1517 = vrot.lane.b32.xlu0 %v6394_v43, %s6123_s20 }
  0xb9   : > { %v1722_v36 = vpop.permute.xlu1 %1721 }
  0xba   : > { %v1720_v34 = vpop.permute.xlu0 %1719 }
  0xbb   : > { %1515 = vrot.lane.b32.xlu1 %v6403_v45, %s6123_s20  ;;  %v2132_v45 = vsel %vm2130_vm5, %v2035_v11, %v6405_v47  ;;  %v2522_v47 = vsel %vm2518_vm9, %v2425_v52, %v1720_v34 }
  0xbc   : > { %1035 = vrot.lane.b32.xlu0 %v6390_v40, %s6121_s18  ;;  %v2233_v40 = vsel %vm2227_vm6, %v2136_v38, %v1405_v61  ;;  %v2229_v2 = vsel %vm2227_vm6, %v2132_v45, %v6429_v62  ;;  %v770_v45 = vshrl.u32 %v6486_v32, 16 }
  0xbd   : > { %v1718_v39 = vpop.permute.xlu1 %1717  ;;  %v2330_v54 = vsel %vm2324_vm7, %v2233_v40, %v1504_v8  ;;  %v2326_v8 = vsel %vm2324_vm7, %v2229_v2, %v6444_v14  ;;  %v6584_v40 = vcombine.low %v6476_v27, %v6476_v27  ;;  %v318_v2 = vld [vmem:[%s6226_s15 + $0x88] sm:$0xf] }
  0xbe   : > { %v1293_v49 = vpop.permute.xlu0 %1292  ;;  %v2427_v56 = vsel %vm2421_vm8, %v2330_v54, %v1608_v21  ;;  %v2423_v16 = vsel %vm2421_vm8, %v2326_v8, %v1604_v26  ;;  %v1131_v26 = vrot.slane %v6468_v23, 1 }
  0xbf   : > { %1623 = vrot.lane.b32.xlu1 %v6468_v23, %s6124_s27  ;;  %v2524_v61 = vsel %vm2518_vm9, %v2427_v56, %v1722_v36  ;;  %v2520_v14 = vsel %vm2518_vm9, %v2423_v16, %v1718_v39  ;;  %v1922_v36 = vsel %vm1912_vm3, %v6235_v3, %v6442_v13 }
  0xc0   : > { %1621 = vrot.lane.b32.xlu0 %v6499_v41, %s6124_s27  ;;  %v1133_v5 = vsel %vm1109_vm0, %v1131_v26, %v6550_v28  ;;  %v2041_v37 = vsel %vm2033_vm4, %v1922_v36, %v6473_v25  ;;  %v6646_v26 = vcombine.low %v318_v2, %v318_v2 }
  0xc1   : > { %v1821_v1 = vpop.permute.xlu1 %1820  ;;  %v2138_v38 = vsel %vm2130_vm5, %v2041_v37, %v1293_v49 }
  0xc2   : > { %v1819_v63 = vpop.permute.xlu0 %1818  ;;  %v2621_v59 = vsel %vm2615_vm10, %v2524_v61, %v1821_v1  ;;  %v6618_v61 = vld [vmem:[%s6226_s15 + $0x80] sm:$0xff]  }
  0xc3   : > { %v2619_v7 = vsel %vm2615_vm10, %v2522_v47, %v1819_v63  ;;  %1619 = vrot.lane.b32.xlu1 %v6422_v58, %s6124_s27  ;;  %v2716_v19 = vsel %vm2712_vm11, %v2621_v59, 1065369472  ;;  %v776_v8 = vshll.u32 %v6618_v61, 16 }
  0xc4   : > { %1204 = vrot.lane.b32.xlu0 %v6394_v43, %s6120_s17  ;;  %v2715_v62 = vsel %vm2712_vm11, %v2619_v7, 1065369472  ;;  %v2814_v50 = vunpack.c.h.b16 %v2716_v19  ;;  %v319_v7 = vld [vmem:[%s6226_s15 + $0x8c] sm:$0x1] }
  0xc5   : > { %v1817_v24 = vpop.permute.xlu1 %1816  ;;  %v5495_v6 = vcombine.low %v2715_v62, %v2716_v19  ;;  %v5473_v59 = vcombine.low %v318_v2, %v319_v7 }
  0xc6   : > { %v1407_v21 = vpop.permute.xlu0 %1406  ;;  %v2617_v43 = vsel %vm2615_vm10, %v2520_v14, %v1817_v24  ;;  %v774_v14 = vshrl.u32 %v6618_v61, 16 }
  0xc7   : > { %1737 = vrot.lane.b32.xlu1 %v769_v20, %s6125_s8  ;;  %v2714_v12 = vsel %vm2712_vm11, %v2617_v43, 1065369472  ;;  %v2235_v48 = vsel %vm2227_vm6, %v2138_v38, %v1407_v21  ;;  %v778_v21 = vrot.slane %v776_v8, 1 }
  0xc8   : > { %1735 = vrot.lane.b32.xlu0 %v6534_v10, %s6125_s8  ;;  %5676 = vmatprep.mubr.msk.bf16.mxu0 %vm2919_vm2, %v2714_v12 }
  0xc9   : > { %5677 = vmatmul.mubr.msk.bf16.vlgmr.msra.gmra.mrb[0].mxu0 %vm2919_vm2, %v5495_v6  ;;  %v1022_v31 = vpop.permute.xlu1 %1021 }
  0xca   : > { %v1506_v30 = vpop.permute.xlu0 %1505  ;;  %v1924_v16 = vsel %vm1912_vm3, %v6229_v0, %v1022_v31  ;;  %v779_v31 = vor.u32 %v778_v21, %v774_v14 }
  0xcb   : > { %1733 = vrot.lane.b32.xlu1 %v6452_v15, %s6125_s8  ;;  %v2332_v44 = vsel %vm2324_vm7, %v2235_v48, %v1506_v30 }
  0xcc   : > { %1308 = vrot.lane.b32.xlu0 %v6499_v41, %s6119_s16 }
  0xcd   : > { %v1191_v34 = vpop.permute.xlu1 %1190 }
  0xce   : > { %v1610_v33 = vpop.permute.xlu0 %1609 }
  0xcf   : > { %1836 = vrot.lane.b32.xlu1 %v1133_v5, %s6126_s11  ;;  %v2429_v3 = vsel %vm2421_vm8, %v2332_v44, %v1610_v33 }
  0xd0   : > { %1834 = vrot.lane.b32.xlu0 %v6456_v17, %s6126_s11 }
  0xd1   : > { %v1295_v42 = vpop.permute.xlu1 %1294 }
  0xd2   : > { %v1724_v11 = vpop.permute.xlu0 %1723 }
  0xd3   : > { %1832 = vrot.lane.b32.xlu1 %v6465_v22, %s6126_s11  ;;  %v2526_v13 = vsel %vm2518_vm9, %v2429_v3, %v1724_v11  ;;  %v1134_v3 = vrot.slane %v6618_v61, 1 }
  0xd4   : > { %1422 = vrot.lane.b32.xlu0 %v6534_v10, %s6122_s19 }
  0xd5   : > { %v1409_v25 = vpop.permute.xlu1 %1408 }
  0xd6   : > { %v1823_v39 = vpop.permute.xlu0 %1822 }
  0xd7   : > { %v2623_v49 = vsel %vm2615_vm10, %v2526_v13, %v1823_v39  ;;  %1037 = vrot.lane.b32.xlu1 %v6452_v15, %s6121_s18  ;;  %v6596_v15 = vor.u32 %v770_v45, %v6519_v60  ;;  %v6667_v13 = vrot.slane %v5473_v59, 1 }
  0xd8   : > { %v2717_v51 = vsel %vm2712_vm11, %v2623_v49, 1065369472  ;;  %1521 = vrot.lane.b32.xlu0 %v6456_v17, %s6123_s20  ;;  %v322_v49 = vld [vmem:[%s6226_s15 + $0x98] sm:$0xf] }
  0xd9   : > { %v2815_v54 = vunpack.c.l.b16 %v2717_v51  ;;  %v6589_v52 = vpop.permute.xlu1 %1027  ;;  %v323_v51 = vld [vmem:[%s6226_s15 + $0x9c] sm:$0x1]  ;;  %v6677_v45 = vsel %vm1109_vm0, %v1134_v3, %v6667_v13 }
  0xda   : > { %v6587_v55 = vpop.permute.xlu0 %1025 }
  0xdb   : > { %v2885_v56 = vpack.c.b16 %v2815_v54, %v2814_v50  ;;  %1206 = vrot.lane.b32.xlu1 %v6465_v22, %s6120_s17 }
  0xdc   : > { %1625 = vrot.lane.b32.xlu0 %v6584_v40, %s6124_s27 }
  0xdd   : > { %5680 = vmatprep.mubr.msk.bf16.mxu0 %vm2919_vm2, %v2885_v56  ;;  %v6599_v32 = vpop.permute.xlu1 %1023  ;;  %v6680_v56 = vld [vmem:[%s6226_s15 + $0x90] sm:$0xff]  }
  0xde   : > { %v1508_v27 = vpop.permute.xlu0 %1507  ;;  %v791_v2 = vshll.u32 %v6680_v56, 16 }
  0xdf   : > { %1310 = vrot.lane.b32.xlu1 %v6468_v23, %s6119_s16 }
  0xe0   : > { %1739 = vrot.lane.b32.xlu0 %v6596_v15, %s6125_s8 }
  0xe1   : > { %v6607_v47 = vpop.permute.xlu1 %1196 }
  0xe2   : > { %v6605_v57 = vpop.permute.xlu0 %1194 }
  0xe3   : > { %1424 = vrot.lane.b32.xlu1 %v769_v20, %s6122_s19 }
  0xe4   : > { %1838 = vrot.lane.b32.xlu0 %v6550_v28, %s6126_s11 }
  0xe5   : > { %v6612_v60 = vpop.permute.xlu1 %1192 }
  0xe6   : > { %v1612_v22 = vpop.permute.xlu0 %1611 }
  0xe7   : > { %1043 = vrot.lane.b32.xlu1 %v6596_v15, %s6121_s18 }
  0xe8   : > { %1041 = vrot.lane.b32.xlu0 %v769_v20, %s6121_s18  ;;  %v2043_v20 = vsel %vm2033_vm4, %v1924_v16, %v1191_v34 }
  0xe9   : > { %v6620_v1 = vpop.permute.xlu1 %1300  ;;  %v2140_v24 = vsel %vm2130_vm5, %v2043_v20, %v1295_v42 }
  0xea   : > { %v1299_v63 = vpop.permute.xlu0 %1298  ;;  %v2237_v0 = vsel %vm2227_vm6, %v2140_v24, %v1409_v25 }
  0xeb   : > { %1039 = vrot.lane.b32.xlu1 %v6534_v10, %s6121_s18  ;;  %v781_v10 = vshll.u32 %v5473_v59, 16  ;;  %v2334_v12 = vsel %vm2324_vm7, %v2237_v0, %v1508_v27  ;;  %v5474_v27 = vcombine.low %v322_v49, %v323_v51 }
  0xec   : > { %1523 = vrot.lane.b32.xlu0 %v1133_v5, %s6123_s20  ;;  %v2431_v30 = vsel %vm2421_vm8, %v2334_v12, %v1612_v22  ;;  %v1929_v22 = vsel %vm1912_vm3, %v6281_v46, %v6587_v55  ;;  %v789_v46 = vshrl.u32 %v6680_v56, 16  ;;  %v1932_v55 = vsel %vm1912_vm3, %v6327_v4, %v6589_v52 }
  0xed   : > { %v6630_v19 = vpop.permute.xlu1 %1296  ;;  %v2047_v7 = vsel %vm2033_vm4, %v1929_v22, %v6605_v57  ;;  %v793_v57 = vrot.slane %v791_v2, 1  ;;  %v6711_v52 = vcombine.low %v322_v49, %v322_v49 }
  0xee   : > { %v1726_v62 = vpop.permute.xlu0 %1725 }
  0xef   : > { %1212 = vrot.lane.b32.xlu1 %v6550_v28, %s6120_s17  ;;  %v2528_v33 = vsel %vm2518_vm9, %v2431_v30, %v1726_v62  ;;  %v796_v62 = vshll.u32 %v5474_v27, 16  ;;  %v800_v30 = vshrl.u32 %v5474_v27, 16 }
  0xf0   : > { %1210 = vrot.lane.b32.xlu0 %v1133_v5, %s6120_s17  ;;  %v783_v5 = vrot.slane %v781_v10, 1 }
  0xf1   : > { %v6638_v6 = vpop.permute.xlu1 %1414  ;;  %v798_v0 = vrot.slane %v796_v62, 1 }
  0xf2   : > { %v1413_v43 = vpop.permute.xlu0 %1412  ;;  %v6658_v11 = vsel %vm652_vm1, %v779_v31, %v783_v5 }
  0xf3   : > { %1208 = vrot.lane.b32.xlu1 %v6456_v17, %s6120_s17  ;;  %v785_v17 = vshrl.u32 %v5473_v59, 16  ;;  %v2144_v59 = vsel %vm2130_vm5, %v2047_v7, %v1299_v63  ;;  %v2049_v63 = vsel %vm2033_vm4, %v1932_v55, %v6607_v47 }
  0xf4   : > { %1627 = vrot.lane.b32.xlu0 %v6618_v61, %s6124_s27  ;;  %v2241_v20 = vsel %vm2227_vm6, %v2144_v59, %v1413_v43 }
  0xf5   : > { %v1411_v36 = vpop.permute.xlu1 %1410  ;;  %v6664_v44 = vor.u32 %v785_v17, %v783_v5 }
  0xf6   : > { %v1825_v34 = vpop.permute.xlu0 %1824 }
  0xf7   : > { %v2625_v37 = vsel %vm2615_vm10, %v2528_v33, %v1825_v34  ;;  %1316 = vrot.lane.b32.xlu1 %v6646_v26, %s6119_s16 }
  0xf8   : > { %v2718_v38 = vsel %vm2712_vm11, %v2625_v37, 1065369472  ;;  %1314 = vrot.lane.b32.xlu0 %v6618_v61, %s6119_s16 }
  0xf9   : > { %5681 = vmatmul.mubr.msk.bf16.gmra.mrb[4].mxu0 %vm2919_vm2, %v2718_v38  ;;  %v1514_v48 = vpop.permute.xlu1 %1513 }
  0xfa   : > { %v1512_v42 = vpop.permute.xlu0 %1511 }
  0xfb   : > { %1312 = vrot.lane.b32.xlu1 %v6584_v40, %s6119_s16  ;;  %v2338_v14 = vsel %vm2324_vm7, %v2241_v20, %v1512_v42  ;;  %v6735_v42 = vor.u32 %v800_v30, %v798_v0 }
  0xfc   : > { %1741 = vrot.lane.b32.xlu0 %v6658_v11, %s6125_s8 }
  0xfd   : > { %v1616_v25 = vpop.permute.xlu1 %1615 }
  0xfe   : > { %v1510_v39 = vpop.permute.xlu0 %1509  ;;  %v2435_v4 = vsel %vm2421_vm8, %v2338_v14, %v1616_v25  ;;  %v1137_v25 = vrot.slane %v6680_v56, 1  ;;  %v326_v14 = vld [vmem:[%s6226_s15 + $0xa8] sm:$0xf] }
  0xff   : > { %1430 = vrot.lane.b32.xlu1 %v6664_v44, %s6122_s19 }
 0x100   : > { %1428 = vrot.lane.b32.xlu0 %v6658_v11, %s6122_s19 }
 0x101   : > { %v1614_v54 = vpop.permute.xlu1 %1613 }
 0x102   : > { %v1618_v50 = vpop.permute.xlu0 %1617 }
 0x103   : > { %1426 = vrot.lane.b32.xlu1 %v6596_v15, %s6122_s19  ;;  %v1927_v15 = vsel %vm1912_vm3, %v6296_v53, %v6599_v32  ;;  %v2146_v53 = vsel %vm2130_vm5, %v2049_v63, %v6620_v1  ;;  %v6782_v63 = vld [vmem:[%s6226_s15 + $0xa0] sm:$0xff]  }
 0x104   : > { %1840 = vrot.lane.b32.xlu0 %v6677_v45, %s6126_s11  ;;  %v2045_v21 = vsel %vm2033_vm4, %v1927_v15, %v6612_v60  ;;  %v2243_v47 = vsel %vm2227_vm6, %v2146_v53, %v6638_v6 }
 0x105   : > { %v1732_v16 = vpop.permute.xlu1 %1731  ;;  %v2142_v32 = vsel %vm2130_vm5, %v2045_v21, %v6630_v19  ;;  %v2340_v31 = vsel %vm2324_vm7, %v2243_v47, %v1514_v48  ;;  %v794_v19 = vor.u32 %v793_v57, %v789_v46  ;;  %v327_v57 = vld [vmem:[%s6226_s15 + $0xac] sm:$0x1] }
 0x106   : > { %v1730_v8 = vpop.permute.xlu0 %1729  ;;  %v2239_v60 = vsel %vm2227_vm6, %v2142_v32, %v1411_v36  ;;  %v2437_v5 = vsel %vm2421_vm8, %v2340_v31, %v1618_v50  ;;  %v6788_v21 = vcombine.low %v326_v14, %v327_v57  ;;  %v804_v32 = vshrl.u32 %v6782_v63, 16 }
 0x107   : > { %1529 = vrot.lane.b32.xlu1 %v6667_v13, %s6123_s20  ;;  %v2532_v10 = vsel %vm2518_vm9, %v2435_v4, %v1730_v8  ;;  %v2336_v1 = vsel %vm2324_vm7, %v2239_v60, %v1510_v39  ;;  %v2534_v33 = vsel %vm2518_vm9, %v2437_v5, %v1732_v16  ;;  %v799_v39 = vsel %vm652_vm1, %v794_v19, %v798_v0  ;;  %v6817_v19 = vld [vmem:[%s6226_s15 + $0xb0] sm:$0xff]  }
 0x108   : > { %1527 = vrot.lane.b32.xlu0 %v6677_v45, %s6123_s20  ;;  %v2433_v6 = vsel %vm2421_vm8, %v2336_v1, %v1614_v54  ;;  %v6745_v54 = vrot.slane %v5474_v27, 1  ;;  %v806_v4 = vshll.u32 %v6782_v63, 16  ;;  %v6814_v30 = vrot.slane %v6788_v21, 1 }
 0x109   : > { %v1829_v43 = vpop.permute.xlu1 %1828 }
 0x10a   : > { %v1728_v24 = vpop.permute.xlu0 %1727  ;;  %v2629_v12 = vsel %vm2615_vm10, %v2532_v10, %v1829_v43  ;;  %v6758_v59 = vsel %vm1109_vm0, %v1137_v25, %v6745_v54  ;;  %v808_v10 = vrot.slane %v806_v4, 1 }
 0x10b   : > { %1631 = vrot.lane.b32.xlu1 %v6680_v56, %s6124_s27  ;;  %v2530_v34 = vsel %vm2518_vm9, %v2433_v6, %v1728_v24  ;;  %v2720_v36 = vsel %vm2712_vm11, %v2629_v12, 1065369472  ;;  %v1140_v12 = vrot.slane %v6782_v63, 1 }
 0x10c   : > { %1525 = vrot.lane.b32.xlu0 %v6550_v28, %s6123_s20  ;;  %v2820_v49 = vunpack.c.h.b16 %v2720_v36  ;;  %v809_v43 = vor.u32 %v808_v10, %v804_v32 }
 0x10d   : > { %v1827_v38 = vpop.permute.xlu1 %1826  ;;  %v6824_v5 = vsel %vm1109_vm0, %v1140_v12, %v6814_v30 }
 0x10e   : > { %v1831_v37 = vpop.permute.xlu0 %1830  ;;  %v2627_v28 = vsel %vm2615_vm10, %v2530_v34, %v1827_v38  ;;  %v6829_v34 = vld [vmem:[%s6226_s15 + $0xb8] sm:$0xf] }
 0x10f   : > { %v2631_v17 = vsel %vm2615_vm10, %v2534_v33, %v1831_v37  ;;  %v2719_v3 = vsel %vm2712_vm11, %v2627_v28, 1065369472  ;;  %1629 = vrot.lane.b32.xlu1 %v6646_v26, %s6124_s27  ;;  %v821_v37 = vshll.u32 %v6817_v19, 16 }
 0x110   : > { %v2721_v48 = vsel %vm2712_vm11, %v2631_v17, 1065369472  ;;  %1633 = vrot.lane.b32.xlu0 %v6711_v52, %s6124_s27  ;;  %v5496_v50 = vcombine.low %v2719_v3, %v2720_v36  ;;  %v331_v36 = vld [vmem:[%s6226_s15 + $0xbc] sm:$0x1] }
 0x111   : > { %v2821_v51 = vunpack.c.l.b16 %v2721_v48  ;;  %v6749_v2 = vpop.permute.xlu1 %1033  ;;  %v6838_v38 = vcombine.low %v6829_v34, %v331_v36  ;;  %v819_v48 = vshrl.u32 %v6817_v19, 16  ;;  %v823_v3 = vrot.slane %v821_v37, 1 }
 0x112   : > { %v6747_v22 = vpop.permute.xlu0 %1031  ;;  %5684 = vmatprep.mubr.msk.bf16.mxu0 %vm2919_vm2, %v5496_v50  ;;  %v1939_v25 = vsel %vm1912_vm3, %v6371_v29, %v6749_v2 }
 0x113   : > { %v2888_v7 = vpack.c.b16 %v2821_v51, %v2820_v49  ;;  %1747 = vrot.lane.b32.xlu1 %v6735_v42, %s6125_s8  ;;  %v6851_v49 = vcombine.low %v326_v14, %v326_v14 }
 0x114   : > { %1745 = vrot.lane.b32.xlu0 %v799_v39, %s6125_s8 }
 0x115   : > { %5685 = vmatmul.mubr.msk.bf16.gmra.mrb[8].mxu0 %vm2919_vm2, %v2888_v7  ;;  %v6762_v8 = vpop.permute.xlu1 %1200  ;;  %v826_v7 = vshll.u32 %v6838_v38, 16 }
 0x116   : > { %v6760_v27 = vpop.permute.xlu0 %1029 }
 0x117   : > { %1844 = vrot.lane.b32.xlu1 %v6758_v59, %s6126_s11  ;;  %v1934_v14 = vsel %vm1912_vm3, %v6340_v9, %v6760_v27  ;;  %v6875_v9 = vrot.slane %v826_v7, 1 }
 0x118   : > { %1743 = vrot.lane.b32.xlu0 %v6664_v44, %s6125_s8 }
 0x119   : > { %v6768_v62 = vpop.permute.xlu1 %1198 }
 0x11a   : > { %v1203_v16 = vpop.permute.xlu0 %1202 }
 0x11b   : > { %1842 = vrot.lane.b32.xlu1 %v6667_v13, %s6126_s11  ;;  %v2055_v50 = vsel %vm2033_vm4, %v1939_v25, %v1203_v16 }
 0x11c   : > { %1846 = vrot.lane.b32.xlu0 %v6745_v54, %s6126_s11 }
 0x11d   : > { %v1307_v46 = vpop.permute.xlu1 %1306 }
 0x11e   : > { %v1305_v20 = vpop.permute.xlu0 %1304 }
 0x11f   : > { %1049 = vrot.lane.b32.xlu1 %v799_v39, %s6121_s18 }
 0x120   : > { %1047 = vrot.lane.b32.xlu0 %v6664_v44, %s6121_s18 }
 0x121   : > { %v1419_v15 = vpop.permute.xlu1 %1418 }
 0x122   : > { %v6777_v55 = vpop.permute.xlu0 %1302 }
 0x123   : > { %1216 = vrot.lane.b32.xlu1 %v6667_v13, %s6120_s17 }
 0x124   : > { %1045 = vrot.lane.b32.xlu0 %v6658_v11, %s6121_s18  ;;  %v811_v11 = vshll.u32 %v6788_v21, 16 }
 0x125   : > { %v6791_v53 = vpop.permute.xlu1 %1416 }
 0x126   : > { %v1421_v44 = vpop.permute.xlu0 %1420  ;;  %v813_v0 = vrot.slane %v811_v11, 1 }
 0x127   : > { %1214 = vrot.lane.b32.xlu1 %v6677_v45, %s6120_s17 }
 0x128   : > { %1218 = vrot.lane.b32.xlu0 %v6758_v59, %s6120_s17  ;;  %v6810_v60 = vsel %vm652_vm1, %v809_v43, %v813_v0 }
 0x129   : > { %v1520_v24 = vpop.permute.xlu1 %1519 }
 0x12a   : > { %v1518_v13 = vpop.permute.xlu0 %1517 }
 0x12b   : > { %1322 = vrot.lane.b32.xlu1 %v6782_v63, %s6119_s16 }
 0x12c   : > { %1320 = vrot.lane.b32.xlu0 %v6711_v52, %s6119_s16 }
 0x12d   : > { %v1516_v45 = vpop.permute.xlu1 %1515 }
 0x12e   : > { %v6803_v47 = vpop.permute.xlu0 %1035 }
 0x12f   : > { %1434 = vrot.lane.b32.xlu1 %v6735_v42, %s6122_s19 }
 0x130   : > { %1318 = vrot.lane.b32.xlu0 %v6680_v56, %s6119_s16 }
 0x131   : > { %v1624_v1 = vpop.permute.xlu1 %1623 }
 0x132   : > { %v1622_v31 = vpop.permute.xlu0 %1621 }
 0x133   : > { %1432 = vrot.lane.b32.xlu1 %v799_v39, %s6122_s19  ;;  %v1937_v39 = vsel %vm1912_vm3, %v6354_v18, %v6747_v22  ;;  %v2152_v22 = vsel %vm2130_vm5, %v2055_v50, %v1307_v46  ;;  %v2051_v46 = vsel %vm2033_vm4, %v1934_v14, %v6768_v62  ;;  %v6940_v14 = vcombine.low %v6829_v34, %v6829_v34 }
 0x134   : > { %1436 = vrot.lane.b32.xlu0 %v6810_v60, %s6122_s19  ;;  %v2053_v51 = vsel %vm2033_vm4, %v1937_v39, %v6762_v8  ;;  %v2249_v57 = vsel %vm2227_vm6, %v2152_v22, %v1421_v44  ;;  %v2148_v27 = vsel %vm2130_vm5, %v2051_v46, %v6777_v55 }
 0x135   : > { %v1620_v33 = vpop.permute.xlu1 %1619  ;;  %v2150_v18 = vsel %vm2130_vm5, %v2053_v51, %v1305_v20  ;;  %v2346_v16 = vsel %vm2324_vm7, %v2249_v57, %v1520_v24  ;;  %v815_v20 = vshrl.u32 %v6788_v21, 16  ;;  %v2245_v21 = vsel %vm2227_vm6, %v2148_v27, %v6791_v53 }
 0x136   : > { %v6826_v6 = vpop.permute.xlu0 %1204  ;;  %v2443_v4 = vsel %vm2421_vm8, %v2346_v16, %v1624_v1  ;;  %v2342_v24 = vsel %vm2324_vm7, %v2245_v21, %v1516_v45  ;;  %v1942_v51 = vsel %vm1912_vm3, %v6382_v35, %v6803_v47  ;;  %v334_v21 = vld [vmem:[%s6226_s15 + $0xc8] sm:$0xf] }
 0x137   : > { %1535 = vrot.lane.b32.xlu1 %v6824_v5, %s6123_s20  ;;  %v6890_v55 = vor.u32 %v815_v20, %v813_v0  ;;  %v2439_v43 = vsel %vm2421_vm8, %v2342_v24, %v1620_v33  ;;  %v1143_v0 = vrot.slane %v6817_v19, 1  ;;  %v6906_v33 = vrot.slane %v6838_v38, 1 }
 0x138   : > { %1533 = vrot.lane.b32.xlu0 %v6745_v54, %s6123_s20  ;;  %v2057_v50 = vsel %vm2033_vm4, %v1942_v51, %v6826_v6 }
 0x139   : > { %v1738_v28 = vpop.permute.xlu1 %1737 }
 0x13a   : > { %v1736_v17 = vpop.permute.xlu0 %1735  ;;  %v2540_v32 = vsel %vm2518_vm9, %v2443_v4, %v1738_v28 }
 0x13b   : > { %1531 = vrot.lane.b32.xlu1 %v6758_v59, %s6123_s20  ;;  %v824_v59 = vor.u32 %v823_v3, %v819_v48  ;;  %v1145_v3 = vsel %vm1109_vm0, %v1143_v0, %v6906_v33  ;;  %v7002_v0 = vcombine.low %v334_v21, %v334_v21 }
 0x13c   : > { %1051 = vrot.lane.b32.xlu0 %v6735_v42, %s6121_s18  ;;  %v2247_v42 = vsel %vm2227_vm6, %v2150_v18, %v1419_v15 }
 0x13d   : > { %v1734_v2 = vpop.permute.xlu1 %1733  ;;  %v2344_v8 = vsel %vm2324_vm7, %v2247_v42, %v1518_v13 }
 0x13e   : > { %v1309_v29 = vpop.permute.xlu0 %1308  ;;  %v2441_v15 = vsel %vm2421_vm8, %v2344_v8, %v1622_v31  ;;  %v829_v31 = vsel %vm652_vm1, %v824_v59, %v6875_v9  ;;  %v2536_v1 = vsel %vm2518_vm9, %v2439_v43, %v1734_v2  ;;  %v830_v8 = vshrl.u32 %v6838_v38, 16 }
 0x13f   : > { %1639 = vrot.lane.b32.xlu1 %v6817_v19, %s6124_s27  ;;  %v2538_v44 = vsel %vm2518_vm9, %v2441_v15, %v1736_v17  ;;  %v2154_v7 = vsel %vm2130_vm5, %v2057_v50, %v1309_v29 }
 0x140   : > { %1637 = vrot.lane.b32.xlu0 %v6851_v49, %s6124_s27 }
 0x141   : > { %v1837_v11 = vpop.permute.xlu1 %1836 }
 0x142   : > { %v1835_v10 = vpop.permute.xlu0 %1834  ;;  %v2637_v13 = vsel %vm2615_vm10, %v2540_v32, %v1837_v11  ;;  %v6974_v32 = vld [vmem:[%s6226_s15 + $0xc0] sm:$0xff]  }
 0x143   : > { %v2635_v62 = vsel %vm2615_vm10, %v2538_v44, %v1835_v10  ;;  %1635 = vrot.lane.b32.xlu1 %v6782_v63, %s6124_s27  ;;  %v2724_v53 = vsel %vm2712_vm11, %v2637_v13, 1065369472  ;;  %v836_v24 = vshll.u32 %v6974_v32, 16 }
 0x144   : > { %1220 = vrot.lane.b32.xlu0 %v6745_v54, %s6120_s17  ;;  %v2723_v12 = vsel %vm2712_vm11, %v2635_v62, 1065369472  ;;  %v2826_v16 = vunpack.c.h.b16 %v2724_v53  ;;  %v335_v62 = vld [vmem:[%s6226_s15 + $0xcc] sm:$0x1] }
 0x145   : > { %v1833_v36 = vpop.permute.xlu1 %1832  ;;  %v5497_v37 = vcombine.low %v2723_v12, %v2724_v53  ;;  %v5477_v13 = vcombine.low %v334_v21, %v335_v62 }
 0x146   : > { %v1423_v45 = vpop.permute.xlu0 %1422  ;;  %v2633_v54 = vsel %vm2615_vm10, %v2536_v1, %v1833_v36  ;;  %v834_v1 = vshrl.u32 %v6974_v32, 16 }
 0x147   : > { %v2722_v17 = vsel %vm2712_vm11, %v2633_v54, 1065369472  ;;  %1753 = vrot.lane.b32.xlu1 %v829_v31, %s6125_s8  ;;  %v2251_v2 = vsel %vm2227_vm6, %v2154_v7, %v1423_v45  ;;  %v838_v45 = vrot.slane %v836_v24, 1 }
 0x148   : > { %1751 = vrot.lane.b32.xlu0 %v6890_v55, %s6125_s8  ;;  %5688 = vmatprep.mubr.msk.bf16.mxu0 %vm2919_vm2, %v2722_v17 }
 0x149   : > { %5689 = vmatmul.mubr.msk.bf16.gmra.mrb[12].mxu0 %vm2919_vm2, %v5497_v37  ;;  %v1038_v48 = vpop.permute.xlu1 %1037 }
 0x14a   : > { %v1522_v28 = vpop.permute.xlu0 %1521  ;;  %v1944_v43 = vsel %vm1912_vm3, %v6422_v58, %v1038_v48  ;;  %v839_v48 = vor.u32 %v838_v45, %v834_v1 }
 0x14b   : > { %1749 = vrot.lane.b32.xlu1 %v6810_v60, %s6125_s8  ;;  %v2348_v42 = vsel %vm2324_vm7, %v2251_v2, %v1522_v28 }
 0x14c   : > { %1324 = vrot.lane.b32.xlu0 %v6851_v49, %s6119_s16 }
 0x14d   : > { %v1207_v25 = vpop.permute.xlu1 %1206 }
 0x14e   : > { %v1626_v39 = vpop.permute.xlu0 %1625 }
 0x14f   : > { %1852 = vrot.lane.b32.xlu1 %v1145_v3, %s6126_s11  ;;  %v2445_v35 = vsel %vm2421_vm8, %v2348_v42, %v1626_v39 }
 0x150   : > { %1850 = vrot.lane.b32.xlu0 %v6814_v30, %s6126_s11 }
 0x151   : > { %v1311_v22 = vpop.permute.xlu1 %1310 }
 0x152   : > { %v1740_v18 = vpop.permute.xlu0 %1739 }
 0x153   : > { %1848 = vrot.lane.b32.xlu1 %v6824_v5, %s6126_s11  ;;  %v2542_v47 = vsel %vm2518_vm9, %v2445_v35, %v1740_v18  ;;  %v1146_v35 = vrot.slane %v6974_v32, 1 }
 0x154   : > { %1438 = vrot.lane.b32.xlu0 %v6890_v55, %s6122_s19 }
 0x155   : > { %v1425_v6 = vpop.permute.xlu1 %1424 }
 0x156   : > { %v1839_v57 = vpop.permute.xlu0 %1838 }
 0x157   : > { %v2639_v29 = vsel %vm2615_vm10, %v2542_v47, %v1839_v57  ;;  %1053 = vrot.lane.b32.xlu1 %v6810_v60, %s6121_s18  ;;  %v6952_v60 = vor.u32 %v830_v8, %v6875_v9  ;;  %v7023_v47 = vrot.slane %v5477_v13, 1 }
 0x158   : > { %v2725_v59 = vsel %vm2712_vm11, %v2639_v29, 1065369472  ;;  %1537 = vrot.lane.b32.xlu0 %v6814_v30, %s6123_s20  ;;  %v338_v29 = vld [vmem:[%s6226_s15 + $0xd8] sm:$0xf] }
 0x159   : > { %v2827_v20 = vunpack.c.l.b16 %v2725_v59  ;;  %v6945_v15 = vpop.permute.xlu1 %1043  ;;  %v339_v59 = vld [vmem:[%s6226_s15 + $0xdc] sm:$0x1]  ;;  %v7033_v8 = vsel %vm1109_vm0, %v1146_v35, %v7023_v47 }
 0x15a   : > { %v6943_v46 = vpop.permute.xlu0 %1041 }
 0x15b   : > { %v2891_v4 = vpack.c.b16 %v2827_v20, %v2826_v16  ;;  %1222 = vrot.lane.b32.xlu1 %v6824_v5, %s6120_s17 }
 0x15c   : > { %1641 = vrot.lane.b32.xlu0 %v6940_v14, %s6124_s27 }
 0x15d   : > { %5692 = vmatprep.mubr.msk.bf16.mxu0 %vm2919_vm2, %v2891_v4  ;;  %v6955_v38 = vpop.permute.xlu1 %1039  ;;  %v7036_v4 = vld [vmem:[%s6226_s15 + $0xd0] sm:$0xff]  }
 0x15e   : > { %v1524_v34 = vpop.permute.xlu0 %1523  ;;  %v851_v21 = vshll.u32 %v7036_v4, 16 }
 0x15f   : > { %1326 = vrot.lane.b32.xlu1 %v6817_v19, %s6119_s16 }
 0x160   : > { %1755 = vrot.lane.b32.xlu0 %v6952_v60, %s6125_s8 }
 0x161   : > { %v6963_v44 = vpop.permute.xlu1 %1212 }
 0x162   : > { %v6961_v27 = vpop.permute.xlu0 %1210 }
 0x163   : > { %1440 = vrot.lane.b32.xlu1 %v829_v31, %s6122_s19 }
 0x164   : > { %1854 = vrot.lane.b32.xlu0 %v6906_v33, %s6126_s11 }
 0x165   : > { %v6968_v9 = vpop.permute.xlu1 %1208 }
 0x166   : > { %v1628_v5 = vpop.permute.xlu0 %1627 }
 0x167   : > { %1059 = vrot.lane.b32.xlu1 %v6952_v60, %s6121_s18 }
 0x168   : > { %1057 = vrot.lane.b32.xlu0 %v829_v31, %s6121_s18  ;;  %v2059_v31 = vsel %vm2033_vm4, %v1944_v43, %v1207_v25 }
 0x169   : > { %v6976_v11 = vpop.permute.xlu1 %1316  ;;  %v2156_v36 = vsel %vm2130_vm5, %v2059_v31, %v1311_v22 }
 0x16a   : > { %v1315_v10 = vpop.permute.xlu0 %1314  ;;  %v2253_v58 = vsel %vm2227_vm6, %v2156_v36, %v1425_v6 }
 0x16b   : > { %1055 = vrot.lane.b32.xlu1 %v6890_v55, %s6121_s18  ;;  %v841_v55 = vshll.u32 %v5477_v13, 16  ;;  %v2350_v17 = vsel %vm2324_vm7, %v2253_v58, %v1524_v34  ;;  %v5478_v34 = vcombine.low %v338_v29, %v339_v59 }
 0x16c   : > { %1539 = vrot.lane.b32.xlu0 %v1145_v3, %s6123_s20  ;;  %v2447_v28 = vsel %vm2421_vm8, %v2350_v17, %v1628_v5  ;;  %v1949_v5 = vsel %vm1912_vm3, %v6468_v23, %v6943_v46  ;;  %v849_v23 = vshrl.u32 %v7036_v4, 16  ;;  %v1952_v46 = vsel %vm1912_vm3, %v6584_v40, %v6945_v15 }
 0x16d   : > { %v6986_v53 = vpop.permute.xlu1 %1312  ;;  %v2063_v62 = vsel %vm2033_vm4, %v1949_v5, %v6961_v27  ;;  %v853_v27 = vrot.slane %v851_v21, 1  ;;  %v7067_v15 = vcombine.low %v338_v29, %v338_v29 }
 0x16e   : > { %v1742_v12 = vpop.permute.xlu0 %1741 }
 0x16f   : > { %1228 = vrot.lane.b32.xlu1 %v6906_v33, %s6120_s17  ;;  %v2544_v39 = vsel %vm2518_vm9, %v2447_v28, %v1742_v12  ;;  %v856_v12 = vshll.u32 %v5478_v34, 16  ;;  %v860_v28 = vshrl.u32 %v5478_v34, 16 }
 0x170   : > { %1226 = vrot.lane.b32.xlu0 %v1145_v3, %s6120_s17  ;;  %v843_v3 = vrot.slane %v841_v55, 1 }
 0x171   : > { %v6994_v37 = vpop.permute.xlu1 %1430  ;;  %v858_v58 = vrot.slane %v856_v12, 1 }
 0x172   : > { %v1429_v54 = vpop.permute.xlu0 %1428  ;;  %v7014_v18 = vsel %vm652_vm1, %v839_v48, %v843_v3 }
 0x173   : > { %1224 = vrot.lane.b32.xlu1 %v6814_v30, %s6120_s17  ;;  %v845_v30 = vshrl.u32 %v5477_v13, 16  ;;  %v2160_v13 = vsel %vm2130_vm5, %v2063_v62, %v1315_v10  ;;  %v2065_v10 = vsel %vm2033_vm4, %v1952_v46, %v6963_v44 }
 0x174   : > { %1643 = vrot.lane.b32.xlu0 %v6974_v32, %s6124_s27  ;;  %v2257_v31 = vsel %vm2227_vm6, %v2160_v13, %v1429_v54 }
 0x175   : > { %v1427_v51 = vpop.permute.xlu1 %1426  ;;  %v7020_v42 = vor.u32 %v845_v30, %v843_v3 }
 0x176   : > { %v1841_v25 = vpop.permute.xlu0 %1840 }
 0x177   : > { %v2641_v50 = vsel %vm2615_vm10, %v2544_v39, %v1841_v25  ;;  %1332 = vrot.lane.b32.xlu1 %v7002_v0, %s6119_s16 }
 0x178   : > { %v2726_v7 = vsel %vm2712_vm11, %v2641_v50, 1065369472  ;;  %1330 = vrot.lane.b32.xlu0 %v6974_v32, %s6119_s16 }
 0x179   : > { %5693 = vmatmul.mubr.msk.bf16.gmra.mrb[16].mxu0 %vm2919_vm2, %v2726_v7  ;;  %v1530_v2 = vpop.permute.xlu1 %1529 }
 0x17a   : > { %v1528_v22 = vpop.permute.xlu0 %1527 }
 0x17b   : > { %1328 = vrot.lane.b32.xlu1 %v6940_v14, %s6119_s16  ;;  %v2354_v1 = vsel %vm2324_vm7, %v2257_v31, %v1528_v22  ;;  %v7091_v22 = vor.u32 %v860_v28, %v858_v58 }
 0x17c   : > { %1757 = vrot.lane.b32.xlu0 %v7014_v18, %s6125_s8 }
 0x17d   : > { %v1632_v6 = vpop.permute.xlu1 %1631 }
 0x17e   : > { %v1526_v57 = vpop.permute.xlu0 %1525  ;;  %v2451_v40 = vsel %vm2421_vm8, %v2354_v1, %v1632_v6  ;;  %v1149_v6 = vrot.slane %v7036_v4, 1 }
 0x17f   : > { %1446 = vrot.lane.b32.xlu1 %v7020_v42, %s6122_s19 }
 0x180   : > { %1444 = vrot.lane.b32.xlu0 %v7014_v18, %s6122_s19 }
 0x181   : > { %v1630_v20 = vpop.permute.xlu1 %1629 }
 0x182   : > { %v1634_v16 = vpop.permute.xlu0 %1633 }
 0x183   : > { %1442 = vrot.lane.b32.xlu1 %v6952_v60, %s6122_s19  ;;  %v1947_v60 = vsel %vm1912_vm3, %v6499_v41, %v6955_v38  ;;  %v2162_v41 = vsel %vm2130_vm5, %v2065_v10, %v6976_v11 }
 0x184   : > { %1856 = vrot.lane.b32.xlu0 %v7033_v8, %s6126_s11  ;;  %v2061_v45 = vsel %vm2033_vm4, %v1947_v60, %v6968_v9  ;;  %v2259_v44 = vsel %vm2227_vm6, %v2162_v41, %v6994_v37 }
 0x185   : > { %v1748_v43 = vpop.permute.xlu1 %1747  ;;  %v2158_v38 = vsel %vm2130_vm5, %v2061_v45, %v6986_v53  ;;  %v2356_v48 = vsel %vm2324_vm7, %v2259_v44, %v1530_v2  ;;  %v854_v53 = vor.u32 %v853_v27, %v849_v23  ;;  %v342_v45 = vld [vmem:[%s6226_s15 + $0xe8] sm:$0xf] }
 0x186   : > { %v1746_v24 = vpop.permute.xlu0 %1745  ;;  %v2255_v9 = vsel %vm2227_vm6, %v2158_v38, %v1427_v51  ;;  %v2453_v3 = vsel %vm2421_vm8, %v2356_v48, %v1634_v16  ;;  %v7152_v38 = vld [vmem:[%s6226_s15 + $0xe0] sm:$0xff]  }
 0x187   : > { %1545 = vrot.lane.b32.xlu1 %v7023_v47, %s6123_s20  ;;  %v2548_v55 = vsel %vm2518_vm9, %v2451_v40, %v1746_v24  ;;  %v2352_v11 = vsel %vm2324_vm7, %v2255_v9, %v1526_v57  ;;  %v2550_v39 = vsel %vm2518_vm9, %v2453_v3, %v1748_v43  ;;  %v859_v57 = vsel %vm652_vm1, %v854_v53, %v858_v58  ;;  %v343_v40 = vld [vmem:[%s6226_s15 + $0xec] sm:$0x1] }
 0x188   : > { %1543 = vrot.lane.b32.xlu0 %v7033_v8, %s6123_s20  ;;  %v2449_v37 = vsel %vm2421_vm8, %v2352_v11, %v1630_v20  ;;  %v7101_v20 = vrot.slane %v5478_v34, 1  ;;  %v864_v58 = vshrl.u32 %v7152_v38, 16  ;;  %v1152_v53 = vrot.slane %v7152_v38, 1 }
 0x189   : > { %v1845_v54 = vpop.permute.xlu1 %1844 }
 0x18a   : > { %v1744_v36 = vpop.permute.xlu0 %1743  ;;  %v2645_v17 = vsel %vm2615_vm10, %v2548_v55, %v1845_v54  ;;  %v7114_v13 = vsel %vm1109_vm0, %v1149_v6, %v7101_v20  ;;  %v7158_v55 = vcombine.low %v342_v45, %v343_v40 }
 0x18b   : > { %1647 = vrot.lane.b32.xlu1 %v7036_v4, %s6124_s27  ;;  %v2546_v25 = vsel %vm2518_vm9, %v2449_v37, %v1744_v36  ;;  %v2728_v51 = vsel %vm2712_vm11, %v2645_v17, 1065369472 }
 0x18c   : > { %1541 = vrot.lane.b32.xlu0 %v6906_v33, %s6123_s20  ;;  %v2832_v29 = vunpack.c.h.b16 %v2728_v51  ;;  %v7184_v3 = vrot.slane %v7158_v55, 1 }
 0x18d   : > { %v1843_v7 = vpop.permute.xlu1 %1842 }
 0x18e   : > { %v1847_v50 = vpop.permute.xlu0 %1846  ;;  %v2643_v33 = vsel %vm2615_vm10, %v2546_v25, %v1843_v7  ;;  %v7190_v25 = vld [vmem:[%s6226_s15 + $0xf0] sm:$0xff]   ;;  %v7199_v7 = vld [vmem:[%s6226_s15 + $0xf8] sm:$0xf] }
 0x18f   : > { %v2647_v30 = vsel %vm2615_vm10, %v2550_v39, %v1847_v50  ;;  %v2727_v35 = vsel %vm2712_vm11, %v2643_v33, 1065369472  ;;  %1645 = vrot.lane.b32.xlu1 %v7002_v0, %s6124_s27 }
 0x190   : > { %v2729_v2 = vsel %vm2712_vm11, %v2647_v30, 1065369472  ;;  %1649 = vrot.lane.b32.xlu0 %v7067_v15, %s6124_s27  ;;  %v5498_v16 = vcombine.low %v2727_v35, %v2728_v51  ;;  %v7194_v51 = vsel %vm1109_vm0, %v1152_v53, %v7184_v3  ;;  %v347_v30 = vld [vmem:[%s6226_s15 + $0xfc] sm:$0x1] }
 0x191   : > { %v2833_v59 = vunpack.c.l.b16 %v2729_v2  ;;  %v7105_v21 = vpop.permute.xlu1 %1049  ;;  %v881_v2 = vshll.u32 %v7190_v25, 16  ;;  %v7208_v35 = vcombine.low %v7199_v7, %v347_v30 }
 0x192   : > { %v7103_v5 = vpop.permute.xlu0 %1047  ;;  %5696 = vmatprep.mubr.msk.bf16.mxu0 %vm2919_vm2, %v5498_v16  ;;  %v879_v16 = vshrl.u32 %v7190_v25, 16  ;;  %v1959_v40 = vsel %vm1912_vm3, %v6680_v56, %v7105_v21 }
 0x193   : > { %v2894_v62 = vpack.c.b16 %v2833_v59, %v2832_v29  ;;  %1763 = vrot.lane.b32.xlu1 %v7091_v22, %s6125_s8  ;;  %v1957_v29 = vsel %vm1912_vm3, %v6646_v26, %v7103_v5  ;;  %v7217_v59 = vcombine.low %v342_v45, %v342_v45  ;;  %v886_v26 = vshll.u32 %v7208_v35, 16 }
 0x194   : > { %1761 = vrot.lane.b32.xlu0 %v859_v57, %s6125_s8 }
 0x195   : > { %5697 = vmatmul.mubr.msk.bf16.gmra.mrb[20].mxu0 %vm2919_vm2, %v2894_v62  ;;  %v7118_v24 = vpop.permute.xlu1 %1216  ;;  %v883_v62 = vrot.slane %v881_v2, 1 }
 0x196   : > { %v7116_v34 = vpop.permute.xlu0 %1045 }
 0x197   : > { %1860 = vrot.lane.b32.xlu1 %v7114_v13, %s6126_s11 }
 0x198   : > { %1759 = vrot.lane.b32.xlu0 %v7020_v42, %s6125_s8 }
 0x199   : > { %v7126_v12 = vpop.permute.xlu1 %1214 }
 0x19a   : > { %v7124_v43 = vpop.permute.xlu0 %1218 }
 0x19b   : > { %1858 = vrot.lane.b32.xlu1 %v7023_v47, %s6126_s11 }
 0x19c   : > { %1862 = vrot.lane.b32.xlu0 %v7101_v20, %s6126_s11  ;;  %v7132_v31 = vpop.f32.mrb[0].mxu0 }
 0x19d   : > { %v7136_v46 = vpop.f32.mrb[1].mxu0  ;;  %v7138_v60 = vpop.permute.xlu1 %1322 }
 0x19e   : > { %v7134_v23 = vpop.permute.xlu0 %1320  ;;  %v7140_v1 = vpop.f32.mrb[2].mxu0 }
 0x19f   : > { %v7144_v27 = vpop.f32.mrb[3].mxu0  ;;  %1065 = vrot.lane.b32.xlu1 %v859_v57, %s6121_s18 }
 0x1a0   : > { %1063 = vrot.lane.b32.xlu0 %v7020_v42, %s6121_s18  ;;  %v866_v42 = vshll.u32 %v7152_v38, 16 }
 0x1a1   : > { %v1435_v41 = vpop.permute.xlu1 %1434 }
 0x1a2   : > { %v7147_v10 = vpop.permute.xlu0 %1318  ;;  %v868_v44 = vrot.slane %v866_v42, 1  ;;  %v2069_v42 = vsel %vm2033_vm4, %v1957_v29, %v7118_v24  ;;  %v875_v24 = vshrl.u32 %v7158_v55, 16 }
 0x1a3   : > { %1232 = vrot.lane.b32.xlu1 %v7023_v47, %s6120_s17  ;;  %v2166_v5 = vsel %vm2130_vm5, %v2069_v42, %v7134_v23  ;;  %v1954_v23 = vsel %vm1912_vm3, %v6618_v61, %v7116_v34 }
 0x1a4   : > { %1061 = vrot.lane.b32.xlu0 %v7014_v18, %s6121_s18  ;;  %v871_v18 = vshll.u32 %v7158_v55, 16  ;;  %v869_v17 = vor.u32 %v868_v44, %v864_v58  ;;  %v2263_v58 = vsel %vm2227_vm6, %v2166_v5, %v1435_v41 }
 0x1a5   : > { %v7161_v54 = vpop.permute.xlu1 %1432 }
 0x1a6   : > { %v1437_v36 = vpop.permute.xlu0 %1436  ;;  %v873_v28 = vrot.slane %v871_v18, 1  ;;  %v2067_v18 = vsel %vm2033_vm4, %v1954_v23, %v7126_v12 }
 0x1a7   : > { %1230 = vrot.lane.b32.xlu1 %v7033_v8, %s6120_s17  ;;  %v2164_v55 = vsel %vm2130_vm5, %v2067_v18, %v7147_v10 }
 0x1a8   : > { %1234 = vrot.lane.b32.xlu0 %v7114_v13, %s6120_s17  ;;  %v7180_v11 = vsel %vm652_vm1, %v869_v17, %v873_v28  ;;  %v7262_v12 = vor.u32 %v875_v24, %v873_v28 }
 0x1a9   : > { %v1536_v47 = vpop.permute.xlu1 %1535 }
 0x1aa   : > { %v1534_v9 = vpop.permute.xlu0 %1533 }
 0x1ab   : > { %1338 = vrot.lane.b32.xlu1 %v7152_v38, %s6119_s16  ;;  %v2360_v21 = vsel %vm2324_vm7, %v2263_v58, %v1534_v9 }
 0x1ac   : > { %1336 = vrot.lane.b32.xlu0 %v7067_v15, %s6119_s16 }
 0x1ad   : > { %v1532_v8 = vpop.permute.xlu1 %1531 }
 0x1ae   : > { %v7173_v48 = vpop.permute.xlu0 %1051 }
 0x1af   : > { %1450 = vrot.lane.b32.xlu1 %v7091_v22, %s6122_s19 }
 0x1b0   : > { %1334 = vrot.lane.b32.xlu0 %v7036_v4, %s6119_s16 }
 0x1b1   : > { %v1640_v39 = vpop.permute.xlu1 %1639 }
 0x1b2   : > { %v1638_v37 = vpop.permute.xlu0 %1637 }
 0x1b3   : > { %1448 = vrot.lane.b32.xlu1 %v859_v57, %s6122_s19  ;;  %v2457_v41 = vsel %vm2421_vm8, %v2360_v21, %v1638_v37  ;;  %v1962_v21 = vsel %vm1912_vm3, %v6711_v52, %v7173_v48 }
 0x1b4   : > { %1452 = vrot.lane.b32.xlu0 %v7180_v11, %s6122_s19 }
 0x1b5   : > { %v1636_v33 = vpop.permute.xlu1 %1635 }
 0x1b6   : > { %v7196_v50 = vpop.permute.xlu0 %1220 }
 0x1b7   : > { %1551 = vrot.lane.b32.xlu1 %v7194_v51, %s6123_s20  ;;  %v2073_v24 = vsel %vm2033_vm4, %v1962_v21, %v7196_v50 }
 0x1b8   : > { %1549 = vrot.lane.b32.xlu0 %v7101_v20, %s6123_s20 }
 0x1b9   : > { %v1754_v6 = vpop.permute.xlu1 %1753 }
 0x1ba   : > { %v1752_v57 = vpop.permute.xlu0 %1751 }
 0x1bb   : > { %1547 = vrot.lane.b32.xlu1 %v7114_v13, %s6123_s20  ;;  %v2554_v17 = vsel %vm2518_vm9, %v2457_v41, %v1752_v57 }
 0x1bc   : > { %1067 = vrot.lane.b32.xlu0 %v7091_v22, %s6121_s18  ;;  %v2071_v22 = vsel %vm2033_vm4, %v1959_v40, %v7124_v43  ;;  %v884_v43 = vor.u32 %v883_v62, %v879_v16  ;;  %v7281_v62 = vrot.slane %v7208_v35, 1 }
 0x1bd   : > { %v2168_v45 = vsel %vm2130_vm5, %v2071_v22, %v7138_v60  ;;  %v1750_v44 = vpop.permute.xlu1 %1749 }
 0x1be   : > { %v1325_v13 = vpop.permute.xlu0 %1324  ;;  %v2265_v56 = vsel %vm2227_vm6, %v2168_v45, %v1437_v36  ;;  %v7245_v36 = vrot.slane %v886_v26, 1 }
 0x1bf   : > { %1655 = vrot.lane.b32.xlu1 %v7190_v25, %s6124_s27  ;;  %v2362_v60 = vsel %vm2324_vm7, %v2265_v56, %v1536_v47  ;;  %v2261_v47 = vsel %vm2227_vm6, %v2164_v55, %v7161_v54  ;;  %v890_v55 = vshrl.u32 %v7208_v35, 16 }
 0x1c0   : > { %1653 = vrot.lane.b32.xlu0 %v7217_v59, %s6124_s27  ;;  %v2459_v9 = vsel %vm2421_vm8, %v2362_v60, %v1640_v39  ;;  %v2358_v10 = vsel %vm2324_vm7, %v2261_v47, %v1532_v8  ;;  %v7267_v39 = vsel %vm652_vm1, %v884_v43, %v7245_v36  ;;  %v2170_v43 = vsel %vm2130_vm5, %v2073_v24, %v1325_v13 }
 0x1c1   : > { %v2556_v30 = vsel %vm2518_vm9, %v2459_v9, %v1754_v6  ;;  %v1853_v34 = vpop.permute.xlu1 %1852  ;;  %v2455_v2 = vsel %vm2421_vm8, %v2358_v10, %v1636_v33  ;;  %v1155_v33 = vrot.slane %v7190_v25, 1 }
 0x1c2   : > { %v1851_v53 = vpop.permute.xlu0 %1850  ;;  %v2653_v37 = vsel %vm2615_vm10, %v2556_v30, %v1853_v34 }
 0x1c3   : > { %v2651_v61 = vsel %vm2615_vm10, %v2554_v17, %v1851_v53  ;;  %1651 = vrot.lane.b32.xlu1 %v7152_v38, %s6124_s27  ;;  %v2732_v57 = vsel %vm2712_vm11, %v2653_v37, 1065369472  ;;  %v1157_v5 = vsel %vm1109_vm0, %v1155_v33, %v7281_v62  ;;  %v7328_v53 = vcombine.low %v7199_v7, %v7199_v7 }
 0x1c4   : > { %1236 = vrot.lane.b32.xlu0 %v7101_v20, %s6120_s17  ;;  %v2731_v54 = vsel %vm2712_vm11, %v2651_v61, 1065369472  ;;  %v2552_v20 = vsel %vm2518_vm9, %v2455_v2, %v1750_v44  ;;  %v2838_v30 = vunpack.c.h.b16 %v2732_v57 }
 0x1c5   : > { %v1849_v29 = vpop.permute.xlu1 %1848  ;;  %v5499_v28 = vcombine.low %v2731_v54, %v2732_v57 }
 0x1c6   : > { %v1439_v6 = vpop.permute.xlu0 %1438  ;;  %v2649_v16 = vsel %vm2615_vm10, %v2552_v20, %v1849_v29 }
 0x1c7   : > { %1769 = vrot.lane.b32.xlu1 %v7267_v39, %s6125_s8  ;;  %v2730_v8 = vsel %vm2712_vm11, %v2649_v16, 1065369472  ;;  %v2267_v60 = vsel %vm2227_vm6, %v2170_v43, %v1439_v6  ;;  %v7368_v6 = vld [vmem:[%s6226_s15 + $0x100] sm:$0xff]   ;;  %v350_v16 = vld [vmem:[%s6226_s15 + $0x108] sm:$0xf] }
 0x1c8   : > { %1767 = vrot.lane.b32.xlu0 %v7262_v12, %s6125_s8  ;;  %5700 = vmatprep.mubr.msk.bf16.mxu0 %vm2919_vm2, %v2730_v8 }
 0x1c9   : > { %5701 = vmatmul.mubr.msk.bf16.gmra.mrb[24].mxu0 %vm2919_vm2, %v5499_v28  ;;  %v7285_v42 = vpop.permute.xlu1 %1053  ;;  %v351_v28 = vld [vmem:[%s6226_s15 + $0x10c] sm:$0x1] }
 0x1ca   : > { %v1538_v40 = vpop.permute.xlu0 %1537 }
 0x1cb   : > { %1765 = vrot.lane.b32.xlu1 %v7180_v11, %s6125_s8  ;;  %v2364_v18 = vsel %vm2324_vm7, %v2267_v60, %v1538_v40  ;;  %v896_v40 = vshll.u32 %v7368_v6, 16 }
 0x1cc   : > { %1340 = vrot.lane.b32.xlu0 %v7217_v59, %s6119_s16  ;;  %v7289_v26 = vpop.f32.mrb[4].mxu0 }
 0x1cd   : > { %v7293_v22 = vpop.f32.mrb[5].mxu0  ;;  %v7299_v44 = vpop.permute.xlu1 %1222 }
 0x1ce   : > { %v1642_v45 = vpop.permute.xlu0 %1641  ;;  %v7297_v58 = vpop.f32.mrb[6].mxu0 }
 0x1cf   : > { %v7301_v56 = vpop.f32.mrb[7].mxu0  ;;  %1868 = vrot.lane.b32.xlu1 %v1157_v5, %s6126_s11  ;;  %v2461_v52 = vsel %vm2421_vm8, %v2364_v18, %v1642_v45  ;;  %v1964_v45 = vsel %vm1912_vm3, %v6782_v63, %v7285_v42 }
 0x1d0   : > { %1866 = vrot.lane.b32.xlu0 %v7184_v3, %s6126_s11  ;;  %v2075_v43 = vsel %vm2033_vm4, %v1964_v45, %v7299_v44 }
 0x1d1   : > { %v1327_v41 = vpop.permute.xlu1 %1326 }
 0x1d2   : > { %v1756_v23 = vpop.permute.xlu0 %1755  ;;  %v2172_v18 = vsel %vm2130_vm5, %v2075_v43, %v1327_v41  ;;  %v355_v43 = vld [vmem:[%s6226_s15 + $0x11c] sm:$0x1] }
 0x1d3   : > { %1864 = vrot.lane.b32.xlu1 %v7194_v51, %s6126_s11  ;;  %v2558_v48 = vsel %vm2518_vm9, %v2461_v52, %v1756_v23  ;;  %v898_v23 = vrot.slane %v896_v40, 1 }
 0x1d4   : > { %1454 = vrot.lane.b32.xlu0 %v7262_v12, %s6122_s19 }
 0x1d5   : > { %v1441_v13 = vpop.permute.xlu1 %1440 }
 0x1d6   : > { %v1855_v9 = vpop.permute.xlu0 %1854  ;;  %v2269_v63 = vsel %vm2227_vm6, %v2172_v18, %v1441_v13  ;;  %v7436_v18 = vld [vmem:[%s6226_s15 + $0x110] sm:$0xff]  }
 0x1d7   : > { %v2655_v50 = vsel %vm2615_vm10, %v2558_v48, %v1855_v9  ;;  %1069 = vrot.lane.b32.xlu1 %v7180_v11, %s6121_s18  ;;  %v7340_v11 = vor.u32 %v890_v55, %v7245_v36 }
 0x1d8   : > { %v2733_v17 = vsel %vm2712_vm11, %v2655_v50, 1065369472  ;;  %1553 = vrot.lane.b32.xlu0 %v7184_v3, %s6123_s20 }
 0x1d9   : > { %v2839_v61 = vunpack.c.l.b16 %v2733_v17  ;;  %v7333_v37 = vpop.permute.xlu1 %1059 }
 0x1da   : > { %v7331_v34 = vpop.permute.xlu0 %1057 }
 0x1db   : > { %v2897_v47 = vpack.c.b16 %v2839_v61, %v2838_v30  ;;  %1238 = vrot.lane.b32.xlu1 %v7194_v51, %s6120_s17 }
 0x1dc   : > { %1657 = vrot.lane.b32.xlu0 %v7328_v53, %s6124_s27 }
 0x1dd   : > { %5704 = vmatprep.mubr.msk.bf16.mxu0 %vm2919_vm2, %v2897_v47  ;;  %v7343_v35 = vpop.permute.xlu1 %1055 }
 0x1de   : > { %v1540_v7 = vpop.permute.xlu0 %1539 }
 0x1df   : > { %1342 = vrot.lane.b32.xlu1 %v7190_v25, %s6119_s16  ;;  %v2366_v48 = vsel %vm2324_vm7, %v2269_v63, %v1540_v7  ;;  %v1969_v63 = vsel %vm1912_vm3, %v6817_v19, %v7331_v34  ;;  %v909_v19 = vshrl.u32 %v7436_v18, 16  ;;  %v1967_v34 = vsel %vm1912_vm3, %v6851_v49, %v7343_v35 }
 0x1e0   : > { %1771 = vrot.lane.b32.xlu0 %v7340_v11, %s6125_s8 }
 0x1e1   : > { %v7351_v51 = vpop.permute.xlu1 %1228 }
 0x1e2   : > { %v7349_v10 = vpop.permute.xlu0 %1226 }
 0x1e3   : > { %1456 = vrot.lane.b32.xlu1 %v7267_v39, %s6122_s19 }
 0x1e4   : > { %1870 = vrot.lane.b32.xlu0 %v7281_v62, %s6126_s11 }
 0x1e5   : > { %v7357_v2 = vpop.permute.xlu1 %1224 }
 0x1e6   : > { %v1644_v36 = vpop.permute.xlu0 %1643 }
 0x1e7   : > { %1075 = vrot.lane.b32.xlu1 %v7340_v11, %s6121_s18  ;;  %v2463_v44 = vsel %vm2421_vm8, %v2366_v48, %v1644_v36  ;;  %v911_v48 = vshll.u32 %v7436_v18, 16 }
 0x1e8   : > { %1073 = vrot.lane.b32.xlu0 %v7267_v39, %s6121_s18  ;;  %v7361_v54 = vpop.f32.mrb[8].mxu0  ;;  %v5481_v39 = vcombine.low %v350_v16, %v351_v28 }
 0x1e9   : > { %8642 = vst [vmem:[#allocation5_spill] sm:$0xff] %v7361_v54  ;;  %v7365_v57 = vpop.f32.mrb[9].mxu0  ;;  %v7376_v8 = vpop.permute.xlu1 %1332 }
 0x1ea   : > { %v7370_v20 = vpop.permute.xlu0 %1330  ;;  %v7372_v29 = vpop.f32.mrb[10].mxu0  ;;  %v901_v60 = vshll.u32 %v5481_v39, 16  ;;  %v7423_v28 = vrot.slane %v5481_v39, 1 }
 0x1eb   : > { %8643 = vst [vmem:[#allocation6_spill] sm:$0xff] %v7372_v29  ;;  %v7378_v33 = vpop.f32.mrb[11].mxu0  ;;  %1071 = vrot.lane.b32.xlu1 %v7262_v12, %s6121_s18  ;;  %v894_v12 = vshrl.u32 %v7368_v6, 16 }
 0x1ec   : > { %1555 = vrot.lane.b32.xlu0 %v1157_v5, %s6123_s20  ;;  %v903_v50 = vrot.slane %v901_v60, 1 }
 0x1ed   : > { %v7387_v24 = vpop.permute.xlu1 %1328  ;;  %v899_v9 = vor.u32 %v898_v23, %v894_v12 }
 0x1ee   : > { %v1758_v21 = vpop.permute.xlu0 %1757 }
 0x1ef   : > { %1244 = vrot.lane.b32.xlu1 %v7281_v62, %s6120_s17  ;;  %v2560_v41 = vsel %vm2518_vm9, %v2463_v44, %v1758_v21  ;;  %v7414_v61 = vsel %vm652_vm1, %v899_v9, %v903_v50  ;;  %v354_v21 = vld [vmem:[%s6226_s15 + $0x118] sm:$0xf]  ;;  %v2079_v44 = vsel %vm2033_vm4, %v1969_v63, %v7349_v10 }
 0x1f0   : > { %1242 = vrot.lane.b32.xlu0 %v1157_v5, %s6120_s17  ;;  %v7402_v5 = vcombine.low %v350_v16, %v350_v16  ;;  %v1158_v16 = vrot.slane %v7368_v6, 1 }
 0x1f1   : > { %v1447_v42 = vpop.permute.xlu1 %1446 }
 0x1f2   : > { %v1445_v52 = vpop.permute.xlu0 %1444  ;;  %v7433_v12 = vsel %vm1109_vm0, %v1158_v16, %v7423_v28  ;;  %v7470_v16 = vcombine.low %v354_v21, %v354_v21 }
 0x1f3   : > { %1240 = vrot.lane.b32.xlu1 %v7184_v3, %s6120_s17  ;;  %v905_v3 = vshrl.u32 %v5481_v39, 16  ;;  %v5482_v39 = vcombine.low %v354_v21, %v355_v43 }
 0x1f4   : > { %1659 = vrot.lane.b32.xlu0 %v7368_v6, %s6124_s27 }
 0x1f5   : > { %v1443_v55 = vpop.permute.xlu1 %1442  ;;  %v7420_v36 = vor.u32 %v905_v3, %v903_v50  ;;  %v2176_v50 = vsel %vm2130_vm5, %v2079_v44, %v7370_v20 }
 0x1f6   : > { %v1857_v17 = vpop.permute.xlu0 %1856 }
 0x1f7   : > { %v2657_v13 = vsel %vm2615_vm10, %v2560_v41, %v1857_v17  ;;  %1348 = vrot.lane.b32.xlu1 %v7402_v5, %s6119_s16  ;;  %v916_v17 = vshll.u32 %v5482_v39, 16 }
 0x1f8   : > { %v2734_v30 = vsel %vm2712_vm11, %v2657_v13, 1065369472  ;;  %1346 = vrot.lane.b32.xlu0 %v7368_v6, %s6119_s16  ;;  %v1972_v13 = vsel %vm1912_vm3, %v6940_v14, %v7333_v37  ;;  %v913_v14 = vrot.slane %v911_v48, 1  ;;  %v2077_v37 = vsel %vm2033_vm4, %v1967_v34, %v7357_v2 }
 0x1f9   : > { %5705 = vmatmul.mubr.msk.bf16.gmra.mrb[28].mxu0 %vm2919_vm2, %v2734_v30  ;;  %v1546_v7 = vpop.permute.xlu1 %1545  ;;  %v2081_v10 = vsel %vm2033_vm4, %v1972_v13, %v7351_v51  ;;  %v2174_v49 = vsel %vm2130_vm5, %v2077_v37, %v7387_v24  ;;  %v918_v43 = vrot.slane %v916_v17, 1 }
 0x1fa   : > { %v1544_v47 = vpop.permute.xlu0 %1543  ;;  %v2271_v63 = vsel %vm2227_vm6, %v2174_v49, %v1443_v55  ;;  %v914_v21 = vor.u32 %v913_v14, %v909_v19 }
 0x1fb   : > { %1344 = vrot.lane.b32.xlu1 %v7328_v53, %s6119_s16 }
 0x1fc   : > { %1773 = vrot.lane.b32.xlu0 %v7414_v61, %s6125_s8 }
 0x1fd   : > { %v1648_v45 = vpop.permute.xlu1 %1647 }
 0x1fe   : > { %v1542_v40 = vpop.permute.xlu0 %1541 }
 0x1ff   : > { %1462 = vrot.lane.b32.xlu1 %v7420_v36, %s6122_s19  ;;  %v2368_v24 = vsel %vm2324_vm7, %v2271_v63, %v1542_v40 }
 0x200   : > { %1460 = vrot.lane.b32.xlu0 %v7414_v61, %s6122_s19 }
 0x201   : > { %v1646_v60 = vpop.permute.xlu1 %1645 }
 0x202   : > { %v1650_v23 = vpop.permute.xlu0 %1649  ;;  %v2465_v48 = vsel %vm2421_vm8, %v2368_v24, %v1646_v60  ;;  %v359_v24 = vld [vmem:[%s6226_s15 + $0x12c] sm:$0x1] }
 0x203   : > { %1458 = vrot.lane.b32.xlu1 %v7340_v11, %s6122_s19  ;;  %v2273_v11 = vsel %vm2227_vm6, %v2176_v50, %v1445_v52  ;;  %v2178_v52 = vsel %vm2130_vm5, %v2081_v10, %v7376_v8  ;;  %v1161_v10 = vrot.slane %v7436_v18, 1 }
 0x204   : > { %1872 = vrot.lane.b32.xlu0 %v7433_v12, %s6126_s11  ;;  %v2370_v20 = vsel %vm2324_vm7, %v2273_v11, %v1544_v47  ;;  %v2275_v35 = vsel %vm2227_vm6, %v2178_v52, %v1447_v42  ;;  %v919_v11 = vsel %vm652_vm1, %v914_v21, %v918_v43  ;;  %v7550_v21 = vld [vmem:[%s6226_s15 + $0x120] sm:$0xff]  }
 0x205   : > { %v1764_v41 = vpop.permute.xlu1 %1763  ;;  %v2467_v30 = vsel %vm2421_vm8, %v2370_v20, %v1648_v45  ;;  %v2372_v2 = vsel %vm2324_vm7, %v2275_v35, %v1546_v7  ;;  %v920_v45 = vshrl.u32 %v5482_v39, 16  ;;  %v7503_v20 = vrot.slane %v5482_v39, 1 }
 0x206   : > { %v1762_v9 = vpop.permute.xlu0 %1761  ;;  %v2469_v42 = vsel %vm2421_vm8, %v2372_v2, %v1650_v23 }
 0x207   : > { %1561 = vrot.lane.b32.xlu1 %v7423_v28, %s6123_s20  ;;  %v2564_v51 = vsel %vm2518_vm9, %v2467_v30, %v1762_v9  ;;  %v2566_v55 = vsel %vm2518_vm9, %v2469_v42, %v1764_v41  ;;  %v7496_v40 = vor.u32 %v920_v45, %v918_v43  ;;  %v7516_v30 = vsel %vm1109_vm0, %v1161_v10, %v7503_v20  ;;  %v358_v45 = vld [vmem:[%s6226_s15 + $0x128] sm:$0xf] }
 0x208   : > { %1559 = vrot.lane.b32.xlu0 %v7433_v12, %s6123_s20  ;;  %v7613_v29 = vcombine.low %v358_v45, %v358_v45 }
 0x209   : > { %v1861_v47 = vpop.permute.xlu1 %1860 }
 0x20a   : > { %v1760_v3 = vpop.permute.xlu0 %1759  ;;  %v2661_v8 = vsel %vm2615_vm10, %v2564_v51, %v1861_v47 }
 0x20b   : > { %1663 = vrot.lane.b32.xlu1 %v7436_v18, %s6124_s27  ;;  %v2736_v7 = vsel %vm2712_vm11, %v2661_v8, 1065369472  ;;  %v2562_v9 = vsel %vm2518_vm9, %v2465_v48, %v1760_v3  ;;  %v7556_v48 = vcombine.low %v358_v45, %v359_v24 }
 0x20c   : > { %1557 = vrot.lane.b32.xlu0 %v7281_v62, %s6123_s20  ;;  %v2844_v23 = vunpack.c.h.b16 %v2736_v7 }
 0x20d   : > { %v1859_v50 = vpop.permute.xlu1 %1858 }
 0x20e   : > { %v1863_v44 = vpop.permute.xlu0 %1862  ;;  %v2659_v13 = vsel %vm2615_vm10, %v2562_v9, %v1859_v50 }
 0x20f   : > { %v2663_v62 = vsel %vm2615_vm10, %v2566_v55, %v1863_v44  ;;  %1661 = vrot.lane.b32.xlu1 %v7402_v5, %s6124_s27  ;;  %v2735_v41 = vsel %vm2712_vm11, %v2659_v13, 1065369472  ;;  %v924_v44 = vshrl.u32 %v7550_v21, 16 }
 0x210   : > { %v2737_v17 = vsel %vm2712_vm11, %v2663_v62, 1065369472  ;;  %1665 = vrot.lane.b32.xlu0 %v7470_v16, %s6124_s27  ;;  %v5500_v19 = vcombine.low %v2735_v41, %v2736_v7  ;;  %v1164_v41 = vrot.slane %v7550_v21, 1 }
 0x211   : > { %v2845_v60 = vunpack.c.l.b16 %v2737_v17  ;;  %v7505_v37 = vpop.permute.xlu1 %1065 }
 0x212   : > { %v7500_v34 = vpop.permute.xlu0 %1063  ;;  %5708 = vmatprep.mubr.msk.bf16.mxu0 %vm2919_vm2, %v5500_v19  ;;  %v7582_v19 = vrot.slane %v7556_v48, 1 }
 0x213   : > { %v2900_v14 = vpack.c.b16 %v2845_v60, %v2844_v23  ;;  %1779 = vrot.lane.b32.xlu1 %v7496_v40, %s6125_s8 }
 0x214   : > { %1777 = vrot.lane.b32.xlu0 %v919_v11, %s6125_s8 }
 0x215   : > { %5709 = vmatmul.mubr.msk.bf16.gmra.mrb[32].mxu0 %vm2919_vm2, %v2900_v14  ;;  %v7518_v39 = vpop.permute.xlu1 %1232  ;;  %v7588_v14 = vld [vmem:[%s6226_s15 + $0x130] sm:$0xff]  }
 0x216   : > { %v7512_v52 = vpop.permute.xlu0 %1061 }
 0x217   : > { %1876 = vrot.lane.b32.xlu1 %v7516_v30, %s6126_s11 }
 0x218   : > { %1775 = vrot.lane.b32.xlu0 %v7420_v36, %s6125_s8 }
 0x219   : > { %v7526_v49 = vpop.permute.xlu1 %1230 }
 0x21a   : > { %v7524_v3 = vpop.permute.xlu0 %1234 }
 0x21b   : > { %1874 = vrot.lane.b32.xlu1 %v7423_v28, %s6126_s11 }
 0x21c   : > { %1878 = vrot.lane.b32.xlu0 %v7503_v20, %s6126_s11  ;;  %v7532_v35 = vpop.f32.mrb[12].mxu0 }
 0x21d   : > { %8644 = vst [vmem:[#allocation7_spill] sm:$0xff] %v7532_v35  ;;  %v7534_v47 = vpop.f32.mrb[13].mxu0  ;;  %v7536_v43 = vpop.permute.xlu1 %1338 }
 0x21e   : > { %v1337_v51 = vpop.permute.xlu0 %1336  ;;  %8645 = vst [vmem:[#allocation8_spill] sm:$0xff] %v7534_v47  ;;  %v7538_v63 = vpop.f32.mrb[14].mxu0 }
 0x21f   : > { %8646 = vst [vmem:[#allocation9_spill] sm:$0xff] %v7538_v63  ;;  %v7542_v2 = vpop.f32.mrb[15].mxu0  ;;  %1081 = vrot.lane.b32.xlu1 %v919_v11, %s6121_s18 }
 0x220   : > { %1079 = vrot.lane.b32.xlu0 %v7420_v36, %s6121_s18  ;;  %8647 = vst [vmem:[#allocation10_spill] sm:$0xff] %v7542_v2  ;;  %v926_v36 = vshll.u32 %v7550_v21, 16  ;;  %v1979_v2 = vsel %vm1912_vm3, %v7036_v4, %v7505_v37 }
 0x221   : > { %v1451_v42 = vpop.permute.xlu1 %1450 }
 0x222   : > { %v7545_v8 = vpop.permute.xlu0 %1334  ;;  %v928_v9 = vrot.slane %v926_v36, 1  ;;  %v7594_v36 = vsel %vm1109_vm0, %v1164_v41, %v7582_v19  ;;  %v1977_v41 = vsel %vm1912_vm3, %v7002_v0, %v7500_v34  ;;  %v2087_v0 = vsel %vm2033_vm4, %v1979_v2, %v7524_v3 }
 0x223   : > { %1248 = vrot.lane.b32.xlu1 %v7423_v28, %s6120_s17  ;;  %v2085_v54 = vsel %vm2033_vm4, %v1977_v41, %v7518_v39  ;;  %v2184_v4 = vsel %vm2130_vm5, %v2087_v0, %v7536_v43  ;;  %v935_v3 = vshrl.u32 %v7556_v48, 16 }
 0x224   : > { %1077 = vrot.lane.b32.xlu0 %v7414_v61, %s6121_s18  ;;  %v931_v61 = vshll.u32 %v7556_v48, 16  ;;  %v929_v50 = vor.u32 %v928_v9, %v924_v44  ;;  %v7597_v9 = vld [vmem:[%s6226_s15 + $0x138] sm:$0xf] }
 0x225   : > { %v7559_v7 = vpop.permute.xlu1 %1448 }
 0x226   : > { %v1453_v55 = vpop.permute.xlu0 %1452  ;;  %v933_v17 = vrot.slane %v931_v61, 1  ;;  %v363_v61 = vld [vmem:[%s6226_s15 + $0x13c] sm:$0x1] }
 0x227   : > { %1246 = vrot.lane.b32.xlu1 %v7433_v12, %s6120_s17  ;;  %v7606_v63 = vcombine.low %v7597_v9, %v363_v61  ;;  %v939_v61 = vshrl.u32 %v7588_v14, 16  ;;  %v2281_v41 = vsel %vm2227_vm6, %v2184_v4, %v1453_v55  ;;  %v1167_v4 = vrot.slane %v7588_v14, 1 }
 0x228   : > { %1250 = vrot.lane.b32.xlu0 %v7516_v30, %s6120_s17  ;;  %v7578_v23 = vsel %vm652_vm1, %v929_v50, %v933_v17 }
 0x229   : > { %v1552_v28 = vpop.permute.xlu1 %1551  ;;  %v946_v45 = vshll.u32 %v7606_v63, 16 }
 0x22a   : > { %v1550_v62 = vpop.permute.xlu0 %1549 }
 0x22b   : > { %1354 = vrot.lane.b32.xlu1 %v7550_v21, %s6119_s16 }
 0x22c   : > { %1352 = vrot.lane.b32.xlu0 %v7470_v16, %s6119_s16 }
 0x22d   : > { %v1548_v12 = vpop.permute.xlu1 %1547 }
 0x22e   : > { %v7571_v13 = vpop.permute.xlu0 %1067 }
 0x22f   : > { %1466 = vrot.lane.b32.xlu1 %v7496_v40, %s6122_s19 }
 0x230   : > { %1350 = vrot.lane.b32.xlu0 %v7436_v18, %s6119_s16 }
 0x231   : > { %v1656_v10 = vpop.permute.xlu1 %1655 }
 0x232   : > { %v1654_v60 = vpop.permute.xlu0 %1653 }
 0x233   : > { %1464 = vrot.lane.b32.xlu1 %v919_v11, %s6122_s19  ;;  %v941_v11 = vshll.u32 %v7588_v14, 16 }
 0x234   : > { %1468 = vrot.lane.b32.xlu0 %v7578_v23, %s6122_s19 }
 0x235   : > { %v1652_v44 = vpop.permute.xlu1 %1651  ;;  %v943_v47 = vrot.slane %v941_v11, 1  ;;  %v7646_v11 = vrot.slane %v946_v45, 1 }
 0x236   : > { %v7590_v24 = vpop.permute.xlu0 %1236 }
 0x237   : > { %1567 = vrot.lane.b32.xlu1 %v7594_v36, %s6123_s20  ;;  %v944_v2 = vor.u32 %v943_v47, %v939_v61 }
 0x238   : > { %1565 = vrot.lane.b32.xlu0 %v7503_v20, %s6123_s20 }
 0x239   : > { %v1770_v35 = vpop.permute.xlu1 %1769 }
 0x23a   : > { %v1768_v50 = vpop.permute.xlu0 %1767 }
 0x23b   : > { %1563 = vrot.lane.b32.xlu1 %v7516_v30, %s6123_s20 }
 0x23c   : > { %1083 = vrot.lane.b32.xlu0 %v7496_v40, %s6121_s18  ;;  %v2182_v40 = vsel %vm2130_vm5, %v2085_v54, %v1337_v51  ;;  %v1974_v54 = vsel %vm1912_vm3, %v6974_v32, %v7512_v52  ;;  %v2378_v51 = vsel %vm2324_vm7, %v2281_v41, %v1552_v28 }
 0x23d   : > { %v2279_v37 = vsel %vm2227_vm6, %v2182_v40, %v1451_v42  ;;  %v1766_v39 = vpop.permute.xlu1 %1765  ;;  %v2083_v42 = vsel %vm2033_vm4, %v1974_v54, %v7526_v49  ;;  %v2475_v55 = vsel %vm2421_vm8, %v2378_v51, %v1656_v10  ;;  %v7657_v10 = vor.u32 %v935_v3, %v933_v17 }
 0x23e   : > { %v1341_v34 = vpop.permute.xlu0 %1340  ;;  %v2376_v30 = vsel %vm2324_vm7, %v2279_v37, %v1550_v62  ;;  %v2180_v32 = vsel %vm2130_vm5, %v2083_v42, %v7545_v8  ;;  %v2572_v52 = vsel %vm2518_vm9, %v2475_v55, %v1770_v35  ;;  %v7676_v37 = vrot.slane %v7606_v63, 1 }
 0x23f   : > { %v2473_v43 = vsel %vm2421_vm8, %v2376_v30, %v1654_v60  ;;  %1671 = vrot.lane.b32.xlu1 %v7588_v14, %s6124_s27  ;;  %v2277_v47 = vsel %vm2227_vm6, %v2180_v32, %v7559_v7  ;;  %v949_v7 = vsel %vm652_vm1, %v944_v2, %v7646_v11  ;;  %v1982_v42 = vsel %vm1912_vm3, %v7067_v15, %v7571_v13 }
 0x240   : > { %1669 = vrot.lane.b32.xlu0 %v7613_v29, %s6124_s27  ;;  %v2570_v62 = vsel %vm2518_vm9, %v2473_v43, %v1768_v50  ;;  %v2374_v50 = vsel %vm2324_vm7, %v2277_v47, %v1548_v12  ;;  %v1169_v51 = vsel %vm1109_vm0, %v1167_v4, %v7676_v37  ;;  %v2089_v55 = vsel %vm2033_vm4, %v1982_v42, %v7590_v24  ;;  %v366_v42 = vld [vmem:[%s6226_s15 + $0x148] sm:$0xf] }
 0x241   : > { %v1869_v60 = vpop.permute.xlu1 %1868  ;;  %v2471_v35 = vsel %vm2421_vm8, %v2374_v50, %v1652_v44  ;;  %v950_v50 = vshrl.u32 %v7606_v63, 16 }
 0x242   : > { %v1867_v48 = vpop.permute.xlu0 %1866  ;;  %v2669_v49 = vsel %vm2615_vm10, %v2572_v52, %v1869_v60  ;;  %v2568_v40 = vsel %vm2518_vm9, %v2471_v35, %v1766_v39 }
 0x243   : > { %v2667_v28 = vsel %vm2615_vm10, %v2570_v62, %v1867_v48  ;;  %1667 = vrot.lane.b32.xlu1 %v7550_v21, %s6124_s27  ;;  %v2740_v61 = vsel %vm2712_vm11, %v2669_v49, 1065369472  ;;  %v2186_v62 = vsel %vm2130_vm5, %v2089_v55, %v1341_v34  ;;  %v7718_v49 = vcombine.low %v7597_v9, %v7597_v9  ;;  %v367_v55 = vld [vmem:[%s6226_s15 + $0x14c] sm:$0x1] }
 0x244   : > { %1252 = vrot.lane.b32.xlu0 %v7503_v20, %s6120_s17  ;;  %v2739_v8 = vsel %vm2712_vm11, %v2667_v28, 1065369472  ;;  %v2850_v35 = vunpack.c.h.b16 %v2740_v61 }
 0x245   : > { %v1865_v20 = vpop.permute.xlu1 %1864  ;;  %v5501_v12 = vcombine.low %v2739_v8, %v2740_v61 }
 0x246   : > { %v1455_v0 = vpop.permute.xlu0 %1454  ;;  %v2665_v17 = vsel %vm2615_vm10, %v2568_v40, %v1865_v20 }
 0x247   : > { %v2738_v45 = vsel %vm2712_vm11, %v2665_v17, 1065369472  ;;  %1785 = vrot.lane.b32.xlu1 %v949_v7, %s6125_s8  ;;  %v2283_v32 = vsel %vm2227_vm6, %v2186_v62, %v1455_v0  ;;  %v7730_v17 = vor.u32 %v950_v50, %v7646_v11 }
 0x248   : > { %1783 = vrot.lane.b32.xlu0 %v7657_v10, %s6125_s8  ;;  %5712 = vmatprep.mubr.msk.bf16.mxu0 %vm2919_vm2, %v2738_v45 }
 0x249   : > { %5713 = vmatmul.mubr.msk.bf16.gmra.mrb[36].mxu0 %vm2919_vm2, %v5501_v12  ;;  %v7679_v39 = vpop.permute.xlu1 %1069 }
 0x24a   : > { %v1554_v44 = vpop.permute.xlu0 %1553 }
 0x24b   : > { %1781 = vrot.lane.b32.xlu1 %v7578_v23, %s6125_s8  ;;  %v2380_v28 = vsel %vm2324_vm7, %v2283_v32, %v1554_v44  ;;  %v7758_v44 = vld [vmem:[%s6226_s15 + $0x140] sm:$0xff]  }
 0x24c   : > { %1356 = vrot.lane.b32.xlu0 %v7613_v29, %s6119_s16  ;;  %v7683_v41 = vpop.f32.mrb[16].mxu0  ;;  %v956_v32 = vshll.u32 %v7758_v44, 16 }
 0x24d   : > { %8648 = vst [vmem:[#allocation11_spill] sm:$0xff] %v7683_v41  ;;  %v7687_v30 = vpop.f32.mrb[17].mxu0  ;;  %v1239_v43 = vpop.permute.xlu1 %1238 }
 0x24e   : > { %8649 = vst [vmem:[#allocation12_spill] sm:$0xff] %v7687_v30  ;;  %v1658_v3 = vpop.permute.xlu0 %1657  ;;  %v7689_v54 = vpop.f32.mrb[18].mxu0 }
 0x24f   : > { %8650 = vst [vmem:[#allocation13_spill] sm:$0xff] %v7689_v54  ;;  %v7693_v2 = vpop.f32.mrb[19].mxu0  ;;  %1884 = vrot.lane.b32.xlu1 %v1169_v51, %s6126_s11  ;;  %v2477_v15 = vsel %vm2421_vm8, %v2380_v28, %v1658_v3  ;;  %v1984_v28 = vsel %vm1912_vm3, %v7152_v38, %v7679_v39 }
 0x250   : > { %8651 = vst [vmem:[#allocation14_spill] sm:$0xff] %v7693_v2  ;;  %1882 = vrot.lane.b32.xlu0 %v7582_v19, %s6126_s11 }
 0x251   : > { %v1343_v52 = vpop.permute.xlu1 %1342 }
 0x252   : > { %v1772_v48 = vpop.permute.xlu0 %1771 }
 0x253   : > { %1880 = vrot.lane.b32.xlu1 %v7594_v36, %s6126_s11  ;;  %v2574_v13 = vsel %vm2518_vm9, %v2477_v15, %v1772_v48 }
 0x254   : > { %1470 = vrot.lane.b32.xlu0 %v7657_v10, %s6122_s19 }
 0x255   : > { %v1457_v34 = vpop.permute.xlu1 %1456 }
 0x256   : > { %v1871_v24 = vpop.permute.xlu0 %1870 }
 0x257   : > { %v2671_v60 = vsel %vm2615_vm10, %v2574_v13, %v1871_v24  ;;  %1085 = vrot.lane.b32.xlu1 %v7578_v23, %s6121_s18  ;;  %v2091_v24 = vsel %vm2033_vm4, %v1984_v28, %v1239_v43  ;;  %v7792_v43 = vcombine.low %v366_v42, %v366_v42 }
 0x258   : > { %v2741_v47 = vsel %vm2712_vm11, %v2671_v60, 1065369472  ;;  %1569 = vrot.lane.b32.xlu0 %v7582_v19, %s6123_s20  ;;  %v954_v60 = vshrl.u32 %v7758_v44, 16  ;;  %v2188_v50 = vsel %vm2130_vm5, %v2091_v24, %v1343_v52 }
 0x259   : > { %v2851_v8 = vunpack.c.l.b16 %v2741_v47  ;;  %v7725_v20 = vpop.permute.xlu1 %1075 }
 0x25a   : > { %v7723_v0 = vpop.permute.xlu0 %1073 }
 0x25b   : > { %v2903_v40 = vpack.c.b16 %v2851_v8, %v2850_v35  ;;  %1254 = vrot.lane.b32.xlu1 %v7594_v36, %s6120_s17  ;;  %v2285_v8 = vsel %vm2227_vm6, %v2188_v50, %v1457_v34 }
 0x25c   : > { %1673 = vrot.lane.b32.xlu0 %v7718_v49, %s6124_s27 }
 0x25d   : > { %5716 = vmatprep.mubr.msk.bf16.mxu0 %vm2919_vm2, %v2903_v40  ;;  %v7735_v9 = vpop.permute.xlu1 %1071 }
 0x25e   : > { %v1556_v63 = vpop.permute.xlu0 %1555 }
 0x25f   : > { %1358 = vrot.lane.b32.xlu1 %v7588_v14, %s6119_s16  ;;  %v2382_v39 = vsel %vm2324_vm7, %v2285_v8, %v1556_v63  ;;  %v370_v8 = vld [vmem:[%s6226_s15 + $0x158] sm:$0xf] }
 0x260   : > { %1787 = vrot.lane.b32.xlu0 %v7730_v17, %s6125_s8 }
 0x261   : > { %v7743_v11 = vpop.permute.xlu1 %1244 }
 0x262   : > { %v7741_v23 = vpop.permute.xlu0 %1242 }
 0x263   : > { %1472 = vrot.lane.b32.xlu1 %v949_v7, %s6122_s19 }
 0x264   : > { %1886 = vrot.lane.b32.xlu0 %v7676_v37, %s6126_s11 }
 0x265   : > { %v7748_v61 = vpop.permute.xlu1 %1240 }
 0x266   : > { %v1660_v36 = vpop.permute.xlu0 %1659 }
 0x267   : > { %1091 = vrot.lane.b32.xlu1 %v7730_v17, %s6121_s18 }
 0x268   : > { %1089 = vrot.lane.b32.xlu0 %v949_v7, %s6121_s18  ;;  %v7751_v12 = vpop.f32.mrb[20].mxu0  ;;  %v5485_v7 = vcombine.low %v366_v42, %v367_v55 }
 0x269   : > { %8652 = vst [vmem:[#allocation15_spill] sm:$0xff] %v7751_v12  ;;  %v7755_v45 = vpop.f32.mrb[21].mxu0  ;;  %v7766_v62 = vpop.permute.xlu1 %1348  ;;  %v1992_v12 = vsel %vm1912_vm3, %v7328_v53, %v7725_v20 }
 0x26a   : > { %8653 = vst [vmem:[#allocation16_spill] sm:$0xff] %v7755_v45  ;;  %v7760_v4 = vpop.permute.xlu0 %1346  ;;  %v7762_v3 = vpop.f32.mrb[22].mxu0  ;;  %v961_v47 = vshll.u32 %v5485_v7, 16 }
 0x26b   : > { %8654 = vst [vmem:[#allocation17_spill] sm:$0xff] %v7762_v3  ;;  %v7768_v48 = vpop.f32.mrb[23].mxu0  ;;  %1087 = vrot.lane.b32.xlu1 %v7657_v10, %s6121_s18  ;;  %v958_v10 = vrot.slane %v956_v32, 1 }
 0x26c   : > { %8655 = vst [vmem:[#allocation18_spill] sm:$0xff] %v7768_v48  ;;  %1571 = vrot.lane.b32.xlu0 %v1169_v51, %s6123_s20  ;;  %v963_v55 = vrot.slane %v961_v47, 1 }
 0x26d   : > { %v7777_v13 = vpop.permute.xlu1 %1344  ;;  %v959_v40 = vor.u32 %v958_v10, %v954_v60  ;;  %v1170_v60 = vrot.slane %v7758_v44, 1  ;;  %v7812_v10 = vrot.slane %v5485_v7, 1 }
 0x26e   : > { %v1774_v15 = vpop.permute.xlu0 %1773 }
 0x26f   : > { %1260 = vrot.lane.b32.xlu1 %v7676_v37, %s6120_s17 }
 0x270   : > { %1258 = vrot.lane.b32.xlu0 %v1169_v51, %s6120_s17  ;;  %v2479_v51 = vsel %vm2421_vm8, %v2382_v39, %v1660_v36  ;;  %v965_v36 = vshrl.u32 %v5485_v7, 16  ;;  %v371_v39 = vld [vmem:[%s6226_s15 + $0x15c] sm:$0x1] }
 0x271   : > { %v1463_v38 = vpop.permute.xlu1 %1462  ;;  %v2576_v52 = vsel %vm2518_vm9, %v2479_v51, %v1774_v15  ;;  %v7822_v51 = vsel %vm1109_vm0, %v1170_v60, %v7812_v10  ;;  %v5486_v7 = vcombine.low %v370_v8, %v371_v39 }
 0x272   : > { %v1461_v35 = vpop.permute.xlu0 %1460  ;;  %v7809_v24 = vor.u32 %v965_v36, %v963_v55 }
 0x273   : > { %1256 = vrot.lane.b32.xlu1 %v7582_v19, %s6120_s17  ;;  %v7803_v19 = vsel %vm652_vm1, %v959_v40, %v963_v55  ;;  %v976_v3 = vshll.u32 %v5486_v7, 16 }
 0x274   : > { %1675 = vrot.lane.b32.xlu0 %v7758_v44, %s6124_s27 }
 0x275   : > { %v1459_v28 = vpop.permute.xlu1 %1458 }
 0x276   : > { %v1873_v32 = vpop.permute.xlu0 %1872 }
 0x277   : > { %v2673_v34 = vsel %vm2615_vm10, %v2576_v52, %v1873_v32  ;;  %1364 = vrot.lane.b32.xlu1 %v7792_v43, %s6119_s16  ;;  %v7825_v52 = vld [vmem:[%s6226_s15 + $0x150] sm:$0xff]   ;;  %v1989_v32 = vsel %vm1912_vm3, %v7190_v25, %v7723_v0 }
 0x278   : > { %v2742_v63 = vsel %vm2712_vm11, %v2673_v34, 1065369472  ;;  %1362 = vrot.lane.b32.xlu0 %v7758_v44, %s6119_s16  ;;  %v971_v34 = vshll.u32 %v7825_v52, 16  ;;  %v969_v0 = vshrl.u32 %v7825_v52, 16 }
 0x279   : > { %5717 = vmatmul.mubr.msk.bf16.gmra.mrb[40].mxu0 %vm2919_vm2, %v2742_v63  ;;  %v1562_v15 = vpop.permute.xlu1 %1561  ;;  %v2095_v63 = vsel %vm2033_vm4, %v1989_v32, %v7741_v23  ;;  %v2097_v23 = vsel %vm2033_vm4, %v1992_v12, %v7743_v11 }
 0x27a   : > { %v1560_v42 = vpop.permute.xlu0 %1559  ;;  %v2192_v60 = vsel %vm2130_vm5, %v2095_v63, %v7760_v4  ;;  %v973_v53 = vrot.slane %v971_v34, 1 }
 0x27b   : > { %1360 = vrot.lane.b32.xlu1 %v7718_v49, %s6119_s16  ;;  %v2289_v25 = vsel %vm2227_vm6, %v2192_v60, %v1461_v35  ;;  %v2194_v35 = vsel %vm2130_vm5, %v2097_v23, %v7766_v62  ;;  %v7859_v60 = vcombine.low %v370_v8, %v370_v8 }
 0x27c   : > { %1789 = vrot.lane.b32.xlu0 %v7803_v19, %s6125_s8  ;;  %v2386_v4 = vsel %vm2324_vm7, %v2289_v25, %v1560_v42  ;;  %v978_v42 = vrot.slane %v976_v3, 1 }
 0x27d   : > { %v1664_v50 = vpop.permute.xlu1 %1663 }
 0x27e   : > { %v1558_v47 = vpop.permute.xlu0 %1557  ;;  %v2483_v32 = vsel %vm2421_vm8, %v2386_v4, %v1664_v50  ;;  %v980_v50 = vshrl.u32 %v5486_v7, 16 }
 0x27f   : > { %1478 = vrot.lane.b32.xlu1 %v7809_v24, %s6122_s19 }
 0x280   : > { %1476 = vrot.lane.b32.xlu0 %v7803_v19, %s6122_s19 }
 0x281   : > { %v1662_v55 = vpop.permute.xlu1 %1661 }
 0x282   : > { %v1666_v40 = vpop.permute.xlu0 %1665 }
 0x283   : > { %1474 = vrot.lane.b32.xlu1 %v7730_v17, %s6122_s19  ;;  %v1987_v17 = vsel %vm1912_vm3, %v7217_v59, %v7735_v9  ;;  %v2291_v9 = vsel %vm2227_vm6, %v2194_v35, %v1463_v38  ;;  %v974_v38 = vor.u32 %v973_v53, %v969_v0  ;;  %v7883_v0 = vor.u32 %v980_v50, %v978_v42 }
 0x284   : > { %1888 = vrot.lane.b32.xlu0 %v7822_v51, %s6126_s11  ;;  %v2093_v20 = vsel %vm2033_vm4, %v1987_v17, %v7748_v61  ;;  %v2388_v61 = vsel %vm2324_vm7, %v2291_v9, %v1562_v15  ;;  %v1173_v35 = vrot.slane %v7825_v52, 1 }
 0x285   : > { %v1780_v39 = vpop.permute.xlu1 %1779  ;;  %v2190_v59 = vsel %vm2130_vm5, %v2093_v20, %v7777_v13  ;;  %v2485_v13 = vsel %vm2421_vm8, %v2388_v61, %v1666_v40  ;;  %v979_v4 = vsel %vm652_vm1, %v974_v38, %v978_v42 }
 0x286   : > { %v1778_v36 = vpop.permute.xlu0 %1777  ;;  %v2287_v34 = vsel %vm2227_vm6, %v2190_v59, %v1459_v28  ;;  %v2582_v28 = vsel %vm2518_vm9, %v2485_v13, %v1780_v39 }
 0x287   : > { %1577 = vrot.lane.b32.xlu1 %v7812_v10, %s6123_s20  ;;  %v2580_v11 = vsel %vm2518_vm9, %v2483_v32, %v1778_v36  ;;  %v2384_v8 = vsel %vm2324_vm7, %v2287_v34, %v1558_v47  ;;  %v7892_v32 = vrot.slane %v5486_v7, 1 }
 0x288   : > { %1575 = vrot.lane.b32.xlu0 %v7822_v51, %s6123_s20  ;;  %v2481_v3 = vsel %vm2421_vm8, %v2384_v8, %v1662_v55 }
 0x289   : > { %v1877_v12 = vpop.permute.xlu1 %1876 }
 0x28a   : > { %v1776_v63 = vpop.permute.xlu0 %1775  ;;  %v2677_v62 = vsel %vm2615_vm10, %v2580_v11, %v1877_v12  ;;  %v7905_v11 = vsel %vm1109_vm0, %v1173_v35, %v7892_v32 }
 0x28b   : > { %1679 = vrot.lane.b32.xlu1 %v7825_v52, %s6124_s27  ;;  %v2744_v15 = vsel %vm2712_vm11, %v2677_v62, 1065369472  ;;  %v2578_v25 = vsel %vm2518_vm9, %v2481_v3, %v1776_v63  ;;  %v374_v3 = vld [vmem:[%s6226_s15 + $0x168] sm:$0xf] }
 0x28c   : > { %1573 = vrot.lane.b32.xlu0 %v7676_v37, %s6123_s20  ;;  %v2856_v55 = vunpack.c.h.b16 %v2744_v15  ;;  %v8002_v2 = vcombine.low %v374_v3, %v374_v3 }
 0x28d   : > { %v1875_v17 = vpop.permute.xlu1 %1874 }
 0x28e   : > { %v1879_v36 = vpop.permute.xlu0 %1878  ;;  %v2675_v40 = vsel %vm2615_vm10, %v2578_v25, %v1875_v17 }
 0x28f   : > { %v2679_v37 = vsel %vm2615_vm10, %v2582_v28, %v1879_v36  ;;  %v2743_v39 = vsel %vm2712_vm11, %v2675_v40, 1065369472  ;;  %1677 = vrot.lane.b32.xlu1 %v7792_v43, %s6124_s27  ;;  %v375_v28 = vld [vmem:[%s6226_s15 + $0x16c] sm:$0x1]  ;;  %v7939_v36 = vld [vmem:[%s6226_s15 + $0x160] sm:$0xff]  }
 0x290   : > { %v2745_v47 = vsel %vm2712_vm11, %v2679_v37, 1065369472  ;;  %1681 = vrot.lane.b32.xlu0 %v7859_v60, %s6124_s27  ;;  %v5502_v53 = vcombine.low %v2743_v39, %v2744_v15  ;;  %v7945_v25 = vcombine.low %v374_v3, %v375_v28  ;;  %v1176_v28 = vrot.slane %v7939_v36, 1 }
 0x291   : > { %v2857_v23 = vunpack.c.l.b16 %v2745_v47  ;;  %v7894_v59 = vpop.permute.xlu1 %1081  ;;  %v984_v47 = vshrl.u32 %v7939_v36, 16 }
 0x292   : > { %v7889_v20 = vpop.permute.xlu0 %1079  ;;  %5720 = vmatprep.mubr.msk.bf16.mxu0 %vm2919_vm2, %v5502_v53  ;;  %v1999_v54 = vsel %vm1912_vm3, %v7436_v18, %v7894_v59 }
 0x293   : > { %v2906_v63 = vpack.c.b16 %v2857_v23, %v2856_v55  ;;  %1795 = vrot.lane.b32.xlu1 %v7883_v0, %s6125_s8 }
 0x294   : > { %1793 = vrot.lane.b32.xlu0 %v979_v4, %s6125_s8 }
 0x295   : > { %5721 = vmatmul.mubr.msk.bf16.gmra.mrb[44].mxu0 %vm2919_vm2, %v2906_v63  ;;  %v7907_v7 = vpop.permute.xlu1 %1248 }
 0x296   : > { %v7901_v9 = vpop.permute.xlu0 %1077 }
 0x297   : > { %1892 = vrot.lane.b32.xlu1 %v7905_v11, %s6126_s11 }
 0x298   : > { %1791 = vrot.lane.b32.xlu0 %v7809_v24, %s6125_s8 }
 0x299   : > { %v7915_v42 = vpop.permute.xlu1 %1246 }
 0x29a   : > { %v7913_v12 = vpop.permute.xlu0 %1250 }
 0x29b   : > { %1890 = vrot.lane.b32.xlu1 %v7812_v10, %s6126_s11 }
 0x29c   : > { %1894 = vrot.lane.b32.xlu0 %v7892_v32, %s6126_s11  ;;  %v7921_v34 = vpop.f32.mrb[24].mxu0 }
 0x29d   : > { %8656 = vst [vmem:[#allocation19_spill] sm:$0xff] %v7921_v34  ;;  %v7923_v62 = vpop.f32.mrb[25].mxu0  ;;  %v7925_v50 = vpop.permute.xlu1 %1354  ;;  %v7986_v34 = vld [vmem:[%s6226_s15 + $0x178] sm:$0xf] }
 0x29e   : > { %v1353_v61 = vpop.permute.xlu0 %1352  ;;  %8657 = vst [vmem:[#allocation20_spill] sm:$0xff] %v7923_v62  ;;  %v7927_v8 = vpop.f32.mrb[26].mxu0 }
 0x29f   : > { %8658 = vst [vmem:[#allocation21_spill] sm:$0xff] %v7927_v8  ;;  %v7931_v13 = vpop.f32.mrb[27].mxu0  ;;  %1097 = vrot.lane.b32.xlu1 %v979_v4, %s6121_s18 }
 0x2a0   : > { %1095 = vrot.lane.b32.xlu0 %v7809_v24, %s6121_s18  ;;  %8659 = vst [vmem:[#allocation22_spill] sm:$0xff] %v7931_v13  ;;  %v986_v24 = vshll.u32 %v7939_v36, 16  ;;  %v379_v13 = vld [vmem:[%s6226_s15 + $0x17c] sm:$0x1] }
 0x2a1   : > { %v1467_v15 = vpop.permute.xlu1 %1466  ;;  %v7995_v48 = vcombine.low %v7986_v34, %v379_v13 }
 0x2a2   : > { %v7934_v38 = vpop.permute.xlu0 %1350  ;;  %v988_v40 = vrot.slane %v986_v24, 1  ;;  %v7971_v24 = vrot.slane %v7945_v25, 1 }
 0x2a3   : > { %1264 = vrot.lane.b32.xlu1 %v7812_v10, %s6120_s17  ;;  %v1006_v3 = vshll.u32 %v7995_v48, 16 }
 0x2a4   : > { %1093 = vrot.lane.b32.xlu0 %v7803_v19, %s6121_s18  ;;  %v991_v19 = vshll.u32 %v7945_v25, 16  ;;  %v989_v23 = vor.u32 %v988_v40, %v984_v47  ;;  %v7977_v40 = vld [vmem:[%s6226_s15 + $0x170] sm:$0xff]  }
 0x2a5   : > { %v7948_v17 = vpop.permute.xlu1 %1464  ;;  %v999_v13 = vshrl.u32 %v7977_v40, 16 }
 0x2a6   : > { %v1469_v37 = vpop.permute.xlu0 %1468  ;;  %v993_v39 = vrot.slane %v991_v19, 1 }
 0x2a7   : > { %1262 = vrot.lane.b32.xlu1 %v7822_v51, %s6120_s17 }
 0x2a8   : > { %1266 = vrot.lane.b32.xlu0 %v7905_v11, %s6120_s17  ;;  %v7967_v35 = vsel %vm652_vm1, %v989_v23, %v993_v39  ;;  %v7983_v23 = vsel %vm1109_vm0, %v1176_v28, %v7971_v24  ;;  %v1997_v28 = vsel %vm1912_vm3, %v7402_v5, %v7889_v20  ;;  %v2103_v5 = vsel %vm2033_vm4, %v1999_v54, %v7913_v12 }
 0x2a9   : > { %v1568_v10 = vpop.permute.xlu1 %1567  ;;  %v2101_v30 = vsel %vm2033_vm4, %v1997_v28, %v7907_v7  ;;  %v2200_v18 = vsel %vm2130_vm5, %v2103_v5, %v7925_v50  ;;  %v995_v54 = vshrl.u32 %v7945_v25, 16 }
 0x2aa   : > { %v1566_v55 = vpop.permute.xlu0 %1565  ;;  %v2297_v28 = vsel %vm2227_vm6, %v2200_v18, %v1469_v37  ;;  %v1179_v18 = vrot.slane %v7977_v40, 1 }
 0x2ab   : > { %1370 = vrot.lane.b32.xlu1 %v7939_v36, %s6119_s16  ;;  %v2394_v12 = vsel %vm2324_vm7, %v2297_v28, %v1568_v10 }
 0x2ac   : > { %1368 = vrot.lane.b32.xlu0 %v7859_v60, %s6119_s16 }
 0x2ad   : > { %v1564_v51 = vpop.permute.xlu1 %1563 }
 0x2ae   : > { %v7960_v53 = vpop.permute.xlu0 %1083 }
 0x2af   : > { %1482 = vrot.lane.b32.xlu1 %v7883_v0, %s6122_s19 }
 0x2b0   : > { %1366 = vrot.lane.b32.xlu0 %v7825_v52, %s6119_s16 }
 0x2b1   : > { %v1672_v47 = vpop.permute.xlu1 %1671 }
 0x2b2   : > { %v1670_v63 = vpop.permute.xlu0 %1669  ;;  %v2491_v37 = vsel %vm2421_vm8, %v2394_v12, %v1672_v47 }
 0x2b3   : > { %1480 = vrot.lane.b32.xlu1 %v979_v4, %s6122_s19  ;;  %v1001_v4 = vshll.u32 %v7977_v40, 16 }
 0x2b4   : > { %1484 = vrot.lane.b32.xlu0 %v7967_v35, %s6122_s19 }
 0x2b5   : > { %v1668_v8 = vpop.permute.xlu1 %1667  ;;  %v1003_v41 = vrot.slane %v1001_v4, 1  ;;  %v8035_v4 = vrot.slane %v1006_v3, 1 }
 0x2b6   : > { %v7979_v19 = vpop.permute.xlu0 %1252 }
 0x2b7   : > { %1583 = vrot.lane.b32.xlu1 %v7983_v23, %s6123_s20  ;;  %v1004_v50 = vor.u32 %v1003_v41, %v999_v13 }
 0x2b8   : > { %1581 = vrot.lane.b32.xlu0 %v7892_v32, %s6123_s20 }
 0x2b9   : > { %v1786_v45 = vpop.permute.xlu1 %1785 }
 0x2ba   : > { %v1784_v62 = vpop.permute.xlu0 %1783 }
 0x2bb   : > { %1579 = vrot.lane.b32.xlu1 %v7905_v11, %s6123_s20 }
 0x2bc   : > { %1099 = vrot.lane.b32.xlu0 %v7883_v0, %s6121_s18  ;;  %v2198_v0 = vsel %vm2130_vm5, %v2101_v30, %v1353_v61  ;;  %v1994_v30 = vsel %vm1912_vm3, %v7368_v6, %v7901_v9  ;;  %v2588_v9 = vsel %vm2518_vm9, %v2491_v37, %v1786_v45 }
 0x2bd   : > { %v2295_v59 = vsel %vm2227_vm6, %v2198_v0, %v1467_v15  ;;  %v1782_v7 = vpop.permute.xlu1 %1781  ;;  %v2099_v15 = vsel %vm2033_vm4, %v1994_v30, %v7915_v42 }
 0x2be   : > { %v1357_v20 = vpop.permute.xlu0 %1356  ;;  %v2392_v11 = vsel %vm2324_vm7, %v2295_v59, %v1566_v55  ;;  %v2196_v6 = vsel %vm2130_vm5, %v2099_v15, %v7934_v38  ;;  %v8065_v59 = vrot.slane %v7995_v48, 1  ;;  %v2002_v15 = vsel %vm1912_vm3, %v7470_v16, %v7960_v53 }
 0x2bf   : > { %v2489_v61 = vsel %vm2421_vm8, %v2392_v11, %v1670_v63  ;;  %1687 = vrot.lane.b32.xlu1 %v7977_v40, %s6124_s27  ;;  %v2293_v41 = vsel %vm2227_vm6, %v2196_v6, %v7948_v17  ;;  %v1009_v17 = vsel %vm652_vm1, %v1004_v50, %v8035_v4  ;;  %v2105_v37 = vsel %vm2033_vm4, %v2002_v15, %v7979_v19  ;;  %v382_v15 = vld [vmem:[%s6226_s15 + $0x188] sm:$0xf] }
 0x2c0   : > { %1685 = vrot.lane.b32.xlu0 %v8002_v2, %s6124_s27  ;;  %v2586_v55 = vsel %vm2518_vm9, %v2489_v61, %v1784_v62  ;;  %v8046_v62 = vor.u32 %v995_v54, %v993_v39  ;;  %v2390_v47 = vsel %vm2324_vm7, %v2293_v41, %v1564_v51  ;;  %v1181_v12 = vsel %vm1109_vm0, %v1179_v18, %v8065_v59 }
 0x2c1   : > { %v1885_v63 = vpop.permute.xlu1 %1884  ;;  %v2487_v45 = vsel %vm2421_vm8, %v2390_v47, %v1668_v8  ;;  %v1010_v47 = vshrl.u32 %v7995_v48, 16 }
 0x2c2   : > { %v1883_v25 = vpop.permute.xlu0 %1882  ;;  %v2685_v42 = vsel %vm2615_vm10, %v2588_v9, %v1885_v63  ;;  %v2584_v0 = vsel %vm2518_vm9, %v2487_v45, %v1782_v7 }
 0x2c3   : > { %v2683_v10 = vsel %vm2615_vm10, %v2586_v55, %v1883_v25  ;;  %1683 = vrot.lane.b32.xlu1 %v7939_v36, %s6124_s27  ;;  %v2748_v13 = vsel %vm2712_vm11, %v2685_v42, 1065369472  ;;  %v2202_v55 = vsel %vm2130_vm5, %v2105_v37, %v1357_v20  ;;  %v8107_v42 = vcombine.low %v7986_v34, %v7986_v34  ;;  %v383_v37 = vld [vmem:[%s6226_s15 + $0x18c] sm:$0x1] }
 0x2c4   : > { %1268 = vrot.lane.b32.xlu0 %v7892_v32, %s6120_s17  ;;  %v2747_v38 = vsel %vm2712_vm11, %v2683_v10, 1065369472  ;;  %v2862_v45 = vunpack.c.h.b16 %v2748_v13 }
 0x2c5   : > { %v1881_v32 = vpop.permute.xlu1 %1880  ;;  %v5503_v51 = vcombine.low %v2747_v38, %v2748_v13 }
 0x2c6   : > { %v1471_v5 = vpop.permute.xlu0 %1470  ;;  %v2681_v39 = vsel %vm2615_vm10, %v2584_v0, %v1881_v32 }
 0x2c7   : > { %v2746_v3 = vsel %vm2712_vm11, %v2681_v39, 1065369472  ;;  %1801 = vrot.lane.b32.xlu1 %v1009_v17, %s6125_s8  ;;  %v2299_v6 = vsel %vm2227_vm6, %v2202_v55, %v1471_v5  ;;  %v8119_v39 = vor.u32 %v1010_v47, %v8035_v4 }
 0x2c8   : > { %1799 = vrot.lane.b32.xlu0 %v8046_v62, %s6125_s8  ;;  %5724 = vmatprep.mubr.msk.bf16.mxu0 %vm2919_vm2, %v2746_v3 }
 0x2c9   : > { %5725 = vmatmul.mubr.msk.bf16.gmra.mrb[48].mxu0 %vm2919_vm2, %v5503_v51  ;;  %v8068_v7 = vpop.permute.xlu1 %1085 }
 0x2ca   : > { %v1570_v8 = vpop.permute.xlu0 %1569 }
 0x2cb   : > { %1797 = vrot.lane.b32.xlu1 %v7967_v35, %s6125_s8  ;;  %v2396_v10 = vsel %vm2324_vm7, %v2299_v6, %v1570_v8  ;;  %v6023_v8 = vld [vmem:[%s6226_s15 + $0x180] sm:$0xff]  }
 0x2cc   : > { %1372 = vrot.lane.b32.xlu0 %v8002_v2, %s6119_s16  ;;  %v8072_v28 = vpop.f32.mrb[28].mxu0  ;;  %v1388_v6 = vshll.u32 %v6023_v8, 16 }
 0x2cd   : > { %v8076_v11 = vpop.f32.mrb[29].mxu0  ;;  %v1255_v61 = vpop.permute.xlu1 %1254 }
 0x2ce   : > { %v1674_v54 = vpop.permute.xlu0 %1673  ;;  %v8078_v30 = vpop.f32.mrb[30].mxu0 }
 0x2cf   : > { %v8082_v50 = vpop.f32.mrb[31].mxu0  ;;  %1900 = vrot.lane.b32.xlu1 %v1181_v12, %s6126_s11  ;;  %v2493_v16 = vsel %vm2421_vm8, %v2396_v10, %v1674_v54  ;;  %v2004_v10 = vsel %vm1912_vm3, %v7550_v21, %v8068_v7 }
 0x2d0   : > { %1898 = vrot.lane.b32.xlu0 %v7971_v24, %s6126_s11 }
 0x2d1   : > { %v1359_v9 = vpop.permute.xlu1 %1358 }
 0x2d2   : > { %v1788_v25 = vpop.permute.xlu0 %1787 }
 0x2d3   : > { %1896 = vrot.lane.b32.xlu1 %v7983_v23, %s6126_s11  ;;  %v2590_v53 = vsel %vm2518_vm9, %v2493_v16, %v1788_v25 }
 0x2d4   : > { %1486 = vrot.lane.b32.xlu0 %v8046_v62, %s6122_s19 }
 0x2d5   : > { %v1473_v20 = vpop.permute.xlu1 %1472 }
 0x2d6   : > { %v1887_v19 = vpop.permute.xlu0 %1886 }
 0x2d7   : > { %v2687_v63 = vsel %vm2615_vm10, %v2590_v53, %v1887_v19  ;;  %1101 = vrot.lane.b32.xlu1 %v7967_v35, %s6121_s18  ;;  %v2107_v19 = vsel %vm2033_vm4, %v2004_v10, %v1255_v61 }
 0x2d8   : > { %v2749_v41 = vsel %vm2712_vm11, %v2687_v63, 1065369472  ;;  %1585 = vrot.lane.b32.xlu0 %v7971_v24, %s6123_s20  ;;  %v1386_v63 = vshrl.u32 %v6023_v8, 16 }
 0x2d9   : > { %v2863_v38 = vunpack.c.l.b16 %v2749_v41  ;;  %v8114_v32 = vpop.permute.xlu1 %1091  ;;  %v1390_v41 = vrot.slane %v1388_v6, 1 }
 0x2da   : > { %v8112_v5 = vpop.permute.xlu0 %1089 }
 0x2db   : > { %v2909_v0 = vpack.c.b16 %v2863_v38, %v2862_v45  ;;  %1270 = vrot.lane.b32.xlu1 %v7983_v23, %s6120_s17  ;;  %v1391_v61 = vor.u32 %v1390_v41, %v1386_v63  ;;  %v1496_v63 = vrot.slane %v6023_v8, 1 }
 0x2dc   : > { %1689 = vrot.lane.b32.xlu0 %v8107_v42, %s6124_s27 }
 0x2dd   : > { %5728 = vmatprep.mubr.msk.bf16.mxu0 %vm2919_vm2, %v2909_v0  ;;  %v8124_v34 = vpop.permute.xlu1 %1087 }
 0x2de   : > { %v1572_v48 = vpop.permute.xlu0 %1571 }
 0x2df   : > { %1374 = vrot.lane.b32.xlu1 %v7977_v40, %s6119_s16 }
 0x2e0   : > { %1803 = vrot.lane.b32.xlu0 %v8119_v39, %s6125_s8 }
 0x2e1   : > { %v8132_v4 = vpop.permute.xlu1 %1260 }
 0x2e2   : > { %v8130_v35 = vpop.permute.xlu0 %1258 }
 0x2e3   : > { %1488 = vrot.lane.b32.xlu1 %v1009_v17, %s6122_s19 }
 0x2e4   : > { %1902 = vrot.lane.b32.xlu0 %v8065_v59, %s6126_s11 }
 0x2e5   : > { %v8137_v13 = vpop.permute.xlu1 %1256 }
 0x2e6   : > { %v1676_v23 = vpop.permute.xlu0 %1675 }
 0x2e7   : > { %1107 = vrot.lane.b32.xlu1 %v8119_v39, %s6121_s18 }
 0x2e8   : > { %1105 = vrot.lane.b32.xlu0 %v1009_v17, %s6121_s18  ;;  %v8140_v51 = vpop.f32.mrb[32].mxu0  ;;  %v5491_v17 = vcombine.low %v382_v15, %v383_v37 }
 0x2e9   : > { %v8144_v3 = vpop.f32.mrb[33].mxu0  ;;  %v8153_v55 = vpop.permute.xlu1 %1364 }
 0x2ea   : > { %v8147_v18 = vpop.permute.xlu0 %1362  ;;  %v8149_v54 = vpop.f32.mrb[34].mxu0  ;;  %v1393_v47 = vshll.u32 %v5491_v17, 16  ;;  %v8191_v41 = vrot.slane %v5491_v17, 1 }
 0x2eb   : > { %v8155_v25 = vpop.f32.mrb[35].mxu0  ;;  %1103 = vrot.lane.b32.xlu1 %v8046_v62, %s6121_s18  ;;  %v2204_v62 = vsel %vm2130_vm5, %v2107_v19, %v1359_v9 }
 0x2ec   : > { %1587 = vrot.lane.b32.xlu0 %v1181_v12, %s6123_s20  ;;  %v2301_v38 = vsel %vm2227_vm6, %v2204_v62, %v1473_v20  ;;  %v1395_v37 = vrot.slane %v1393_v47, 1 }
 0x2ed   : > { %v8163_v53 = vpop.permute.xlu1 %1360  ;;  %v2398_v21 = vsel %vm2324_vm7, %v2301_v38, %v1572_v48  ;;  %v1397_v48 = vshrl.u32 %v5491_v17, 16  ;;  %v386_v38 = vld [vmem:[%s6226_s15 + $0x198] sm:$0xf] }
 0x2ee   : > { %v1790_v16 = vpop.permute.xlu0 %1789  ;;  %v2495_v7 = vsel %vm2421_vm8, %v2398_v21, %v1676_v23  ;;  %v387_v21 = vld [vmem:[%s6226_s15 + $0x19c] sm:$0x1] }
 0x2ef   : > { %1276 = vrot.lane.b32.xlu1 %v8065_v59, %s6120_s17  ;;  %v2592_v6 = vsel %vm2518_vm9, %v2495_v7, %v1790_v16  ;;  %v8189_v16 = vor.u32 %v1397_v48, %v1395_v37  ;;  %v1498_v7 = vsel %vm1109_vm0, %v1496_v63, %v8191_v41 }
 0x2f0   : > { %1274 = vrot.lane.b32.xlu0 %v1181_v12, %s6120_s17  ;;  %v8176_v12 = vcombine.low %v382_v15, %v382_v15 }
 0x2f1   : > { %v1479_v0 = vpop.permute.xlu1 %1478 }
 0x2f2   : > { %v1477_v45 = vpop.permute.xlu0 %1476 }
 0x2f3   : > { %1272 = vrot.lane.b32.xlu1 %v7971_v24, %s6120_s17  ;;  %v1396_v24 = vsel %vm652_vm1, %v1391_v61, %v1395_v37  ;;  %v8203_v37 = vcombine.low %v386_v38, %v387_v21  ;;  %v2012_v21 = vsel %vm1912_vm3, %v7718_v49, %v8114_v32 }
 0x2f4   : > { %1691 = vrot.lane.b32.xlu0 %v6023_v8, %s6124_s27 }
 0x2f5   : > { %v1475_v20 = vpop.permute.xlu1 %1474  ;;  %v1710_v63 = vshll.u32 %v8203_v37, 16 }
 0x2f6   : > { %v1889_v9 = vpop.permute.xlu0 %1888 }
 0x2f7   : > { %v2689_v10 = vsel %vm2615_vm10, %v2592_v6, %v1889_v9  ;;  %1380 = vrot.lane.b32.xlu1 %v8176_v12, %s6119_s16  ;;  %v8201_v9 = vld [vmem:[%s6226_s15 + $0x190] sm:$0xff]   ;;  %s6129_s15 = smov [#allocation2]  }
 0x2f8   : > { %v2750_v19 = vsel %vm2712_vm11, %v2689_v10, 1065369472  ;;  %1378 = vrot.lane.b32.xlu0 %v6023_v8, %s6119_s16  ;;  %v2009_v8 = vsel %vm1912_vm3, %v7588_v14, %v8112_v5  ;;  %v1705_v17 = vshll.u32 %v8201_v9, 16  ;;  %v1703_v5 = vshrl.u32 %v8201_v9, 16 }
 0x2f9   : > { %5729 = vmatmul.mubr.msk.bf16.gmra.mrb[52].mxu0 %vm2919_vm2, %v2750_v19  ;;  %v1578_v15 = vpop.permute.xlu1 %1577  ;;  %v2111_v10 = vsel %vm2033_vm4, %v2009_v8, %v8130_v35  ;;  %v2113_v35 = vsel %vm2033_vm4, %v2012_v21, %v8132_v4 }
 0x2fa   : > { %v1576_v23 = vpop.permute.xlu0 %1575  ;;  %v1707_v8 = vrot.slane %v1705_v17, 1  ;;  %v2210_v32 = vsel %vm2130_vm5, %v2113_v35, %v8153_v55  ;;  %v1714_v55 = vshrl.u32 %v8203_v37, 16 }
 0x2fb   : > { %1376 = vrot.lane.b32.xlu1 %v8107_v42, %s6119_s16  ;;  %s6043_s16 = sshll.u32 %s6129_s15, 4  ;;  %s6044_s16 = int_to_ptr.vmem [resolvable:$false] %s6043_s16 }
 0x2fc   : > { %1805 = vrot.lane.b32.xlu0 %v1396_v24, %s6125_s8  ;;  %s6045_s18 = scalar_lea.vmem %s6044_s16, 2048 }
 0x2fd   : > { %v1680_v62 = vpop.permute.xlu1 %1679 }
 0x2fe   : > { %v1574_v47 = vpop.permute.xlu0 %1573 }
 0x2ff   : > { %1494 = vrot.lane.b32.xlu1 %v8189_v16, %s6122_s19 }
 0x300   : > { %1492 = vrot.lane.b32.xlu0 %v1396_v24, %s6122_s19  ;;  %v2208_v24 = vsel %vm2130_vm5, %v2111_v10, %v8147_v18  ;;  %v5493_v10 = vcombine.low %v386_v38, %v386_v38 }
 0x301   : > { %v1678_v6 = vpop.permute.xlu1 %1677  ;;  %v2305_v14 = vsel %vm2227_vm6, %v2208_v24, %v1477_v45  ;;  %v1712_v24 = vrot.slane %v1710_v63, 1 }
 0x302   : > { %v1682_v61 = vpop.permute.xlu0 %1681  ;;  %v2402_v18 = vsel %vm2324_vm7, %v2305_v14, %v1576_v23 }
 0x303   : > { %1490 = vrot.lane.b32.xlu1 %v8119_v39, %s6122_s19  ;;  %v2007_v39 = vsel %vm1912_vm3, %v7613_v29, %v8124_v34  ;;  %v2499_v45 = vsel %vm2421_vm8, %v2402_v18, %v1680_v62  ;;  %v2307_v34 = vsel %vm2227_vm6, %v2210_v32, %v1479_v0  ;;  %v1708_v0 = vor.u32 %v1707_v8, %v1703_v5 }
 0x304   : > { %1904 = vrot.lane.b32.xlu0 %v1498_v7, %s6126_s11  ;;  %v2109_v49 = vsel %vm2033_vm4, %v2007_v39, %v8137_v13  ;;  %v2404_v13 = vsel %vm2324_vm7, %v2307_v34, %v1578_v15  ;;  %v1716_v39 = vor.u32 %v1714_v55, %v1712_v24  ;;  %v1814_v32 = vrot.slane %v8203_v37, 1 }
 0x305   : > { %v1796_v48 = vpop.permute.xlu1 %1795  ;;  %v2206_v29 = vsel %vm2130_vm5, %v2109_v49, %v8163_v53  ;;  %v2501_v53 = vsel %vm2421_vm8, %v2404_v13, %v1682_v61  ;;  %v1813_v49 = vrot.slane %v8201_v9, 1 }
 0x306   : > { %v1794_v19 = vpop.permute.xlu0 %1793  ;;  %v2303_v17 = vsel %vm2227_vm6, %v2206_v29, %v1475_v20  ;;  %v2598_v20 = vsel %vm2518_vm9, %v2501_v53, %v1796_v48  ;;  %v1713_v48 = vsel %vm652_vm1, %v1708_v0, %v1712_v24  ;;  %vm4897_vm1 = vcmask 392192  }
 0x307   : > { %1593 = vrot.lane.b32.xlu1 %v8191_v41, %s6123_s20  ;;  %v2596_v4 = vsel %vm2518_vm9, %v2499_v45, %v1794_v19  ;;  %v2400_v62 = vsel %vm2324_vm7, %v2303_v17, %v1574_v47 }
 0x308   : > { %1591 = vrot.lane.b32.xlu0 %v1498_v7, %s6123_s20  ;;  %v2497_v38 = vsel %vm2421_vm8, %v2400_v62, %v1678_v6 }
 0x309   : > { %v1893_v23 = vpop.permute.xlu1 %1892 }
 0x30a   : > { %v1792_v7 = vpop.permute.xlu0 %1791  ;;  %v2693_v21 = vsel %vm2615_vm10, %v2596_v4, %v1893_v23 }
 0x30b   : > { %1695 = vrot.lane.b32.xlu1 %v8201_v9, %s6124_s27  ;;  %v2752_v15 = vsel %vm2712_vm11, %v2693_v21, 1065369472  ;;  %v2594_v63 = vsel %vm2518_vm9, %v2497_v38, %v1792_v7 }
 0x30c   : > { %1589 = vrot.lane.b32.xlu0 %v8065_v59, %s6123_s20  ;;  %v2868_v5 = vunpack.c.h.b16 %v2752_v15  ;;  %s269_s20 = sand.u32 1, %s6101_s22  }
 0x30d   : > { %v1891_v14 = vpop.permute.xlu1 %1890  ;;  %s8586_s24 = scalar_lea.sflag [#allocation3], %s269_s20 }
 0x30e   : > { %v1895_v19 = vpop.permute.xlu0 %1894  ;;  %v2691_v61 = vsel %vm2615_vm10, %v2594_v63, %v1891_v14 }
 0x30f   : > { %v2695_v59 = vsel %vm2615_vm10, %v2598_v20, %v1895_v19  ;;  %v2751_v6 = vsel %vm2712_vm11, %v2691_v61, 1065369472  ;;  %1693 = vrot.lane.b32.xlu1 %v8176_v12, %s6124_s27  ;;  %v1815_v12 = vsel %vm1109_vm0, %v1813_v49, %v1814_v32 }
 0x310   : > { %v2753_v47 = vsel %vm2712_vm11, %v2695_v59, 1065369472  ;;  %1697 = vrot.lane.b32.xlu0 %v5493_v10, %s6124_s27  ;;  %v5504_v18 = vcombine.low %v2751_v6, %v2752_v15  ;;  %s5415_s27 = sshll.u32 %s269_s20, 6 }
 0x311   : > { %v2869_v35 = vunpack.c.l.b16 %v2753_v47  ;;  %v1098_v7 = vpop.permute.xlu1 %1097  ;;  %s271_s28 = scalar_lea.vmem [#allocation2], %s5415_s27 }
 0x312   : > { %v1096_v8 = vpop.permute.xlu0 %1095  ;;  %5732 = vmatprep.mubr.msk.bf16.mxu0 %vm2919_vm2, %v5504_v18  ;;  %v2019_v61 = vsel %vm1912_vm3, %v7825_v52, %v1098_v7 }
 0x313   : > { %v2912_v45 = vpack.c.b16 %v2869_v35, %v2868_v5  ;;  %1811 = vrot.lane.b32.xlu1 %v1716_v39, %s6125_s8  ;;  %v2017_v47 = vsel %vm1912_vm3, %v7792_v43, %v1096_v8 }
 0x314   : > { %1809 = vrot.lane.b32.xlu0 %v1713_v48, %s6125_s8 }
 0x315   : > { %5733 = vmatmul.mubr.msk.bf16.gmra.mrb[56].mxu0 %vm2919_vm2, %v2912_v45  ;;  %v1265_v29 = vpop.permute.xlu1 %1264 }
 0x316   : > { %v1094_v10 = vpop.permute.xlu0 %1093  ;;  %v2117_v39 = vsel %vm2033_vm4, %v2017_v47, %v1265_v29 }
 0x317   : > { %1908 = vrot.lane.b32.xlu1 %v1815_v12, %s6126_s11  ;;  %v2014_v52 = vsel %vm1912_vm3, %v7758_v44, %v1094_v10 }
 0x318   : > { %1807 = vrot.lane.b32.xlu0 %v8189_v16, %s6125_s8  ;;  %s5321_s8 = sshll.u32 %s271_s28, 4  ;;  %s8582_s8 = int_to_ptr.vmem [resolvable:$true] %s5321_s8 }
 0x319   : > { %v1263_v37 = vpop.permute.xlu1 %1262  ;;  %s6039_s14 = scalar_lea.vmem %s8582_s8, 1024  ;;  %p6046_p1 = scmp.lt.s32.totalorder %s8582_s8, %s6044_s16 }
 0x31a   : > { %v1267_v9 = vpop.permute.xlu0 %1266  ;;  %v2115_v45 = vsel %vm2033_vm4, %v2014_v52, %v1263_v37  ;;  %p6040_p12 = scmp.ne.s32.totalorder %s8582_s8, %s6039_s14  ;;  %p6047_p2 = scmp.lt.s32.totalorder %s6045_s18, %s6039_s14 }
 0x31b   : > { %1906 = vrot.lane.b32.xlu1 %v8191_v41, %s6126_s11  ;;  %v2119_v5 = vsel %vm2033_vm4, %v2019_v61, %v1267_v9 }
 0x31c   : > { %1910 = vrot.lane.b32.xlu0 %v1814_v32, %s6126_s11  ;;  %v8275_v34 = vpop.f32.mrb[36].mxu0  ;;  %p6041_p13 = pnand %p6040_p12, %p6206_p4  ;;  %p6048_p3 = por %p6047_p2, %p6046_p1 }
 0x31d   : > { %v8277_v23 = vpop.f32.mrb[37].mxu0  ;;  %v1371_v24 = vpop.permute.xlu1 %1370 }
 0x31e   : > { %v1369_v4 = vpop.permute.xlu0 %1368  ;;  %v8279_v17 = vpop.f32.mrb[38].mxu0  ;;  %v2216_v48 = vsel %vm2130_vm5, %v2119_v5, %v1371_v24  ;;  %p6042_p0 = pneg %p6041_p13 }
 0x31f   : > { %v8281_v13 = vpop.f32.mrb[39].mxu0  ;;  %v2214_v35 = vsel %vm2130_vm5, %v2117_v39, %v1369_v4 }
 0x320   : > { %p6049_p5 = pnand %p6048_p3, %p6042_p0 }
 0x321   : > { %v1483_v21 = vpop.permute.xlu1 %1482 }
 0x322   : > { %v1367_v16 = vpop.permute.xlu0 %1366 }
 0x323   : > { %v2212_v29 = vsel %vm2130_vm5, %v2115_v45, %v1367_v16 }
 0x325   : > { %v1481_v62 = vpop.permute.xlu1 %1480 }
 0x326   : > { %v1485_v55 = vpop.permute.xlu0 %1484  ;;  %v2309_v10 = vsel %vm2227_vm6, %v2212_v29, %v1481_v62 }
 0x327   : > { %v2313_v49 = vsel %vm2227_vm6, %v2216_v48, %v1485_v55 }
 0x329   : > { %v1584_v0 = vpop.permute.xlu1 %1583 }
 0x32a   : > { %v1582_v53 = vpop.permute.xlu0 %1581  ;;  %v2410_v8 = vsel %vm2324_vm7, %v2313_v49, %v1584_v0  ;;  %v8661_v49 = vld [vmem:[#allocation5_spill] sm:$0xff] }
 0x32d   : > { %v1580_v20 = vpop.permute.xlu1 %1579 }
 0x32e   : > { %v1100_v38 = vpop.permute.xlu0 %1099  ;;  %v2406_v37 = vsel %vm2324_vm7, %v2309_v10, %v1580_v20 }
 0x331   : > { %v1688_v41 = vpop.permute.xlu1 %1687 }
 0x332   : > { %v1686_v15 = vpop.permute.xlu0 %1685 }
 0x335   : > { %v1684_v63 = vpop.permute.xlu1 %1683 }
 0x336   : > { %v1269_v19 = vpop.permute.xlu0 %1268 }
 0x339   : > { %v1802_v14 = vpop.permute.xlu1 %1801 }
 0x33a   : > { %v1800_v59 = vpop.permute.xlu0 %1799  ;;  %3352 = vxpose.xlu0.b32.start [1/3] (short) (narrow) %v7136_v46, 8  ;;  %v2311_v46 = vsel %vm2227_vm6, %v2214_v35, %v1483_v21  ;;  %v2503_v21 = vsel %vm2421_vm8, %v2406_v37, %v1684_v63  ;;  %v8660_v35 = vld [vmem:[#allocation8_spill] sm:$0xff] }
 0x33b   : > { %v2408_v43 = vsel %vm2324_vm7, %v2311_v46, %v1582_v53 }
 0x33c   : > { %v2505_v32 = vsel %vm2421_vm8, %v2408_v43, %v1686_v15 }
 0x33d   : > { %v1798_v18 = vpop.permute.xlu1 %1797  ;;  %v2602_v7 = vsel %vm2518_vm9, %v2505_v32, %v1800_v59 }
 0x33e   : > { %v1373_v6 = vpop.permute.xlu0 %1372  ;;  %3353 = vxpose.xlu0.b32.cont [2/3] (short) (narrow) %v7144_v27, 8  ;;  %v2507_v27 = vsel %vm2421_vm8, %v2410_v8, %v1688_v41  ;;  %v2600_v16 = vsel %vm2518_vm9, %v2503_v21, %v1798_v18  ;;  %v8663_v8 = vld [vmem:[#allocation6_spill] sm:$0xff] }
 0x33f   : > { %v2604_v9 = vsel %vm2518_vm9, %v2507_v27, %v1802_v14  ;;  %v8664_v27 = vld [vmem:[#allocation7_spill] sm:$0xff]  ;;  %v8669_v21 = vld [vmem:[#allocation14_spill] sm:$0xff] }
 0x341   : > { %v1901_v44 = vpop.permute.xlu1 %1900 }
 0x342   : > { %v1899_v12 = vpop.permute.xlu0 %1898  ;;  %3354 = vxpose.xlu0.b32.end [3/3] (short) (narrow) %v7132_v31, 8  ;;  %v2701_v24 = vsel %vm2615_vm10, %v2604_v9, %v1901_v44  ;;  %v8666_v9 = vld [vmem:[#allocation11_spill] sm:$0xff]  ;;  %v8667_v44 = vld [vmem:[#allocation12_spill] sm:$0xff] }
 0x343   : > { %v2699_v4 = vsel %vm2615_vm10, %v2602_v7, %v1899_v12  ;;  %v2756_v53 = vsel %vm2712_vm11, %v2701_v24, 1065369472  ;;  %v8665_v12 = vld [vmem:[#allocation9_spill] sm:$0xff] }
 0x344   : > { %v2755_v55 = vsel %vm2712_vm11, %v2699_v4, 1065369472  ;;  %3384 = vxpose.xlu1.b32.start [1/3] (short) (narrow) %v7140_v1, 8  ;;  %v2874_v43 = vunpack.c.h.b16 %v2756_v53  ;;  %v8668_v24 = vld [vmem:[#allocation13_spill] sm:$0xff] }
 0x345   : > { %v1897_v0 = vpop.permute.xlu1 %1896  ;;  %v5505_v15 = vcombine.low %v2755_v55, %v2756_v53  ;;  %v8670_v53 = vld [vmem:[#allocation16_spill] sm:$0xff] }
 0x346   : > { %v1487_v31 = vpop.permute.xlu0 %1486  ;;  %3416 = vxpose.xlu0.b32.start [1/3] (short) (narrow) %v7289_v26, 8  ;;  %v2697_v62 = vsel %vm2615_vm10, %v2600_v16, %v1897_v0 }
 0x347   : > { %v2754_v41 = vsel %vm2712_vm11, %v2697_v62, 1065369472  ;;  %v8671_v62 = vld [vmem:[#allocation18_spill] sm:$0xff] }
 0x348   : > { %3385 = vxpose.xlu1.b32.cont [2/3] (short) (narrow) %v7293_v22, 8  ;;  %5736 = vmatprep.mubr.msk.bf16.mxu0 %vm2919_vm2, %v2754_v41 }
 0x349   : > { %5737 = vmatmul.mubr.msk.bf16.gmra.mrb[60].mxu0 %vm2919_vm2, %v5505_v15  ;;  %v1102_v1 = vpop.permute.xlu1 %1101 }
 0x34a   : > { %v1586_v20 = vpop.permute.xlu0 %1585  ;;  %3417 = vxpose.xlu0.b32.cont [2/3] (short) (narrow) %v7297_v58, 8  ;;  %v2022_v58 = vsel %vm1912_vm3, %v7859_v60, %v1100_v38 }
 0x34b   : > { %v2121_v61 = vsel %vm2033_vm4, %v2022_v58, %v1269_v19  ;;  %v8662_v19 = vld [vmem:[#allocation10_spill] sm:$0xff] }
 0x34c   : > { %v8322_v63 = vpop.f32.mrb[40].mxu0  ;;  %3386 = vxpose.xlu1.b32.end [3/3] (short) (narrow) %v7301_v56, 8  ;;  %v2218_v39 = vsel %vm2130_vm5, %v2121_v61, %v1373_v6  ;;  %v2024_v61 = vsel %vm1912_vm3, %v7939_v36, %v1102_v1 }
 0x34d   : > { %v8324_v26 = vpop.f32.mrb[41].mxu0  ;;  %v1271_v22 = vpop.permute.xlu1 %1270  ;;  %v2315_v56 = vsel %vm2227_vm6, %v2218_v39, %v1487_v31  ;;  %v8673_v39 = vld [vmem:[#allocation15_spill] sm:$0xff] }
 0x34e   : > { %v1690_v59 = vpop.permute.xlu0 %1689  ;;  %v8327_v14 = vpop.f32.mrb[42].mxu0  ;;  %3418 = vxpose.xlu0.b32.end [3/3] (short) (narrow) %v7365_v57, 8  ;;  %v2412_v57 = vsel %vm2324_vm7, %v2315_v56, %v1586_v20  ;;  %v8672_v20 = vld [vmem:[#allocation20_spill] sm:$0xff]  ;;  %v8674_v56 = vld [vmem:[#allocation22_spill] sm:$0xff] }
 0x34f   : > { %v8330_v47 = vpop.f32.mrb[43].mxu0  ;;  %v2509_v46 = vsel %vm2421_vm8, %v2412_v57, %v1690_v59  ;;  %v2123_v57 = vsel %vm2033_vm4, %v2024_v61, %v1271_v22 }
 0x350   : > { %3448 = vxpose.xlu1.b32.start [1/3] (short) (narrow) %v7378_v33, 8 }
 0x351   : > { %v1375_v48 = vpop.permute.xlu1 %1374 }
 0x352   : > { %v1804_v5 = vpop.permute.xlu0 %1803  ;;  %3480 = vxpose.xlu0.b32.start [1/3] (short) (narrow) %v8660_v35, 8 }
 0x353   : > { %v2606_v18 = vsel %vm2518_vm9, %v2509_v46, %v1804_v5  ;;  %v2220_v46 = vsel %vm2130_vm5, %v2123_v57, %v1375_v48 }
 0x354   : > { %3449 = vxpose.xlu1.b32.cont [2/3] (short) (narrow) %v8661_v49, 8 }
 0x355   : > { %v1489_v33 = vpop.permute.xlu1 %1488 }
 0x356   : > { %v1903_v60 = vpop.permute.xlu0 %1902  ;;  %3481 = vxpose.xlu0.b32.cont [2/3] (short) (narrow) %v8662_v19, 8 }
 0x357   : > { %v2703_v38 = vsel %vm2615_vm10, %v2606_v18, %v1903_v60  ;;  %v8675_v18 = vld [vmem:[#allocation17_spill] sm:$0xff]  ;;  %v2317_v60 = vsel %vm2227_vm6, %v2220_v46, %v1489_v33 }
 0x358   : > { %v2757_v6 = vsel %vm2712_vm11, %v2703_v38, 1065369472  ;;  %3450 = vxpose.xlu1.b32.end [3/3] (short) (narrow) %v8663_v8, 8  ;;  %v8676_v38 = vld [vmem:[#allocation19_spill] sm:$0xff] }
 0x359   : > { %v2875_v52 = vunpack.c.l.b16 %v2757_v6  ;;  %v8348_v7 = vpop.permute.xlu1 %1107 }
 0x35a   : > { %v1106_v32 = vpop.permute.xlu0 %1105  ;;  %3482 = vxpose.xlu0.b32.end [3/3] (short) (narrow) %v8664_v27, 8 }
 0x35b   : > { %v2915_v45 = vpack.c.b16 %v2875_v52, %v2874_v43  ;;  %v8677_v43 = vld [vmem:[#allocation21_spill] sm:$0xff] }
 0x35c   : > { %3512 = vxpose.xlu1.b32.start [1/3] (short) (narrow) %v8665_v12, 8 }
 0x35d   : > { %5740 = vmatprep.mubr.msk.bf16.mxu0 %vm2919_vm2, %v2915_v45  ;;  %v1104_v4 = vpop.permute.xlu1 %1103 }
 0x35e   : > { %v1588_v29 = vpop.permute.xlu0 %1587  ;;  %3544 = vxpose.xlu0.b32.start [1/3] (short) (narrow) %v8666_v9, 8  ;;  %v2029_v9 = vsel %vm1912_vm3, %v7977_v40, %v1106_v32 }
 0x35f   : > { %v2414_v36 = vsel %vm2324_vm7, %v2317_v60, %v1588_v29 }
 0x360   : > { %3513 = vxpose.xlu1.b32.cont [2/3] (short) (narrow) %v8667_v44, 8  ;;  %v2027_v44 = vsel %vm1912_vm3, %v8002_v2, %v1104_v4 }
 0x361   : > { %v1277_v37 = vpop.permute.xlu1 %1276 }
 0x362   : > { %v1275_v10 = vpop.permute.xlu0 %1274  ;;  %3545 = vxpose.xlu0.b32.cont [2/3] (short) (narrow) %v8668_v24, 8 }
 0x364   : > { %3514 = vxpose.xlu1.b32.end [3/3] (short) (narrow) %v8669_v21, 8 }
 0x365   : > { %v1273_v31 = vpop.permute.xlu1 %1272 }
 0x366   : > { %v1692_v55 = vpop.permute.xlu0 %1691  ;;  %3546 = vxpose.xlu0.b32.end [3/3] (short) (narrow) %v8670_v53, 8 }
 0x367   : > { %v2511_v1 = vsel %vm2421_vm8, %v2414_v36, %v1692_v55 }
 0x368   : > { %v8357_v16 = vpop.f32.mrb[44].mxu0  ;;  %3576 = vxpose.xlu1.b32.start [1/3] (short) (narrow) %v8671_v62, 8 }
 0x369   : > { %v8359_v0 = vpop.f32.mrb[45].mxu0  ;;  %v1381_v59 = vpop.permute.xlu1 %1380 }
 0x36a   : > { %v1379_v15 = vpop.permute.xlu0 %1378  ;;  %v8362_v41 = vpop.f32.mrb[46].mxu0  ;;  %3608 = vxpose.xlu0.b32.start [1/3] (short) (narrow) %v8672_v20, 8 }
 0x36b   : > { %v8365_v58 = vpop.f32.mrb[47].mxu0 }
 0x36c   : > { %3577 = vxpose.xlu1.b32.cont [2/3] (short) (narrow) %v8673_v39, 8 }
 0x36d   : > { %v1377_v35 = vpop.permute.xlu1 %1376 }
 0x36e   : > { %v1806_v5 = vpop.permute.xlu0 %1805  ;;  %3609 = vxpose.xlu0.b32.cont [2/3] (short) (narrow) %v8674_v56, 8 }
 0x36f   : > { %v2608_v6 = vsel %vm2518_vm9, %v2511_v1, %v1806_v5  ;;  %v4124_v1 = vlaneseq }
 0x370   : > { %3578 = vxpose.xlu1.b32.end [3/3] (short) (narrow) %v8675_v18, 8 }
 0x371   : > { %v1495_v19 = vpop.permute.xlu1 %1494 }
 0x372   : > { %v1493_v49 = vpop.permute.xlu0 %1492  ;;  %3610 = vxpose.xlu0.b32.end [3/3] (short) (narrow) %v8676_v38, 8 }
 0x374   : > { %3640 = vxpose.xlu1.b32.start [1/3] (short) (narrow) %v8677_v43, 8 }
 0x375   : > { %v1491_v48 = vpop.permute.xlu1 %1490 }
 0x376   : > { %v1905_v52 = vpop.permute.xlu0 %1904  ;;  %3672 = vxpose.xlu0.b32.start [1/3] (short) (narrow) %v8072_v28, 8 }
 0x377   : > { %v2705_v22 = vsel %vm2615_vm10, %v2608_v6, %v1905_v52  ;;  %v6127_v6 = vmov 1983009808   ;;  %v4125_v52 = vshrl.u32 %v4124_v1, 7 }
 0x378   : > { %v2758_v8 = vsel %vm2712_vm11, %v2705_v22, 1065369472  ;;  %3641 = vxpose.xlu1.b32.cont [2/3] (short) (narrow) %v8076_v11, 8  ;;  %v2127_v11 = vsel %vm2033_vm4, %v2029_v9, %v1275_v10  ;;  %v4122_v43 = vunpack.c.l.s4 %v6127_v6 }
 0x379   : > { %5741 = vmatmul.mubr.msk.bf16.gmra.mrb[64].mxu0 %vm2919_vm2, %v2758_v8  ;;  %v1594_v45 = vpop.permute.xlu1 %1593 }
 0x37a   : > { %v1592_v33 = vpop.permute.xlu0 %1591  ;;  %3673 = vxpose.xlu0.b32.cont [2/3] (short) (narrow) %v8078_v30, 8  ;;  %v4123_v22 = vunpack.c.0.s8 %v4122_v43 }
 0x37c   : > { %3642 = vxpose.xlu1.b32.end [3/3] (short) (narrow) %v8082_v50, 8  ;;  %v2224_v50 = vsel %vm2130_vm5, %v2127_v11, %v1379_v15 }
 0x37d   : > { %v1696_v12 = vpop.permute.xlu1 %1695 }
 0x37e   : > { %v1590_v27 = vpop.permute.xlu0 %1589  ;;  %3674 = vxpose.xlu0.b32.end [3/3] (short) (narrow) %v8144_v3, 8 }
 0x380   : > { %3704 = vxpose.xlu1.b32.start [1/3] (short) (narrow) %v8155_v25, 8  ;;  %v2032_v25 = vsel %vm1912_vm3, %v8107_v42, %v8348_v7 }
 0x381   : > { %v1694_v29 = vpop.permute.xlu1 %1693  ;;  %v2129_v40 = vsel %vm2033_vm4, %v2032_v25, %v1277_v37 }
 0x382   : > { %v1698_v28 = vpop.permute.xlu0 %1697  ;;  %3736 = vxpose.xlu0.b32.start [1/3] (short) (narrow) %v8277_v23, 8  ;;  %v2321_v23 = vsel %vm2227_vm6, %v2224_v50, %v1493_v49  ;;  %v2226_v10 = vsel %vm2130_vm5, %v2129_v40, %v1381_v59 }
 0x383   : > { %v2418_v32 = vsel %vm2324_vm7, %v2321_v23, %v1592_v33  ;;  %v2323_v7 = vsel %vm2227_vm6, %v2226_v10, %v1495_v19  ;;  %v8436_v33 = vsub.s32 %v4123_v22, %v4125_v52 }
 0x384   : > { %3705 = vxpose.xlu1.b32.cont [2/3] (short) (narrow) %v8140_v51, 8  ;;  %v2125_v51 = vsel %vm2033_vm4, %v2027_v44, %v1273_v31  ;;  %v2420_v37 = vsel %vm2324_vm7, %v2323_v7, %v1594_v45 }
 0x385   : > { %v1812_v3 = vpop.permute.xlu1 %1811  ;;  %v2222_v42 = vsel %vm2130_vm5, %v2125_v51, %v1377_v35 }
 0x386   : > { %v1810_v30 = vpop.permute.xlu0 %1809  ;;  %3737 = vxpose.xlu0.b32.cont [2/3] (short) (narrow) %v8281_v13, 8  ;;  %v2515_v13 = vsel %vm2421_vm8, %v2418_v32, %v1696_v12  ;;  %v2319_v4 = vsel %vm2227_vm6, %v2222_v42, %v1491_v48 }
 0x387   : > { %v2612_v21 = vsel %vm2518_vm9, %v2515_v13, %v1810_v30  ;;  %v2416_v53 = vsel %vm2324_vm7, %v2319_v4, %v1590_v27  ;;  %v6128_v27 = vmov 1934713408  }
 0x388   : > { %3706 = vxpose.xlu1.b32.end [3/3] (short) (narrow) %v8149_v54, 8  ;;  %v2517_v54 = vsel %vm2421_vm8, %v2420_v37, %v1698_v28  ;;  %v2513_v31 = vsel %vm2421_vm8, %v2416_v53, %v1694_v29  ;;  %v4155_v12 = vunpack.c.l.s4 %v6128_v27 }
 0x389   : > { %v1909_v2 = vpop.permute.xlu1 %1908  ;;  %v2614_v62 = vsel %vm2518_vm9, %v2517_v54, %v1812_v3 }
 0x38a   : > { %v1808_v24 = vpop.permute.xlu0 %1807  ;;  %3738 = vxpose.xlu0.b32.end [3/3] (short) (narrow) %v8275_v34, 8  ;;  %v2709_v55 = vsel %vm2615_vm10, %v2612_v21, %v1909_v2  ;;  %v4156_v50 = vunpack.c.0.s8 %v4155_v12 }
 0x38b   : > { %v2760_v15 = vsel %vm2712_vm11, %v2709_v55, 1065369472  ;;  %v2610_v20 = vsel %vm2518_vm9, %v2513_v31, %v1808_v24 }
 0x38c   : > { %3768 = vxpose.xlu1.b32.start [1/3] (short) (narrow) %v8279_v17, 8  ;;  %v2880_v56 = vunpack.c.h.b16 %v2760_v15  ;;  %v8440_v44 = vsub.s32 %v4156_v50, %v4125_v52  ;;  %v6030_v50 = vld [vmem:[%s8635_s2 + $0x8] ss:$0 sps:$4 sm:$0xff]  }
 0x38d   : > { %v1907_v61 = vpop.permute.xlu1 %1906 }
 0x38e   : > { %v1911_v34 = vpop.permute.xlu0 %1910  ;;  %3800 = vxpose.xlu0.b32.start [1/3] (short) (narrow) %v8322_v63, 8  ;;  %v2707_v5 = vsel %vm2615_vm10, %v2610_v20, %v1907_v61 }
 0x38f   : > { %v2711_v59 = vsel %vm2615_vm10, %v2614_v62, %v1911_v34  ;;  %v2759_v57 = vsel %vm2712_vm11, %v2707_v5, 1065369472 }
 0x390   : > { %v2761_v39 = vsel %vm2712_vm11, %v2711_v59, 1065369472  ;;  %v5506_v46 = vcombine.low %v2759_v57, %v2760_v15  ;;  %3769 = vxpose.xlu1.b32.cont [2/3] (short) (narrow) %v8324_v26, 8 }
 0x391   : > { %v2881_v35 = vunpack.c.l.b16 %v2761_v39 }
 0x392   : > { %3801 = vxpose.xlu0.b32.cont [2/3] (short) (narrow) %v8327_v14, 8  ;;  %5744 = vmatprep.mubr.msk.bf16.mxu0 %vm2919_vm2, %v5506_v46 }
 0x393   : > { %v2918_v17 = vpack.c.b16 %v2881_v35, %v2880_v56 }
 0x394   : > { %3770 = vxpose.xlu1.b32.end [3/3] (short) (narrow) %v8330_v47, 8 }
 0x395   : > { %5745 = vmatmul.mubr.msk.bf16.gmra.mrb[68].mxu0 %vm2919_vm2, %v2918_v17 }
 0x396   : > { %3802 = vxpose.xlu0.b32.end [3/3] (short) (narrow) %v8359_v0, 8 }
 0x398   : > { %3832 = vxpose.xlu1.b32.start [1/3] (short) (narrow) %v8365_v58, 8 }
 0x39c   : > { %v5726_v63 = vpop.f32.mrb[48].mxu0  ;;  %3833 = vxpose.xlu1.b32.cont [2/3] (short) (narrow) %v8357_v16, 8 }
 0x39d   : > { %v3257_v18 = vpop.f32.mrb[49].mxu0 }
 0x39e   : > { %3864 = vxpose.xlu0.b32.start [1/3] (short) (narrow) %v3257_v18, 8  ;;  %v5727_v49 = vpop.f32.mrb[50].mxu0 }
 0x39f   : > { %v3260_v26 = vpop.f32.mrb[51].mxu0 }
 0x3a0   : > { %3834 = vxpose.xlu1.b32.end [3/3] (short) (narrow) %v8362_v41, 8 }
 0x3a2   : > { %3865 = vxpose.xlu0.b32.cont [2/3] (short) (narrow) %v3260_v26, 8 }
 0x3a4   : > { %3896 = vxpose.xlu1.b32.start [1/3] (short) (narrow) %v5727_v49, 8 }
 0x3a6   : > { %3866 = vxpose.xlu0.b32.end [3/3] (short) (narrow) %v5726_v63, 8 }
 0x3ba   : > { %v3368_v41 = vpop.trf.xlu0 }
 0x3c4   : > { %v3400_v36 = vpop.trf.xlu1 }
 0x3c6   : > { %v3432_v48 = vpop.trf.xlu0 }
 0x3c7   : > { %v4120_v45 = vcombine.low %v3368_v41, %v3432_v48 }
 0x3c9   : > { %v4127_v29 = vrot.slane %v4120_v45, %v8436_v33 }
 0x3cc   : > { %v5730_v14 = vpop.f32.mrb[52].mxu0 }
 0x3cd   : > { %3928 = vxpose.xlu0.b32.start [1/3] (short) (narrow) %v5730_v14, 8  ;;  %v3273_v60 = vpop.f32.mrb[53].mxu0 }
 0x3ce   : > { %v5731_v47 = vpop.f32.mrb[54].mxu0  ;;  %3897 = vxpose.xlu1.b32.cont [2/3] (short) (narrow) %v3273_v60, 8 }
 0x3cf   : > { %v3276_v0 = vpop.f32.mrb[55].mxu0 }
 0x3d0   : > { %v3464_v8 = vpop.trf.xlu1 }
 0x3d1   : > { %3929 = vxpose.xlu0.b32.cont [2/3] (short) (narrow) %v5731_v47, 8  ;;  %v4128_v28 = vcombine.low %v3400_v36, %v3464_v8 }
 0x3d2   : > { %3898 = vxpose.xlu1.b32.end [3/3] (short) (narrow) %v3276_v0, 8  ;;  %v3496_v11 = vpop.trf.xlu0 }
 0x3d3   : > { %v4135_v9 = vrot.slane %v4128_v28, %v8436_v33 }
 0x3d5   : > { %v4153_v3 = vcombine.high %v4127_v29, %v4135_v9  ;;  %v4152_v51 = vcombine.low %v4127_v29, %v4135_v9 }
 0x3d7   : > { %v8445_v7 = vrot.slane %v4153_v3, %v8440_v44  ;;  %v8448_v4 = vrot.slane %v4152_v51, %v8440_v44  ;;  %v4362_v3 = vsel %vm4360_vm12, %v6030_v50, 0 }
 0x3dc   : > { %v3528_v30 = vpop.trf.xlu1 }
 0x3de   : > { %v3560_v25 = vpop.trf.xlu0 }
 0x3df   : > { %v4136_v40 = vcombine.low %v3496_v11, %v3560_v25 }
 0x3e1   : > { %v4143_v10 = vrot.slane %v4136_v40, %v8436_v33 }
 0x3e8   : > { %v5734_v58 = vpop.f32.mrb[56].mxu0  ;;  %v3592_v23 = vpop.trf.xlu1 }
 0x3e9   : > { %v3289_v38 = vpop.f32.mrb[57].mxu0  ;;  %v4144_v32 = vcombine.low %v3528_v30, %v3592_v23  ;;  %v6029_v30 = vld [vmem:[%s8635_s2] sm:$0xff]  }
 0x3ea   : > { %3930 = vxpose.xlu0.b32.end [3/3] (short) (narrow) %v3289_v38, 8  ;;  %v5735_v16 = vpop.f32.mrb[58].mxu0  ;;  %v3624_v24 = vpop.trf.xlu0  ;;  %5748 = vmatprep.subr.bf16.mxu1 %v6029_v30 }
 0x3eb   : > { %v3292_v19 = vpop.f32.mrb[59].mxu0  ;;  %v4151_v13 = vrot.slane %v4144_v32, %v8436_v33  ;;  %5749 = vmatpush3.bf16.msra.mxu1 %v6029_v30 }
 0x3ec   : > { %3960 = vxpose.xlu1.b32.start [1/3] (short) (narrow) %v3292_v19, 8  ;;  %5837 = vmatprep.subr.msk.bf16.mxu1 %vm4360_vm12, %v6030_v50 }
 0x3ed   : > { %v4168_v21 = vcombine.low %v4143_v10, %v4151_v13  ;;  %v4169_v2 = vcombine.high %v4143_v10, %v4151_v13 }
 0x3ef   : > { %v8451_v37 = vrot.slane %v4169_v2, %v8440_v44  ;;  %v8454_v55 = vrot.slane %v4168_v21, %v8440_v44  ;;  %5751 = vmatpush3.bf16.msra.mxu1 %v4362_v3 }
 0x3f0   : > { %3961 = vxpose.xlu1.b32.cont [2/3] (short) (narrow) %v5734_v58, 8 }
 0x3f1   : > { %v4186_v31 = vcombine.low %v8445_v7, %v8451_v37  ;;  %v4187_v62 = vcombine.high %v8445_v7, %v8451_v37  ;;  %v4185_v20 = vcombine.high %v8448_v4, %v8454_v55  ;;  %v4184_v41 = vcombine.low %v8448_v4, %v8454_v55 }
 0x3f4   : > { %3962 = vxpose.xlu1.b32.end [3/3] (short) (narrow) %v5735_v16, 8  ;;  %v3656_v42 = vpop.trf.xlu1 }
 0x3f6   : > { %v3688_v53 = vpop.trf.xlu0 }
 0x3f7   : > { %v4188_v15 = vcombine.low %v3624_v24, %v3688_v53 }
 0x3f9   : > { %v4195_v59 = vrot.slane %v4188_v15, %v8436_v33 }
 0x400   : > { %v3720_v54 = vpop.trf.xlu1 }
 0x401   : > { %v4196_v34 = vcombine.low %v3656_v42, %v3720_v54 }
 0x402   : > { %v3752_v5 = vpop.trf.xlu0 }
 0x403   : > { %v4203_v61 = vrot.slane %v4196_v34, %v8436_v33 }
 0x405   : > { %v4221_v39 = vcombine.high %v4195_v59, %v4203_v61  ;;  %v4220_v17 = vcombine.low %v4195_v59, %v4203_v61 }
 0x407   : > { %v8467_v60 = vrot.slane %v4221_v39, %v8440_v44  ;;  %v8470_v58 = vrot.slane %v4220_v17, %v8440_v44 }
 0x40c   : > { %v3784_v56 = vpop.trf.xlu1 }
 0x40e   : > { %v3816_v35 = vpop.trf.xlu0 }
 0x40f   : > { %v4204_v57 = vcombine.low %v3752_v5, %v3816_v35 }
 0x411   : > { %v4211_v63 = vrot.slane %v4204_v57, %v8436_v33 }
 0x418   : > { %v3848_v46 = vpop.trf.xlu1 }
 0x419   : > { %v4212_v18 = vcombine.low %v3784_v56, %v3848_v46 }
 0x41b   : > { %v4219_v49 = vrot.slane %v4212_v18, %v8436_v33 }
 0x41c   : > { %v5738_v26 = vpop.f32.mrb[60].mxu0 }
 0x41d   : > { %v3305_v14 = vpop.f32.mrb[61].mxu0  ;;  %v4236_v47 = vcombine.low %v4211_v63, %v4219_v49  ;;  %v4237_v0 = vcombine.high %v4211_v63, %v4219_v49 }
 0x41e   : > { %3992 = vxpose.xlu0.b32.start [1/3] (short) (narrow) %v3305_v14, 8  ;;  %v5739_v38 = vpop.f32.mrb[62].mxu0  ;;  %v3880_v25 = vpop.trf.xlu0 }
 0x41f   : > { %4024 = vxpose.xlu1.b32.start [1/3] (short) (narrow) %v5739_v38, 8  ;;  %v3308_v16 = vpop.f32.mrb[63].mxu0  ;;  %v8473_v19 = vrot.slane %v4237_v0, %v8440_v44  ;;  %v4244_v36 = vrot.slane %v4236_v47, %v8440_v44 }
 0x421   : > { %v4254_v1 = vcombine.low %v8467_v60, %v8473_v19  ;;  %v4255_v6 = vcombine.high %v8467_v60, %v8473_v19  ;;  %v4252_v43 = vcombine.low %v8470_v58, %v4244_v36  ;;  %v4253_v52 = vcombine.high %v8470_v58, %v4244_v36 }
 0x422   : > { %3993 = vxpose.xlu0.b32.cont [2/3] (short) (narrow) %v3308_v16, 8 }
 0x423   : > { %v4324_v22 = vpack.c.bf16 %v4252_v43, %v4184_v41  ;;  %v4327_v45 = vpack.c.bf16 %v4254_v1, %v4186_v31  ;;  %v6033_v1 = vld [vmem:[%s8638_s5] sm:$0xff]  }
 0x425   : > { %5752 = vmatprep.mubr.msk.bf16.mxu1 %vm2421_vm8, %v4324_v22 }
 0x426   : > { %3994 = vxpose.xlu0.b32.end [3/3] (short) (narrow) %v5738_v26, 8 }
 0x44a   : > { %v3912_v23 = vpop.trf.xlu1 }
 0x44c   : > { %v5742_v48 = vpop.f32.mrb[64].mxu0 }
 0x44d   : > { %4056 = vxpose.xlu0.b32.start [1/3] (short) (narrow) %v5742_v48, 8  ;;  %v3321_v8 = vpop.f32.mrb[65].mxu0 }
 0x44e   : > { %4025 = vxpose.xlu1.b32.cont [2/3] (short) (narrow) %v3321_v8, 8  ;;  %v5743_v27 = vpop.f32.mrb[66].mxu0 }
 0x44f   : > { %v3324_v12 = vpop.f32.mrb[67].mxu0 }
 0x451   : > { %4057 = vxpose.xlu0.b32.cont [2/3] (short) (narrow) %v5743_v27, 8 }
 0x452   : > { %4026 = vxpose.xlu1.b32.end [3/3] (short) (narrow) %v3324_v12, 8 }
 0x462   : > { %v3944_v40 = vpop.trf.xlu0 }
 0x463   : > { %v4256_v13 = vcombine.low %v3880_v25, %v3944_v40 }
 0x465   : > { %v4263_v21 = vrot.slane %v4256_v13, %v8436_v33 }
 0x468   : > { %v5746_v28 = vpop.f32.mrb[68].mxu0 }
 0x469   : > { %v3337_v29 = vpop.f32.mrb[69].mxu0 }
 0x46a   : > { %4058 = vxpose.xlu0.b32.end [3/3] (short) (narrow) %v3337_v29, 8  ;;  %v5747_v9 = vpop.f32.mrb[70].mxu0 }
 0x46b   : > { %v3340_v11 = vpop.f32.mrb[71].mxu0 }
 0x46c   : > { %4088 = vxpose.xlu1.b32.start [1/3] (short) (narrow) %v3340_v11, 8  ;;  %v3976_v32 = vpop.trf.xlu1  ;;  %v6035_v11 = vld [vmem:[%s8638_s5 + $0x10] sm:$0xff]  }
 0x46d   : > { %v4264_v24 = vcombine.low %v3912_v23, %v3976_v32 }
 0x46f   : > { %v4271_v2 = vrot.slane %v4264_v24, %v8436_v33 }
 0x470   : > { %4089 = vxpose.xlu1.b32.cont [2/3] (short) (narrow) %v5746_v28, 8  ;;  %v6034_v28 = vld [vmem:[%s8638_s5 + $0x8] sm:$0xff]  }
 0x471   : > { %v4288_v15 = vcombine.low %v4263_v21, %v4271_v2  ;;  %v4289_v46 = vcombine.high %v4263_v21, %v4271_v2 }
 0x473   : > { %v4296_v39 = vrot.slane %v4288_v15, %v8440_v44 }
 0x474   : > { %4090 = vxpose.xlu1.b32.end [3/3] (short) (narrow) %v5747_v9, 8 }
 0x49e   : > { %v4008_v51 = vpop.trf.xlu0 }
 0x4ca   : > { %v4040_v10 = vpop.trf.xlu1 }
 0x4e2   : > { %v4072_v42 = vpop.trf.xlu0 }
 0x4e3   : > { %v4272_v53 = vcombine.low %v4008_v51, %v4072_v42 }
 0x4e5   : > { %v4279_v34 = vrot.slane %v4272_v53, %v8436_v33 }
 0x4ec   : > { %v4104_v54 = vpop.trf.xlu1 }
 0x4ed   : > { %v4280_v31 = vcombine.low %v4040_v10, %v4104_v54 }
 0x4ef   : > { %v4287_v59 = vrot.slane %v4280_v31, %v8436_v33  ;;  %v4303_v33 = vrot.slane %v4289_v46, %v8440_v44 }
 0x4f1   : > { %v4304_v61 = vcombine.low %v4279_v34, %v4287_v59  ;;  %v4305_v56 = vcombine.high %v4279_v34, %v4287_v59 }
 0x4f3   : > { %v4312_v5 = vrot.slane %v4304_v61, %v8440_v44  ;;  %v4319_v18 = vrot.slane %v4305_v56, %v8440_v44  ;;  %v6031_v44 = vld [vmem:[%s8636_s3] sm:$0xff]  }
 0x4f4   : > { %5764 = vmatprep.subr.bf16.mxu1 %v6031_v44 }
 0x4f5   : > { %v4320_v35 = vcombine.low %v4296_v39, %v4312_v5  ;;  %v4321_v57 = vcombine.high %v4296_v39, %v4312_v5  ;;  %v4322_v49 = vcombine.low %v4303_v33, %v4319_v18  ;;  %v4323_v4 = vcombine.high %v4303_v33, %v4319_v18 }
 0x4f7   : > { %v4325_v17 = vpack.c.bf16 %v4185_v20, %v4320_v35  ;;  %v4326_v63 = vpack.c.bf16 %v4321_v57, %v4253_v52  ;;  %v4328_v26 = vpack.c.bf16 %v4187_v62, %v4322_v49  ;;  %v4329_v55 = vpack.c.bf16 %v4323_v4, %v4255_v6  ;;  %v6032_v62 = vld [vmem:[%s8636_s3 + $0x8] ss:$0 sps:$4 sm:$0xff]  }
 0x4f8   : > { %v4634_v60 = vsel %vm4360_vm12, %v6032_v62, 0 }
 0x4f9   : > { %5753 = vmatmul.mubr.msk.bf16.vlgmr.msra.gmra.mrb[0].mxu1 %vm2421_vm8, %v4325_v17 }
 0x4fa   : > { %5756 = vmatprep.mubr.msk.bf16.mxu1 %vm2421_vm8, %v4326_v63  ;;  %5765 = vmatpush3.bf16.msra.mxu1 %v6031_v44 }
 0x4fb   : > { %5838 = vmatprep.subr.msk.bf16.mxu1 %vm4360_vm12, %v6032_v62 }
 0x4fe   : > { %5767 = vmatpush3.bf16.msra.mxu1 %v4634_v60 }
 0x4ff   : > { %5792 = vmatprep.subr.bf16.mxu1 %v6033_v1 }
 0x501   : > { %5757 = vmatmul.mubr.msk.bf16.gmra.mrb[4].mxu1 %vm2421_vm8, %v4327_v45 }
 0x502   : > { %5760 = vmatprep.mubr.msk.bf16.mxu1 %vm2421_vm8, %v4328_v26 }
 0x509   : > { %5761 = vmatmul.mubr.msk.bf16.gmra.mrb[8].mxu1 %vm2421_vm8, %v4329_v55 }
 0x5cc   : > { %v5754_v20 = vpop.f32.mrb[0].mxu1 }
 0x5cd   : > { %v4398_v7 = vpop.f32.mrb[1].mxu1 }
 0x5ce   : > { %4445 = vxpose.xlu0.b32.start [1/3] (short) (narrow) %v4398_v7, 48  ;;  %v5755_v37 = vpop.f32.mrb[2].mxu1 }
 0x5cf   : > { %4477 = vxpose.xlu1.b32.start [1/3] (short) (narrow) %v5755_v37, 48  ;;  %v4401_v14 = vpop.f32.mrb[3].mxu1 }
 0x5d2   : > { %4446 = vxpose.xlu0.b32.cont [2/3] (short) (narrow) %v4401_v14, 48 }
 0x5d4   : > { %v5758_v47 = vpop.f32.mrb[4].mxu1 }
 0x5d5   : > { %v4414_v0 = vpop.f32.mrb[5].mxu1 }
 0x5d6   : > { %4447 = vxpose.xlu0.b32.end [3/3] (short) (narrow) %v5754_v20, 48  ;;  %4478 = vxpose.xlu1.b32.cont [2/3] (short) (narrow) %v4414_v0, 48  ;;  %v5759_v58 = vpop.f32.mrb[6].mxu1 }
 0x5d7   : > { %v4417_v38 = vpop.f32.mrb[7].mxu1 }
 0x5da   : > { %4479 = vxpose.xlu1.b32.end [3/3] (short) (narrow) %v4417_v38, 48 }
 0x5dc   : > { %v5762_v16 = vpop.f32.mrb[8].mxu1 }
 0x5dd   : > { %v4430_v19 = vpop.f32.mrb[9].mxu1 }
 0x5de   : > { %v5763_v41 = vpop.f32.mrb[10].mxu1 }
 0x5df   : > { %v4433_v36 = vpop.f32.mrb[11].mxu1 }
 0x5e3   : > { %4509 = vxpose.xlu0.b32.start [1/3] (short) (narrow) %v5758_v47, 48 }
 0x5e7   : > { %4510 = vxpose.xlu0.b32.cont [2/3] (short) (narrow) %v5759_v58, 48  ;;  %4541 = vxpose.xlu1.b32.start [1/3] (short) (narrow) %v4433_v36, 48 }
 0x5eb   : > { %4511 = vxpose.xlu0.b32.end [3/3] (short) (narrow) %v4430_v19, 48  ;;  %4542 = vxpose.xlu1.b32.cont [2/3] (short) (narrow) %v5762_v16, 48 }
 0x5ef   : > { %4543 = vxpose.xlu1.b32.end [3/3] (short) (narrow) %v5763_v41, 48 }
 0x64e   : > { %v4461_v6 = vpop.trf.xlu0 }
 0x652   : > { %v4462_v43 = vpop.trf.xlu0  ;;  %v4493_v52 = vpop.trf.xlu1 }
 0x653   : > { %v4573_v22 = vpack.c.bf16 %v4462_v43, %v4461_v6 }
 0x655   : > { %5768 = vmatprep.mubr.msk.bf16.mxu1 %vm2421_vm8, %v4573_v22 }
 0x656   : > { %v4463_v48 = vpop.trf.xlu0  ;;  %v4494_v8 = vpop.trf.xlu1 }
 0x657   : > { %v4576_v25 = vpack.c.bf16 %v4494_v8, %v4493_v52 }
 0x65a   : > { %v4464_v45 = vpop.trf.xlu0  ;;  %v4495_v27 = vpop.trf.xlu1 }
 0x65b   : > { %v4574_v12 = vpack.c.bf16 %v4464_v45, %v4463_v48 }
 0x65d   : > { %5769 = vmatmul.mubr.msk.bf16.vlgmr.msra.gmra.mrb[12].mxu1 %vm2421_vm8, %v4574_v12 }
 0x65e   : > { %v4465_v29 = vpop.trf.xlu0  ;;  %v4496_v9 = vpop.trf.xlu1  ;;  %5793 = vmatpush3.bf16.msra.mxu1 %v6033_v1 }
 0x65f   : > { %5794 = vmatprep.subr.bf16.mxu1 %v6034_v28  ;;  %v4577_v23 = vpack.c.bf16 %v4496_v9, %v4495_v27 }
 0x662   : > { %v4466_v30 = vpop.trf.xlu0  ;;  %v4497_v50 = vpop.trf.xlu1  ;;  %5795 = vmatpush3.bf16.msra.mxu1 %v6034_v28 }
 0x663   : > { %v4575_v3 = vpack.c.bf16 %v4466_v30, %v4465_v29  ;;  %5796 = vmatprep.subr.bf16.mxu1 %v6035_v11 }
 0x665   : > { %5772 = vmatprep.mubr.msk.bf16.mxu1 %vm2421_vm8, %v4575_v3 }
 0x666   : > { %5773 = vmatmul.mubr.msk.bf16.gmra.mrb[16].mxu1 %vm2421_vm8, %v4576_v25  ;;  %v4525_v40 = vpop.trf.xlu0  ;;  %v4498_v32 = vpop.trf.xlu1 }
 0x667   : > { %5776 = vmatprep.mubr.msk.bf16.mxu1 %vm2421_vm8, %v4577_v23  ;;  %5797 = vmatpush3.bf16.msra.mxu1 %v6035_v11  ;;  %v4578_v13 = vpack.c.bf16 %v4498_v32, %v4497_v50 }
 0x66a   : > { %v4526_v51 = vpop.trf.xlu0  ;;  %v4557_v10 = vpop.trf.xlu1 }
 0x66b   : > { %v4579_v24 = vpack.c.bf16 %v4526_v51, %v4525_v40 }
 0x66e   : > { %5777 = vmatmul.mubr.msk.bf16.gmra.mrb[20].mxu1 %vm2421_vm8, %v4578_v13  ;;  %v4527_v42 = vpop.trf.xlu0  ;;  %v4558_v21 = vpop.trf.xlu1 }
 0x66f   : > { %5780 = vmatprep.mubr.msk.bf16.mxu1 %vm2421_vm8, %v4579_v24  ;;  %v4582_v39 = vpack.c.bf16 %v4558_v21, %v4557_v10 }
 0x672   : > { %v4528_v2 = vpop.trf.xlu0  ;;  %v4559_v53 = vpop.trf.xlu1 }
 0x673   : > { %v4580_v54 = vpack.c.bf16 %v4528_v2, %v4527_v42 }
 0x676   : > { %5781 = vmatmul.mubr.msk.bf16.gmra.mrb[24].mxu1 %vm2421_vm8, %v4580_v54  ;;  %v4529_v31 = vpop.trf.xlu0  ;;  %v4560_v15 = vpop.trf.xlu1 }
 0x677   : > { %v4583_v5 = vpack.c.bf16 %v4560_v15, %v4559_v53 }
 0x67a   : > { %v4530_v34 = vpop.trf.xlu0  ;;  %v4561_v61 = vpop.trf.xlu1 }
 0x67b   : > { %v4581_v59 = vpack.c.bf16 %v4530_v34, %v4529_v31 }
 0x67d   : > { %5784 = vmatprep.mubr.msk.bf16.mxu1 %vm2421_vm8, %v4581_v59 }
 0x67e   : > { %5785 = vmatmul.mubr.msk.bf16.gmra.mrb[28].mxu1 %vm2421_vm8, %v4582_v39  ;;  %v4562_v56 = vpop.trf.xlu1 }
 0x67f   : > { %5788 = vmatprep.mubr.msk.bf16.mxu1 %vm2421_vm8, %v4583_v5  ;;  %v4584_v35 = vpack.c.bf16 %v4562_v56, %v4561_v61 }
 0x686   : > { %5789 = vmatmul.mubr.msk.bf16.gmra.mrb[32].mxu1 %vm2421_vm8, %v4584_v35 }
 0x730   : > { %v5770_v57 = vpop.f32.mrb[12].mxu1 }
 0x731   : > { %vm4767_vm13 = vcmp.ge.f32.partialorder %v5770_v57, 0.0  ;;  %v4791_v46 = vmul.f32 0.2, %v5770_v57  ;;  %v4670_v17 = vpop.f32.mrb[13].mxu1 }
 0x732   : > { %vm4765_vm14 = vcmp.ge.f32.partialorder %v4670_v17, 0.0  ;;  %v4789_v63 = vmul.f32 0.2, %v4670_v17  ;;  %v5771_v18 = vpop.f32.mrb[14].mxu1 }
 0x733   : > { %v4815_v33 = vsel %vm4767_vm13, %v5770_v57, %v4791_v46  ;;  %vm4768_vm15 = vcmp.ge.f32.partialorder %v5771_v18, 0.0  ;;  %v4792_v49 = vmul.f32 0.2, %v5771_v18  ;;  %v4673_v26 = vpop.f32.mrb[15].mxu1 }
 0x734   : > { %v4813_v4 = vsel %vm4765_vm14, %v4670_v17, %v4789_v63  ;;  %vm4766_vm0 = vcmp.ge.f32.partialorder %v4673_v26, 0.0  ;;  %v4790_v55 = vmul.f32 0.2, %v4673_v26  ;;  %v4839_v20 = vmul.f32 1.4142135, %v4815_v33 }
 0x735   : > { %v4816_v44 = vsel %vm4768_vm15, %v5771_v18, %v4792_v49  ;;  %v4837_v62 = vmul.f32 1.4142135, %v4813_v4 }
 0x736   : > { %v4840_v7 = vmul.f32 1.4142135, %v4816_v44  ;;  %v4814_v37 = vsel %vm4766_vm0, %v4673_v26, %v4790_v55 }
 0x737   : > { %v4838_v14 = vmul.f32 1.4142135, %v4814_v37 }
 0x738   : > { %v4862_v60 = vpack.c.bf16 %v4840_v7, %v4839_v20 }
 0x739   : > { %v4861_v47 = vpack.c.bf16 %v4838_v14, %v4837_v62  ;;  %v5774_v0 = vpop.f32.mrb[16].mxu1 }
 0x73a   : > { %vm4771_vm2 = vcmp.ge.f32.partialorder %v5774_v0, 0.0  ;;  %v4795_v58 = vmul.f32 0.2, %v5774_v0  ;;  %v4686_v38 = vpop.f32.mrb[17].mxu1 }
 0x73b   : > { %vm4769_vm3 = vcmp.ge.f32.partialorder %v4686_v38, 0.0  ;;  %v4793_v16 = vmul.f32 0.2, %v4686_v38  ;;  %v5775_v19 = vpop.f32.mrb[18].mxu1  ;;  %5798 = vmatprep.mubr.msk.bf16.mxu1 %vm4897_vm1, %v4861_v47 }
 0x73c   : > { %v4819_v41 = vsel %vm4771_vm2, %v5774_v0, %v4795_v58  ;;  %vm4772_vm4 = vcmp.ge.f32.partialorder %v5775_v19, 0.0  ;;  %v4796_v36 = vmul.f32 0.2, %v5775_v19  ;;  %v4689_v1 = vpop.f32.mrb[19].mxu1  ;;  %5799 = vmatmul.mubr.msk.bf16.vlgmr.msra.gmra.mrb[36].mxu1 %vm4897_vm1, %v4862_v60 }
 0x73d   : > { %v4817_v6 = vsel %vm4769_vm3, %v4686_v38, %v4793_v16  ;;  %vm4770_vm5 = vcmp.ge.f32.partialorder %v4689_v1, 0.0  ;;  %v4794_v43 = vmul.f32 0.2, %v4689_v1  ;;  %v4843_v22 = vmul.f32 1.4142135, %v4819_v41 }
 0x73e   : > { %v4820_v52 = vsel %vm4772_vm4, %v5775_v19, %v4796_v36  ;;  %v4841_v45 = vmul.f32 1.4142135, %v4817_v6 }
 0x73f   : > { %v4844_v48 = vmul.f32 1.4142135, %v4820_v52  ;;  %v4818_v8 = vsel %vm4770_vm5, %v4689_v1, %v4794_v43 }
 0x740   : > { %v4842_v27 = vmul.f32 1.4142135, %v4818_v8 }
 0x741   : > { %v4864_v12 = vpack.c.bf16 %v4844_v48, %v4843_v22  ;;  %v5778_v28 = vpop.f32.mrb[20].mxu1 }
 0x742   : > { %v4863_v29 = vpack.c.bf16 %v4842_v27, %v4841_v45  ;;  %vm4775_vm7 = vcmp.ge.f32.partialorder %v5778_v28, 0.0  ;;  %v4799_v9 = vmul.f32 0.2, %v5778_v28  ;;  %v4702_v11 = vpop.f32.mrb[21].mxu1 }
 0x743   : > { %vm4773_vm8 = vcmp.ge.f32.partialorder %v4702_v11, 0.0  ;;  %v4797_v30 = vmul.f32 0.2, %v4702_v11  ;;  %v5779_v50 = vpop.f32.mrb[22].mxu1 }
 0x744   : > { %v4823_v3 = vsel %vm4775_vm7, %v5778_v28, %v4799_v9  ;;  %vm4776_vm9 = vcmp.ge.f32.partialorder %v5779_v50, 0.0  ;;  %v4800_v25 = vmul.f32 0.2, %v5779_v50  ;;  %v4705_v23 = vpop.f32.mrb[23].mxu1  ;;  %5802 = vmatprep.mubr.msk.bf16.mxu1 %vm4897_vm1, %v4863_v29 }
 0x745   : > { %v4821_v40 = vsel %vm4773_vm8, %v4702_v11, %v4797_v30  ;;  %vm4774_vm10 = vcmp.ge.f32.partialorder %v4705_v23, 0.0  ;;  %v4798_v32 = vmul.f32 0.2, %v4705_v23  ;;  %5803 = vmatmul.mubr.msk.bf16.gmra.mrb[40].mxu1 %vm4897_vm1, %v4864_v12  ;;  %v4847_v10 = vmul.f32 1.4142135, %v4823_v3 }
 0x746   : > { %v4824_v51 = vsel %vm4776_vm9, %v5779_v50, %v4800_v25  ;;  %v4845_v42 = vmul.f32 1.4142135, %v4821_v40  ;;  %v6036_v40 = vld [vmem:[%s8637_s4] sm:$0xff]  }
 0x747   : > { %v4848_v13 = vmul.f32 1.4142135, %v4824_v51  ;;  %v4822_v24 = vsel %vm4774_vm10, %v4705_v23, %v4798_v32  ;;  %v6037_v32 = vld [vmem:[%s8637_s4 + $0x8] sm:$0xff]   ;;  %5822 = vmatprep.subr.bf16.mxu1 %v6036_v40 }
 0x748   : > { %v4846_v21 = vmul.f32 1.4142135, %v4822_v24  ;;  %5823 = vmatpush3.bf16.msra.mxu1 %v6036_v40 }
 0x749   : > { %v4866_v2 = vpack.c.bf16 %v4848_v13, %v4847_v10  ;;  %v5782_v53 = vpop.f32.mrb[24].mxu1  ;;  %5824 = vmatprep.subr.bf16.mxu1 %v6037_v32 }
 0x74a   : > { %v4865_v54 = vpack.c.bf16 %v4846_v21, %v4845_v42  ;;  %vm4779_vm11 = vcmp.ge.f32.partialorder %v5782_v53, 0.0  ;;  %v4803_v31 = vmul.f32 0.2, %v5782_v53  ;;  %v4718_v15 = vpop.f32.mrb[25].mxu1 }
 0x74b   : > { %vm4777_vm12 = vcmp.ge.f32.partialorder %v4718_v15, 0.0  ;;  %v4801_v34 = vmul.f32 0.2, %v4718_v15  ;;  %v5783_v59 = vpop.f32.mrb[26].mxu1 }
 0x74c   : > { %v4827_v61 = vsel %vm4779_vm11, %v5782_v53, %v4803_v31  ;;  %vm4780_vm13 = vcmp.ge.f32.partialorder %v5783_v59, 0.0  ;;  %v4804_v39 = vmul.f32 0.2, %v5783_v59  ;;  %v4721_v5 = vpop.f32.mrb[27].mxu1  ;;  %5806 = vmatprep.mubr.msk.bf16.mxu1 %vm4897_vm1, %v4865_v54  ;;  %5825 = vmatpush3.bf16.msra.mxu1 %v6037_v32 }
 0x74d   : > { %v4825_v56 = vsel %vm4777_vm12, %v4718_v15, %v4801_v34  ;;  %vm4778_vm14 = vcmp.ge.f32.partialorder %v4721_v5, 0.0  ;;  %v4802_v35 = vmul.f32 0.2, %v4721_v5  ;;  %5807 = vmatmul.mubr.msk.bf16.gmra.mrb[44].mxu1 %vm4897_vm1, %v4866_v2  ;;  %v4851_v46 = vmul.f32 1.4142135, %v4827_v61  ;;  %v6038_v15 = vld [vmem:[%s8637_s4 + $0x10] sm:$0xff]  }
 0x74e   : > { %v4828_v57 = vsel %vm4780_vm13, %v5783_v59, %v4804_v39  ;;  %v4849_v18 = vmul.f32 1.4142135, %v4825_v56  ;;  %5826 = vmatprep.subr.bf16.mxu1 %v6038_v15 }
 0x74f   : > { %v4852_v17 = vmul.f32 1.4142135, %v4828_v57  ;;  %v4826_v63 = vsel %vm4778_vm14, %v4721_v5, %v4802_v35 }
 0x750   : > { %v4850_v33 = vmul.f32 1.4142135, %v4826_v63  ;;  %5827 = vmatpush3.bf16.msra.mxu1 %v6038_v15 }
 0x751   : > { %v4868_v49 = vpack.c.bf16 %v4852_v17, %v4851_v46  ;;  %v5786_v26 = vpop.f32.mrb[28].mxu1 }
 0x752   : > { %v4867_v4 = vpack.c.bf16 %v4850_v33, %v4849_v18  ;;  %vm4783_vm15 = vcmp.ge.f32.partialorder %v5786_v26, 0.0  ;;  %v4807_v55 = vmul.f32 0.2, %v5786_v26  ;;  %v4734_v44 = vpop.f32.mrb[29].mxu1 }
 0x753   : > { %vm4781_vm0 = vcmp.ge.f32.partialorder %v4734_v44, 0.0  ;;  %v4805_v20 = vmul.f32 0.2, %v4734_v44  ;;  %v5787_v7 = vpop.f32.mrb[30].mxu1 }
 0x754   : > { %v4831_v37 = vsel %vm4783_vm15, %v5786_v26, %v4807_v55  ;;  %vm4784_vm2 = vcmp.ge.f32.partialorder %v5787_v7, 0.0  ;;  %v4808_v62 = vmul.f32 0.2, %v5787_v7  ;;  %v4737_v14 = vpop.f32.mrb[31].mxu1  ;;  %5810 = vmatprep.mubr.msk.bf16.mxu1 %vm4897_vm1, %v4867_v4 }
 0x755   : > { %v4829_v60 = vsel %vm4781_vm0, %v4734_v44, %v4805_v20  ;;  %vm4782_vm3 = vcmp.ge.f32.partialorder %v4737_v14, 0.0  ;;  %v4806_v47 = vmul.f32 0.2, %v4737_v14  ;;  %5811 = vmatmul.mubr.msk.bf16.gmra.mrb[48].mxu1 %vm4897_vm1, %v4868_v49  ;;  %v4855_v58 = vmul.f32 1.4142135, %v4831_v37 }
 0x756   : > { %v4832_v0 = vsel %vm4784_vm2, %v5787_v7, %v4808_v62  ;;  %v4853_v19 = vmul.f32 1.4142135, %v4829_v60 }
 0x757   : > { %v4856_v38 = vmul.f32 1.4142135, %v4832_v0  ;;  %v4830_v16 = vsel %vm4782_vm3, %v4737_v14, %v4806_v47 }
 0x758   : > { %v4854_v41 = vmul.f32 1.4142135, %v4830_v16 }
 0x759   : > { %v4870_v36 = vpack.c.bf16 %v4856_v38, %v4855_v58  ;;  %v5790_v1 = vpop.f32.mrb[32].mxu1 }
 0x75a   : > { %v4869_v6 = vpack.c.bf16 %v4854_v41, %v4853_v19  ;;  %vm4787_vm4 = vcmp.ge.f32.partialorder %v5790_v1, 0.0  ;;  %v4811_v43 = vmul.f32 0.2, %v5790_v1  ;;  %v4750_v52 = vpop.f32.mrb[33].mxu1 }
 0x75b   : > { %vm4785_vm5 = vcmp.ge.f32.partialorder %v4750_v52, 0.0  ;;  %v4809_v22 = vmul.f32 0.2, %v4750_v52  ;;  %v5791_v48 = vpop.f32.mrb[34].mxu1 }
 0x75c   : > { %v4835_v8 = vsel %vm4787_vm4, %v5790_v1, %v4811_v43  ;;  %vm4788_vm7 = vcmp.ge.f32.partialorder %v5791_v48, 0.0  ;;  %v4812_v45 = vmul.f32 0.2, %v5791_v48  ;;  %v4753_v27 = vpop.f32.mrb[35].mxu1  ;;  %5814 = vmatprep.mubr.msk.bf16.mxu1 %vm4897_vm1, %v4869_v6 }
 0x75d   : > { %v4833_v12 = vsel %vm4785_vm5, %v4750_v52, %v4809_v22  ;;  %vm4786_vm8 = vcmp.ge.f32.partialorder %v4753_v27, 0.0  ;;  %v4810_v28 = vmul.f32 0.2, %v4753_v27  ;;  %5815 = vmatmul.mubr.msk.bf16.gmra.mrb[52].mxu1 %vm4897_vm1, %v4870_v36  ;;  %v4859_v9 = vmul.f32 1.4142135, %v4835_v8 }
 0x75e   : > { %v4836_v29 = vsel %vm4788_vm7, %v5791_v48, %v4812_v45  ;;  %v4857_v50 = vmul.f32 1.4142135, %v4833_v12 }
 0x75f   : > { %v4860_v11 = vmul.f32 1.4142135, %v4836_v29  ;;  %v4834_v30 = vsel %vm4786_vm8, %v4753_v27, %v4810_v28 }
 0x760   : > { %v4858_v3 = vmul.f32 1.4142135, %v4834_v30 }
 0x761   : > { %v4872_v25 = vpack.c.bf16 %v4860_v11, %v4859_v9 }
 0x762   : > { %v4871_v23 = vpack.c.bf16 %v4858_v3, %v4857_v50 }
 0x764   : > { %5818 = vmatprep.mubr.msk.bf16.mxu1 %vm4897_vm1, %v4871_v23 }
 0x765   : > { %5819 = vmatmul.mubr.msk.bf16.gmra.mrb[56].mxu1 %vm4897_vm1, %v4872_v25 }
 0x80f   : > { %v5800_v51 = vpop.f32.mrb[36].mxu1 }
 0x810   : > { %v4968_v10 = vpop.f32.mrb[37].mxu1 }
 0x811   : > { %v5801_v13 = vpop.f32.mrb[38].mxu1 }
 0x812   : > { %v4971_v24 = vpop.f32.mrb[39].mxu1 }
 0x818   : > { %v5804_v42 = vpop.f32.mrb[40].mxu1 }
 0x819   : > { %v5907_v21 = vpack.i.bf16 %v5804_v42, %v4968_v10  ;;  %v4984_v2 = vpop.f32.mrb[41].mxu1 }
 0x81a   : > { %v5805_v53 = vpop.f32.mrb[42].mxu1 }
 0x81b   : > { %v5909_v54 = vpack.i.bf16 %v5805_v53, %v4971_v24  ;;  %5908 = vxpose.xlu0.b32.start [1/6] (short) (narrow) %v5907_v21, 16  ;;  %v4987_v31 = vpop.f32.mrb[43].mxu1 }
 0x81f   : > { %5910 = vxpose.xlu0.b32.cont [2/6] (short) (narrow) %v5909_v54, 16 }
 0x820   : > { %v5808_v34 = vpop.f32.mrb[44].mxu1 }
 0x821   : > { %v5915_v59 = vpack.i.bf16 %v5808_v34, %v4984_v2  ;;  %v5000_v61 = vpop.f32.mrb[45].mxu1 }
 0x822   : > { %v5911_v39 = vpack.i.bf16 %v5000_v61, %v5800_v51  ;;  %v5809_v5 = vpop.f32.mrb[46].mxu1 }
 0x823   : > { %v5917_v56 = vpack.i.bf16 %v5809_v5, %v4987_v31  ;;  %v5003_v35 = vpop.f32.mrb[47].mxu1 }
 0x824   : > { %v5913_v57 = vpack.i.bf16 %v5003_v35, %v5801_v13  ;;  %5912 = vxpose.xlu0.b32.cont [3/6] (short) (narrow) %v5911_v39, 16 }
 0x828   : > { %5914 = vxpose.xlu0.b32.cont [4/6] (short) (narrow) %v5913_v57, 16  ;;  %v5812_v46 = vpop.f32.mrb[48].mxu1 }
 0x829   : > { %v5016_v17 = vpop.f32.mrb[49].mxu1 }
 0x82a   : > { %v5813_v63 = vpop.f32.mrb[50].mxu1 }
 0x82b   : > { %v5019_v18 = vpop.f32.mrb[51].mxu1 }
 0x82c   : > { %5916 = vxpose.xlu0.b32.cont [5/6] (short) (narrow) %v5915_v59, 16 }
 0x830   : > { %5918 = vxpose.xlu0.b32.end [6/6] (short) (narrow) %v5917_v56, 16  ;;  %v5816_v33 = vpop.f32.mrb[52].mxu1 }
 0x831   : > { %v5929_v49 = vpack.i.bf16 %v5816_v33, %v5016_v17  ;;  %v5032_v26 = vpop.f32.mrb[53].mxu1 }
 0x832   : > { %v5817_v4 = vpop.f32.mrb[54].mxu1 }
 0x833   : > { %v5931_v55 = vpack.i.bf16 %v5817_v4, %v5019_v18  ;;  %5930 = vxpose.xlu1.b32.start [1/6] (short) (narrow) %v5929_v49, 16  ;;  %v5035_v44 = vpop.f32.mrb[55].mxu1 }
 0x837   : > { %5932 = vxpose.xlu1.b32.cont [2/6] (short) (narrow) %v5931_v55, 16 }
 0x838   : > { %v5820_v20 = vpop.f32.mrb[56].mxu1 }
 0x839   : > { %v5937_v7 = vpack.i.bf16 %v5820_v20, %v5032_v26  ;;  %v5048_v37 = vpop.f32.mrb[57].mxu1 }
 0x83a   : > { %v5933_v62 = vpack.i.bf16 %v5048_v37, %v5812_v46  ;;  %v5821_v14 = vpop.f32.mrb[58].mxu1 }
 0x83b   : > { %v5939_v60 = vpack.i.bf16 %v5821_v14, %v5035_v44  ;;  %v5051_v47 = vpop.f32.mrb[59].mxu1 }
 0x83c   : > { %v5935_v0 = vpack.i.bf16 %v5051_v47, %v5813_v63  ;;  %5934 = vxpose.xlu1.b32.cont [3/6] (short) (narrow) %v5933_v62, 16 }
 0x840   : > { %5936 = vxpose.xlu1.b32.cont [4/6] (short) (narrow) %v5935_v0, 16 }
 0x844   : > { %5938 = vxpose.xlu1.b32.cont [5/6] (short) (narrow) %v5937_v7, 16 }
 0x848   : > { %5940 = vxpose.xlu1.b32.end [6/6] (short) (narrow) %v5939_v60, 16 }
 0x89c   : > { %v5919_v58 = vpop.trf.xlu0 }
 0x89d   : > { %v5923_v38 = vunpack.i.h.bf16 %v5919_v58  ;;  %v5920_v16 = vunpack.i.l.bf16 %v5919_v58 }
 0x8a0   : > { %v5924_v19 = vpop.trf.xlu0 }
 0x8a1   : > { %v5928_v41 = vunpack.i.h.bf16 %v5924_v19  ;;  %v5925_v36 = vunpack.i.l.bf16 %v5924_v19 }
 0x8a3   : > { %v5191_v1 = vpack.c.bf16 %v5925_v36, %v5920_v16  ;;  %v5192_v6 = vpack.c.bf16 %v5928_v41, %v5923_v38 }
 0x8a5   : > { %5828 = vmatprep.mubr.msk.bf16.mxu1 %vm4897_vm1, %v5191_v1 }
 0x8a6   : > { %5829 = vmatmul.mubr.msk.bf16.vlgmr.msra.gmra.mrb[60].mxu1 %vm4897_vm1, %v5192_v6 }
 0x8b4   : > { %v5941_v43 = vpop.trf.xlu1 }
 0x8b5   : > { %v5945_v52 = vunpack.i.h.bf16 %v5941_v43  ;;  %v5942_v22 = vunpack.i.l.bf16 %v5941_v43 }
 0x8b8   : > { %v5946_v48 = vpop.trf.xlu1 }
 0x8b9   : > { %v5950_v8 = vunpack.i.h.bf16 %v5946_v48  ;;  %v5947_v45 = vunpack.i.l.bf16 %v5946_v48 }
 0x8bb   : > { %v5193_v27 = vpack.c.bf16 %v5947_v45, %v5942_v22  ;;  %v5194_v12 = vpack.c.bf16 %v5950_v8, %v5945_v52 }
 0x8bd   : > { %5832 = vmatprep.mubr.msk.bf16.mxu1 %vm4897_vm1, %v5193_v27 }
 0x8be   : > { %5833 = vmatmul.mubr.msk.bf16.gmra.mrb[64].mxu1 %vm4897_vm1, %v5194_v12 }
 0x979   : > { %v5830_v28 = vpop.f32.mrb[60].mxu1 }
 0x97a   : > { %5298 = vst.msk [vmem:[%s271_s28 + $0x10] sm:$0xff] %vm2227_vm6, %v5830_v28  ;;  %v5265_v29 = vpop.f32.mrb[61].mxu1 }
 0x97b   : > { %5296 = vst.msk [vmem:[%s271_s28] sm:$0xff] %vm2227_vm6, %v5265_v29  ;;  %v5831_v9 = vpop.f32.mrb[62].mxu1 }
 0x97c   : > { %5299 = vst.msk [vmem:[%s271_s28 + $0x18] sm:$0xff] %vm2227_vm6, %v5831_v9  ;;  %v5268_v11 = vpop.f32.mrb[63].mxu1 }
 0x97d   : > { %5297 = vst.msk [vmem:[%s271_s28 + $0x8] sm:$0xff] %vm2227_vm6, %v5268_v11 }
 0x991   : > { %v5834_v30 = vpop.f32.mrb[64].mxu1 }
 0x992   : > { %5302 = vst.msk [vmem:[%s271_s28 + $0x30] sm:$0xff] %vm2227_vm6, %v5834_v30  ;;  %v5281_v50 = vpop.f32.mrb[65].mxu1 }
 0x993   : > { %5300 = vst.msk [vmem:[%s271_s28 + $0x20] sm:$0xff] %vm2227_vm6, %v5281_v50  ;;  %v5835_v3 = vpop.f32.mrb[66].mxu1 }
 0x994   : > { %5303 = vst.msk [vmem:[%s271_s28 + $0x38] sm:$0xff] %vm2227_vm6, %v5835_v3  ;;  %v5284_v25 = vpop.f32.mrb[67].mxu1 }
 0x995   : > { %5301 = vst.msk [vmem:[%s271_s28 + $0x28] sm:$0xff] %vm2227_vm6, %v5284_v25 }
 0x996   : > { %6052 = shalt.err (!%p6049_p5)
}
 0x997   : > { %s6053_s19 = scalar_lea.hbm %s8579_s13, 1024  ;;  %s6057_s28 = scalar_lea.hbm %s8639_s6, 2048 }
 0x998   : > { %p6054_p6 = scmp.ne.s32.totalorder %s8579_s13, %s6053_s19  ;;  %p6058_p10 = scmp.lt.u32.totalorder %s8579_s13, %s8639_s6 }
 0x999   : > { %p6059_p11 = scmp.lt.u32.totalorder %s6057_s28, %s6053_s19  ;;  %p6061_p13 = scmp.lt.u32.totalorder %s6053_s19, %s8579_s13 }
 0x99a   : > { %p6055_p7 = pnand %p6054_p6, %p6206_p4 }
 0x99b   : > { %p6060_p12 = por %p6059_p11, %p6058_p10 }
 0x99c   : > { %p6056_p9 = pneg %p6055_p7 }
 0x99d   : > { %p6062_p0 = por %p6061_p13, %p6060_p12 }
 0x99f   : > { %p6063_p1 = pnand %p6062_p0, %p6056_p9 }
 0x9a1   : > { %6066 = shalt.err (!%p6063_p1)
}
 0x9a2   : > { %s6130_s12 = smov 128  }
 0x9a3   : > { %5840 = dma.vmem_to_hbm [thread:$0]  (%p6206_p4), %s8582_s8, 1024, %s8579_s13, %s8586_s24, %s6130_s12, %s6130_s12, %s6120_s17  }
 0x9a4 PF: > { %p5846_p2 = scmp.ge.s32.totalorder %s6117_s26, 2  ;;  %s5336_s14 = sand.u32 1, %s6097_s21  }
 0x9a5   : > { %s5337_s15 = scalar_lea.sflag [#allocation3], %s5336_s14 }
 0x9a6   : > { %p5843_p3 = pnand %p5846_p2, %p6213_p8 }
 0x9a8   : > { %6092 = dma.done.wait (!%p5843_p3), %s5337_s15, 1024  }
 0x9a9   : > { %6094 = vsyncadd (!%p5843_p3), %s5337_s15, 4294966272  ;;  %s19_s26 = sadd.s32 1, %s6117_s26   ;;  %s8678_s21 = smov %s6101_s22 }
 0x9aa   : > { %p16_p5 = scmp.ge.s32.totalorder %s19_s26, 4   ;;  %s8679_s22 = smov %s6105_s23 }
 0x9ab   : > { %s8680_s23 = smov %s6219_s10  ;;  %s8681_s24 = smov %s6113_s25 }
 0x9ac   : > { %s8682_s25 = smov %s8684_s29  ;;  %18 = sbr.rel (!%p16_p5) target bundleno = 4 (0x4), region = 82 }
 0x9b3   :  { %5342 = vsyncpa [#allocation3], 1 }
 0x9b4   :  { %5344 = vsyncpa [#allocation3 + $0x1], 1 }

</bundles_post_ra>
